<compile_context>
chip_gen: v6e
topology: v6e:2x2x1
jax: 0.10.0
libtpu: 0.0.40
codegen_flags: <defaults>
</compile_context>

<pallas_src>
import functools
import numpy as np
import jax
import jax.numpy as jnp
from jax.experimental import pallas as pl
from jax.experimental.pallas import tpu as pltpu

_VMEM_SPEC = pl.BlockSpec(memory_space=pltpu.MemorySpace.VMEM)


# ------------------------------- tiling utils ------------------------------ #

def _round_up(x, m):
    return ((x + m - 1) // m) * m


def _pick_tile(dim, cap, mult):
    """Largest tile (multiple of `mult`, <= cap) minimizing padding of `dim`."""
    best_t, best_pad = mult, _round_up(dim, mult)
    for t in range(mult, cap + 1, mult):
        pad = _round_up(dim, t)
        if pad < best_pad or (pad == best_pad and t > best_t):
            best_t, best_pad = t, pad
    return best_t


# ----------------------------- Pallas kernels ------------------------------ #

def _make_matmul_kernel(relu, has_res):
    """Tiled (tm,tk)@(tk,tn) matmul with K-axis accumulation in a f32 VMEM
    scratch; epilogue applies folded-BN affine (+ optional residual, ReLU)."""

    def kernel(x_ref, w_ref, scale_ref, shift_ref, *rest):
        if has_res:
            res_ref, o_ref, acc_ref = rest
        else:
            o_ref, acc_ref = rest
        k = pl.program_id(2)

        @pl.when(k == 0)
        def _():
            acc_ref[...] = jnp.zeros_like(acc_ref)

        acc_ref[...] += jnp.dot(x_ref[...], w_ref[...],
                                preferred_element_type=jnp.float32)

        @pl.when(k == pl.num_programs(2) - 1)
        def _():
            out = acc_ref[...] * scale_ref[...] + shift_ref[...]
            if has_res:
                out = out + res_ref[...].astype(jnp.float32)
            if relu:
                out = jnp.maximum(out, 0.0)
            o_ref[...] = out.astype(o_ref.dtype)

    return kernel


def fused_matmul(x, w, scale, shift, residual=None, relu=False,
                 out_dtype=jnp.bfloat16):
    """(M,K)@(K,N): bf16 operands on the MXU, f32 accumulation, fused
    per-output-channel affine (folded BN / bias), optional residual + ReLU."""
    M, K = x.shape
    K2, N = w.shape
    assert K == K2
    tm = _pick_tile(M, 512, 16)    # sublane-safe for bf16 blocks
    tk = _pick_tile(K, 512, 128)
    tn = _pick_tile(N, 512, 128)   # lane-dense output stores
    Mp, Kp, Np = _round_up(M, tm), _round_up(K, tk), _round_up(N, tn)

    xp = jnp.pad(x.astype(jnp.bfloat16), ((0, Mp - M), (0, Kp - K)))
    wp = jnp.pad(w.astype(jnp.bfloat16), ((0, Kp - K), (0, Np - N)))
    sc = jnp.pad(scale.astype(jnp.float32).reshape(1, N), ((0, 0), (0, Np - N)))
    sh = jnp.pad(shift.astype(jnp.float32).reshape(1, N), ((0, 0), (0, Np - N)))

    inputs = [xp, wp, sc, sh]
    in_specs = [
        pl.BlockSpec((tm, tk), lambda i, j, k: (i, k)),
        pl.BlockSpec((tk, tn), lambda i, j, k: (k, j)),
        pl.BlockSpec((1, tn), lambda i, j, k: (0, j)),
        pl.BlockSpec((1, tn), lambda i, j, k: (0, j)),
    ]
    has_res = residual is not None
    if has_res:
        rp = jnp.pad(residual.astype(jnp.bfloat16), ((0, Mp - M), (0, Np - N)))
        inputs.append(rp)
        in_specs.append(pl.BlockSpec((tm, tn), lambda i, j, k: (i, j)))

    out = pl.pallas_call(
        _make_matmul_kernel(relu, has_res),
        out_shape=jax.ShapeDtypeStruct((Mp, Np), out_dtype),
        grid_spec=pltpu.PrefetchScalarGridSpec(
            num_scalar_prefetch=0,
            grid=(Mp // tm, Np // tn, Kp // tk),
            in_specs=in_specs,
            out_specs=pl.BlockSpec((tm, tn), lambda i, j, k: (i, j)),
            scratch_shapes=[pltpu.VMEM((tm, tn), jnp.float32)]),
        compiler_params=pltpu.CompilerParams(
            dimension_semantics=("parallel", "parallel", "arbitrary")),
    )(*inputs)
    return out[:M, :N]


def _mha_kernel(q_ref, k_ref, v_ref, o_ref):
    # q: (B*heads, 1, Dh) -- CLS query only; k/v: (B*heads, L, Dh).
    # q is pre-scaled by Dh**-0.5 (folded into the projection affine).
    q = q_ref[...]
    k = k_ref[...]
    v = v_ref[...]
    s = jnp.einsum('bqd,bkd->bqk', q, k, preferred_element_type=jnp.float32)
    m = jnp.max(s, axis=-1, keepdims=True)
    p = jnp.exp(s - m)
    denom = jnp.sum(p, axis=-1, keepdims=True)
    p = p * pl.reciprocal(denom, approx=True)
    o_ref[...] = jnp.einsum('bqk,bkd->bqd', p, v,
                            preferred_element_type=jnp.float32).astype(o_ref.dtype)


def mha(q, k, v):
    # Tiny (CLS-only query, L = spatial^2 + 1): single whole-array VMEM launch.
    return pl.pallas_call(
        _mha_kernel,
        out_shape=jax.ShapeDtypeStruct(q.shape, jnp.float32),
        in_specs=[_VMEM_SPEC] * 3,
        out_specs=_VMEM_SPEC,
    )(q.astype(jnp.float32), k.astype(jnp.float32), v.astype(jnp.float32))


# --------------------------------- glue ------------------------------------ #

def im2col_nhwc(x, kh, kw, stride, pad):
    """x: (N,H,W,C) -> patches (N*Ho*Wo, kh*kw*C) ordered (kh, kw, Cin)."""
    # TODO(synk): this is still a plain-JAX gather that materializes the kh*kw
    # expansion in HBM (in bf16); next step is expressing the tap gather in the
    # matmul BlockSpec index_map so it only ever exists as a VMEM tile.
    N, H, W, C = x.shape
    xp = jnp.pad(x, ((0, 0), (pad, pad), (pad, pad), (0, 0)))
    Ho = (H + 2 * pad - kh) // stride + 1
    Wo = (W + 2 * pad - kw) // stride + 1
    cols = []
    for i in range(kh):
        for j in range(kw):
            cols.append(xp[:, i:i + stride * Ho:stride, j:j + stride * Wo:stride, :])
    col = jnp.stack(cols, axis=3)                      # (N, Ho, Wo, kh*kw, C)
    return col.reshape(N * Ho * Wo, kh * kw * C), Ho, Wo


def avg_pool_nhwc(x, k):
    # TODO(synk): stride-k AvgPool not folded into the adjacent Pallas kernel.
    if k == 1:
        return x
    N, H, W, C = x.shape
    return x.reshape(N, H // k, k, W // k, k, C).astype(jnp.float32).mean(
        axis=(2, 4)).astype(x.dtype)


def conv_bn(x_nhwc, p, stride=1, relu=True, residual=None):
    """Conv2d(bias=False, padding=(k-1)//2) + folded BatchNorm (+ residual/ReLU)."""
    N, H, W, Cin = x_nhwc.shape
    Ktot, Cout = p['w2d'].shape
    kh = int(round((Ktot // Cin) ** 0.5))
    if kh == 1 and stride == 1:
        patches, Ho, Wo = x_nhwc.reshape(N * H * W, Cin), H, W
    else:
        patches, Ho, Wo = im2col_nhwc(x_nhwc, kh, kh, stride, (kh - 1) // 2)
    out = fused_matmul(patches, p['w2d'], p['scale'], p['shift'],
                       residual=residual, relu=relu)
    return out.reshape(N, Ho, Wo, Cout)


def bottleneck_forward(x, p, stride):
    out = conv_bn(x, p['cb1'], relu=True)
    out = conv_bn(out, p['cb2'], relu=True)
    out = avg_pool_nhwc(out, stride)
    if 'down' in p:
        idt = avg_pool_nhwc(x, stride)
        idt = conv_bn(idt, p['down'], relu=False)
    else:
        idt = x
    Ni, Hi, Wi, Ci = idt.shape
    # residual add + ReLU fused into the cb3 matmul epilogue
    return conv_bn(out, p['cb3'], relu=True,
                   residual=idt.reshape(Ni * Hi * Wi, Ci))


def attnpool_forward(x_nhwc, p, heads):
    Nb, H, W, C = x_nhwc.shape
    E = C
    Dh = E // heads
    tok = x_nhwc.astype(jnp.float32).reshape(Nb, H * W, C)            # (N, HW, E)
    tok = jnp.concatenate([tok.mean(axis=1, keepdims=True), tok], 1)  # (N, L, E)
    tok = tok + p['pos'][None, :, :]
    L = tok.shape[1]

    # fused K/V projection over all tokens: one (E, 2E) matmul
    flat = tok.reshape(Nb * L, E)
    kv = fused_matmul(flat, p['kv_w'], jnp.ones((2 * E,), jnp.float32),
                      p['kv_b'])                                      # (Nb*L, 2E)
    kv = kv.reshape(Nb, L, 2 * E)
    k = kv[..., :E].reshape(Nb, L, heads, Dh).transpose(0, 2, 1, 3)
    k = k.reshape(Nb * heads, L, Dh)
    v = kv[..., E:].reshape(Nb, L, heads, Dh).transpose(0, 2, 1, 3)
    v = v.reshape(Nb * heads, L, Dh)

    # CLS-token-only query; Dh**-0.5 scaling folded into the projection affine.
    cls = tok[:, 0, :]                                                # (Nb, E)
    q = fused_matmul(cls, p['q_w'], jnp.full((E,), Dh ** -0.5, jnp.float32),
                     p['q_b'] * (Dh ** -0.5))
    q = q.reshape(Nb * heads, 1, Dh)

    o = mha(q, k, v).reshape(Nb, E)                                   # concat heads
    out_dim = p['c_w'].shape[1]
    return fused_matmul(o, p['c_w'], jnp.ones((out_dim,), jnp.float32),
                        p['c_b'], out_dtype=jnp.float32)              # (Nb, out_dim)


def modified_resnet_forward(x_nchw, params, heads, layer_strides):
    x = jnp.transpose(x_nchw, (0, 2, 3, 1)).astype(jnp.bfloat16)      # NCHW->NHWC
    for p, s in zip(params['stem'], (2, 1, 1)):
        x = conv_bn(x, p, stride=s, relu=True)
    x = avg_pool_nhwc(x, 2)
    for layer_p, strides in zip(params['layers'], layer_strides):
        for bp, s in zip(layer_p, strides):
            x = bottleneck_forward(x, bp, s)
    return attnpool_forward(x, params['attnpool'], heads)


# ----------------------------- parameter init ------------------------------ #

def conv_bn_params(key, cin, cout, k, eps=1e-5):
    k1, k2, k3, k4, k5 = jax.random.split(key, 5)
    fan_in = cin * k * k
    w = jax.random.normal(k1, (cout, cin, k, k), jnp.float32) / np.sqrt(fan_in)
    gamma = 1.0 + 0.1 * jax.random.normal(k2, (cout,), jnp.float32)
    beta = 0.1 * jax.random.normal(k3, (cout,), jnp.float32)
    mean = 0.1 * jax.random.normal(k4, (cout,), jnp.float32)
    var = 1.0 + 0.1 * jax.random.uniform(k5, (cout,), jnp.float32)
    # fold BN once at init time; pre-reshape weight to (kh*kw*Cin, Cout) bf16
    scale = gamma / jnp.sqrt(var + eps)
    shift = beta - mean * scale
    w2d = jnp.transpose(w, (2, 3, 1, 0)).reshape(k * k * cin, cout)
    return {'w2d': w2d.astype(jnp.bfloat16), 'scale': scale, 'shift': shift}


def linear_params(key, din, dout):
    k1, k2 = jax.random.split(key)
    w = jax.random.normal(k1, (dout, din), jnp.float32) / np.sqrt(din)  # (out,in)
    b = 0.1 * jax.random.normal(k2, (dout,), jnp.float32)
    return w.T.astype(jnp.bfloat16), b          # pre-transposed to (in, out)


def init_modified_resnet(key, layers, output_dim, heads, input_resolution, width):
    kit = iter(jax.random.split(key, 256))
    params = {}
    params['stem'] = [
        conv_bn_params(next(kit), 3, width // 2, 3),
        conv_bn_params(next(kit), width // 2, width // 2, 3),
        conv_bn_params(next(kit), width // 2, width, 3),
    ]
    inplanes = width
    layer_cfg = [(width, layers[0], 1), (width * 2, layers[1], 2),
                 (width * 4, layers[2], 2), (width * 8, layers[3], 2)]
    all_layers = []
    layer_strides = []
    for planes, blocks, stride in layer_cfg:
        blocks_p = []
        strides = []
        for b in range(blocks):
            s = stride if b == 0 else 1
            bp = {
                'cb1': conv_bn_params(next(kit), inplanes, planes, 1),
                'cb2': conv_bn_params(next(kit), planes, planes, 3),
                'cb3': conv_bn_params(next(kit), planes, planes * 4, 1),
            }
            if s > 1 or inplanes != planes * 4:
                bp['down'] = conv_bn_params(next(kit), inplanes, planes * 4, 1)
            inplanes = planes * 4
            blocks_p.append(bp)
            strides.append(s)
        all_layers.append(blocks_p)
        layer_strides.append(tuple(strides))
    params['layers'] = all_layers

    embed_dim = width * 32
    spacial = input_resolution // 32
    qw, qb = linear_params(next(kit), embed_dim, embed_dim)
    kw_, kb = linear_params(next(kit), embed_dim, embed_dim)
    vw, vb = linear_params(next(kit), embed_dim, embed_dim)
    cw, cb = linear_params(next(kit), embed_dim, output_dim)
    params['attnpool'] = {
        'pos': jax.random.normal(next(kit), (spacial * spacial + 1, embed_dim),
                                 jnp.float32) / (embed_dim ** 0.5),
        'q_w': qw, 'q_b': qb,
        'kv_w': jnp.concatenate([kw_, vw], axis=1),   # (E, 2E), pre-transposed
        'kv_b': jnp.concatenate([kb, vb]),
        'c_w': cw, 'c_b': cb,
    }
    return params, tuple(layer_strides)


# ----------------------------------- main ----------------------------------- #

if __name__ == "__main__":
    key = jax.random.PRNGKey(0)
    pkey, xkey = jax.random.split(key)

    layers = (1, 1, 1, 1)          # one Bottleneck per stage (small synthetic config)
    output_dim = 16
    heads = 4
    input_resolution = 32          # stem /4, stages /8 -> 1x1 spatial at attnpool
    width = 8                      # embed_dim = width*32 = 256

    params, layer_strides = init_modified_resnet(
        pkey, layers, output_dim, heads, input_resolution, width)
    x = jax.random.normal(xkey, (2, 3, input_resolution, input_resolution),
                          jnp.float32)

    fwd = jax.jit(functools.partial(modified_resnet_forward,
                                    heads=heads, layer_strides=layer_strides))
    out = jax.block_until_ready(fwd(x, params))

    assert out.shape == (2, output_dim), out.shape
    assert bool(jnp.all(jnp.isfinite(out)))
    print("KERNEL_OK")
</pallas_src>

<mosaic_0001>
module attributes {stable_mosaic.version = 11 : i64} {
  func.func @kernel(%arg0: i32, %arg1: i32, %arg2: i32, %arg3: memref<512x128xbf16, #tpu.memory_space<vmem>>, %arg4: memref<128x128xbf16, #tpu.memory_space<vmem>>, %arg5: memref<1x128xf32, #tpu.memory_space<vmem>>, %arg6: memref<1x128xf32, #tpu.memory_space<vmem>>, %arg7: memref<512x128xbf16, #tpu.memory_space<vmem>>, %arg8: memref<512x128xf32, #tpu.memory_space<vmem>>) attributes {dimension_semantics = [#tpu.dimension_semantics<parallel>, #tpu.dimension_semantics<parallel>, #tpu.dimension_semantics<arbitrary>], iteration_bounds = array<i64: 1, 1, 1>, scalar_prefetch = 0 : i64, scratch_operands = 1 : i64, tpu.core_type = #tpu.core_type<tc>, window_params = [{transform_indices = @transform_0, window_bounds = array<i64: 512, 128>}, {transform_indices = @transform_1, window_bounds = array<i64: 128, 128>}, {transform_indices = @transform_2, window_bounds = array<i64: 1, 128>}, {transform_indices = @transform_3, window_bounds = array<i64: 1, 128>}, {transform_indices = @transform_4, window_bounds = array<i64: 512, 128>}]} {
    %c0_i32 = arith.constant 0 : i32
    %0 = arith.cmpi eq, %arg2, %c0_i32 : i32
    %1 = arith.extui %0 : i1 to i32
    %c0_i32_0 = arith.constant 0 : i32
    %2 = arith.cmpi ne, %1, %c0_i32_0 : i32
    scf.if %2 {
      %cst_10 = arith.constant 0.000000e+00 : f32
      %12 = vector.broadcast %cst_10 : f32 to vector<512x128xf32>
      %c0_11 = arith.constant 0 : index
      %c0_12 = arith.constant 0 : index
      %13 = vector.load %arg8[%c0_11, %c0_12] : memref<512x128xf32, #tpu.memory_space<vmem>>, vector<512x128xf32>
      tpu.vector_store %arg8[%c0_11, %c0_12], %12 {strides = array<i32>} : memref<512x128xf32, #tpu.memory_space<vmem>>, vector<512x128xf32>,
    } else {
    }
    %c0 = arith.constant 0 : index
    %c0_1 = arith.constant 0 : index
    %3 = vector.load %arg8[%c0, %c0_1] : memref<512x128xf32, #tpu.memory_space<vmem>>, vector<512x128xf32>
    %c0_2 = arith.constant 0 : index
    %c0_3 = arith.constant 0 : index
    %4 = vector.load %arg3[%c0_2, %c0_3] : memref<512x128xbf16, #tpu.memory_space<vmem>>, vector<512x128xbf16>
    %c0_4 = arith.constant 0 : index
    %c0_5 = arith.constant 0 : index
    %5 = vector.load %arg4[%c0_4, %c0_5] : memref<128x128xbf16, #tpu.memory_space<vmem>>, vector<128x128xbf16>
    %cst = arith.constant dense<0.000000e+00> : vector<512x128xf32>
    %6 = tpu.matmul %4, %5, %cst {dimension_numbers = #tpu.dot_dimension_numbers<[1], [0], [0], [1], [0, 0, 1, 1], [], []>} : vector<512x128xbf16>, vector<128x128xbf16>, vector<512x128xf32> -> vector<512x128xf32>
    %7 = arith.addf %3, %6 : vector<512x128xf32>
    %c0_6 = arith.constant 0 : index
    %c0_7 = arith.constant 0 : index
    %8 = vector.load %arg8[%c0_6, %c0_7] : memref<512x128xf32, #tpu.memory_space<vmem>>, vector<512x128xf32>
    tpu.vector_store %arg8[%c0_6, %c0_7], %7 {strides = array<i32>} : memref<512x128xf32, #tpu.memory_space<vmem>>, vector<512x128xf32>,
    %c0_i32_8 = arith.constant 0 : i32
    %9 = arith.cmpi eq, %arg2, %c0_i32_8 : i32
    %10 = arith.extui %9 : i1 to i32
    %c0_i32_9 = arith.constant 0 : i32
    %11 = arith.cmpi ne, %10, %c0_i32_9 : i32
    scf.if %11 {
      %c0_10 = arith.constant 0 : index
      %c0_11 = arith.constant 0 : index
      %12 = vector.load %arg8[%c0_10, %c0_11] : memref<512x128xf32, #tpu.memory_space<vmem>>, vector<512x128xf32>
      %c0_12 = arith.constant 0 : index
      %c0_13 = arith.constant 0 : index
      %13 = vector.load %arg5[%c0_12, %c0_13] : memref<1x128xf32, #tpu.memory_space<vmem>>, vector<1x128xf32>
      %14 = vector.broadcast %13 : vector<1x128xf32> to vector<512x128xf32>
      %15 = arith.mulf %12, %14 : vector<512x128xf32>
      %c0_14 = arith.constant 0 : index
      %c0_15 = arith.constant 0 : index
      %16 = vector.load %arg6[%c0_14, %c0_15] : memref<1x128xf32, #tpu.memory_space<vmem>>, vector<1x128xf32>
      %17 = vector.broadcast %16 : vector<1x128xf32> to vector<512x128xf32>
      %18 = arith.addf %15, %17 : vector<512x128xf32>
      %cst_16 = arith.constant 0.000000e+00 : f32
      %19 = vector.broadcast %cst_16 : f32 to vector<512x128xf32>
      %20 = arith.maximumf %18, %19 : vector<512x128xf32>
      %21 = arith.truncf %20 : vector<512x128xf32> to vector<512x128xbf16>
      %c0_17 = arith.constant 0 : index
      %c0_18 = arith.constant 0 : index
      %22 = vector.load %arg7[%c0_17, %c0_18] : memref<512x128xbf16, #tpu.memory_space<vmem>>, vector<512x128xbf16>
      tpu.vector_store %arg7[%c0_17, %c0_18], %21 {strides = array<i32>} : memref<512x128xbf16, #tpu.memory_space<vmem>>, vector<512x128xbf16>,
    } else {
    }
    return
  }
  func.func @transform_0(%arg0: i32, %arg1: i32, %arg2: i32) -> (i32, i32) {
    %c0_i32 = arith.constant 0 : i32
    return %arg0, %arg2 : i32, i32
  }
  func.func @transform_1(%arg0: i32, %arg1: i32, %arg2: i32) -> (i32, i32) {
    %c0_i32 = arith.constant 0 : i32
    return %arg2, %arg1 : i32, i32
  }
  func.func @transform_2(%arg0: i32, %arg1: i32, %arg2: i32) -> (i32, i32) {
    %c0_i32 = arith.constant 0 : i32
    %c0_i32_0 = arith.constant 0 : i32
    return %c0_i32, %arg1 : i32, i32
  }
  func.func @transform_3(%arg0: i32, %arg1: i32, %arg2: i32) -> (i32, i32) {
    %c0_i32 = arith.constant 0 : i32
    %c0_i32_0 = arith.constant 0 : i32
    return %c0_i32, %arg1 : i32, i32
  }
  func.func @transform_4(%arg0: i32, %arg1: i32, %arg2: i32) -> (i32, i32) {
    %c0_i32 = arith.constant 0 : i32
    return %arg0, %arg1 : i32, i32
  }
}

module attributes {stable_mosaic.version = 11 : i64} {
  func.func @kernel(%arg0: i32, %arg1: i32, %arg2: i32, %arg3: memref<128x128xbf16, #tpu.memory_space<vmem>>, %arg4: memref<128x128xbf16, #tpu.memory_space<vmem>>, %arg5: memref<1x128xf32, #tpu.memory_space<vmem>>, %arg6: memref<1x128xf32, #tpu.memory_space<vmem>>, %arg7: memref<128x128xbf16, #tpu.memory_space<vmem>>, %arg8: memref<128x128xf32, #tpu.memory_space<vmem>>) attributes {dimension_semantics = [#tpu.dimension_semantics<parallel>, #tpu.dimension_semantics<parallel>, #tpu.dimension_semantics<arbitrary>], iteration_bounds = array<i64: 1, 1, 1>, scalar_prefetch = 0 : i64, scratch_operands = 1 : i64, tpu.core_type = #tpu.core_type<tc>, window_params = [{transform_indices = @transform_0, window_bounds = array<i64: 128, 128>}, {transform_indices = @transform_1, window_bounds = array<i64: 128, 128>}, {transform_indices = @transform_2, window_bounds = array<i64: 1, 128>}, {transform_indices = @transform_3, window_bounds = array<i64: 1, 128>}, {transform_indices = @transform_4, window_bounds = array<i64: 128, 128>}]} {
    %c0_i32 = arith.constant 0 : i32
    %0 = arith.cmpi eq, %arg2, %c0_i32 : i32
    %1 = arith.extui %0 : i1 to i32
    %c0_i32_0 = arith.constant 0 : i32
    %2 = arith.cmpi ne, %1, %c0_i32_0 : i32
    scf.if %2 {
      %cst_10 = arith.constant 0.000000e+00 : f32
      %12 = vector.broadcast %cst_10 : f32 to vector<128x128xf32>
      %c0_11 = arith.constant 0 : index
      %c0_12 = arith.constant 0 : index
      %13 = vector.load %arg8[%c0_11, %c0_12] : memref<128x128xf32, #tpu.memory_space<vmem>>, vector<128x128xf32>
      tpu.vector_store %arg8[%c0_11, %c0_12], %12 {strides = array<i32>} : memref<128x128xf32, #tpu.memory_space<vmem>>, vector<128x128xf32>,
    } else {
    }
    %c0 = arith.constant 0 : index
    %c0_1 = arith.constant 0 : index
    %3 = vector.load %arg8[%c0, %c0_1] : memref<128x128xf32, #tpu.memory_space<vmem>>, vector<128x128xf32>
    %c0_2 = arith.constant 0 : index
    %c0_3 = arith.constant 0 : index
    %4 = vector.load %arg3[%c0_2, %c0_3] : memref<128x128xbf16, #tpu.memory_space<vmem>>, vector<128x128xbf16>
    %c0_4 = arith.constant 0 : index
    %c0_5 = arith.constant 0 : index
    %5 = vector.load %arg4[%c0_4, %c0_5] : memref<128x128xbf16, #tpu.memory_space<vmem>>, vector<128x128xbf16>
    %cst = arith.constant dense<0.000000e+00> : vector<128x128xf32>
    %6 = tpu.matmul %4, %5, %cst {dimension_numbers = #tpu.dot_dimension_numbers<[1], [0], [0], [1], [0, 0, 1, 1], [], []>} : vector<128x128xbf16>, vector<128x128xbf16>, vector<128x128xf32> -> vector<128x128xf32>
    %7 = arith.addf %3, %6 : vector<128x128xf32>
    %c0_6 = arith.constant 0 : index
    %c0_7 = arith.constant 0 : index
    %8 = vector.load %arg8[%c0_6, %c0_7] : memref<128x128xf32, #tpu.memory_space<vmem>>, vector<128x128xf32>
    tpu.vector_store %arg8[%c0_6, %c0_7], %7 {strides = array<i32>} : memref<128x128xf32, #tpu.memory_space<vmem>>, vector<128x128xf32>,
    %c0_i32_8 = arith.constant 0 : i32
    %9 = arith.cmpi eq, %arg2, %c0_i32_8 : i32
    %10 = arith.extui %9 : i1 to i32
    %c0_i32_9 = arith.constant 0 : i32
    %11 = arith.cmpi ne, %10, %c0_i32_9 : i32
    scf.if %11 {
      %c0_10 = arith.constant 0 : index
      %c0_11 = arith.constant 0 : index
      %12 = vector.load %arg8[%c0_10, %c0_11] : memref<128x128xf32, #tpu.memory_space<vmem>>, vector<128x128xf32>
      %c0_12 = arith.constant 0 : index
      %c0_13 = arith.constant 0 : index
      %13 = vector.load %arg5[%c0_12, %c0_13] : memref<1x128xf32, #tpu.memory_space<vmem>>, vector<1x128xf32>
      %14 = vector.broadcast %13 : vector<1x128xf32> to vector<128x128xf32>
      %15 = arith.mulf %12, %14 : vector<128x128xf32>
      %c0_14 = arith.constant 0 : index
      %c0_15 = arith.constant 0 : index
      %16 = vector.load %arg6[%c0_14, %c0_15] : memref<1x128xf32, #tpu.memory_space<vmem>>, vector<1x128xf32>
      %17 = vector.broadcast %16 : vector<1x128xf32> to vector<128x128xf32>
      %18 = arith.addf %15, %17 : vector<128x128xf32>
      %cst_16 = arith.constant 0.000000e+00 : f32
      %19 = vector.broadcast %cst_16 : f32 to vector<128x128xf32>
      %20 = arith.maximumf %18, %19 : vector<128x128xf32>
      %21 = arith.truncf %20 : vector<128x128xf32> to vector<128x128xbf16>
      %c0_17 = arith.constant 0 : index
      %c0_18 = arith.constant 0 : index
      %22 = vector.load %arg7[%c0_17, %c0_18] : memref<128x128xbf16, #tpu.memory_space<vmem>>, vector<128x128xbf16>
      tpu.vector_store %arg7[%c0_17, %c0_18], %21 {strides = array<i32>} : memref<128x128xbf16, #tpu.memory_space<vmem>>, vector<128x128xbf16>,
    } else {
    }
    return
  }
  func.func @transform_0(%arg0: i32, %arg1: i32, %arg2: i32) -> (i32, i32) {
    %c0_i32 = arith.constant 0 : i32
    return %arg0, %arg2 : i32, i32
  }
  func.func @transform_1(%arg0: i32, %arg1: i32, %arg2: i32) -> (i32, i32) {
    %c0_i32 = arith.constant 0 : i32
    return %arg2, %arg1 : i32, i32
  }
  func.func @transform_2(%arg0: i32, %arg1: i32, %arg2: i32) -> (i32, i32) {
    %c0_i32 = arith.constant 0 : i32
    %c0_i32_0 = arith.constant 0 : i32
    return %c0_i32, %arg1 : i32, i32
  }
  func.func @transform_3(%arg0: i32, %arg1: i32, %arg2: i32) -> (i32, i32) {
    %c0_i32 = arith.constant 0 : i32
    %c0_i32_0 = arith.constant 0 : i32
    return %c0_i32, %arg1 : i32, i32
  }
  func.func @transform_4(%arg0: i32, %arg1: i32, %arg2: i32) -> (i32, i32) {
    %c0_i32 = arith.constant 0 : i32
    return %arg0, %arg1 : i32, i32
  }
}

module attributes {stable_mosaic.version = 11 : i64} {
  func.func @kernel(%arg0: i32, %arg1: i32, %arg2: i32, %arg3: memref<128x128xbf16, #tpu.memory_space<vmem>>, %arg4: memref<128x128xbf16, #tpu.memory_space<vmem>>, %arg5: memref<1x128xf32, #tpu.memory_space<vmem>>, %arg6: memref<1x128xf32, #tpu.memory_space<vmem>>, %arg7: memref<128x128xbf16, #tpu.memory_space<vmem>>, %arg8: memref<128x128xbf16, #tpu.memory_space<vmem>>, %arg9: memref<128x128xf32, #tpu.memory_space<vmem>>) attributes {dimension_semantics = [#tpu.dimension_semantics<parallel>, #tpu.dimension_semantics<parallel>, #tpu.dimension_semantics<arbitrary>], iteration_bounds = array<i64: 1, 1, 1>, scalar_prefetch = 0 : i64, scratch_operands = 1 : i64, tpu.core_type = #tpu.core_type<tc>, window_params = [{transform_indices = @transform_0, window_bounds = array<i64: 128, 128>}, {transform_indices = @transform_1, window_bounds = array<i64: 128, 128>}, {transform_indices = @transform_2, window_bounds = array<i64: 1, 128>}, {transform_indices = @transform_3, window_bounds = array<i64: 1, 128>}, {transform_indices = @transform_4, window_bounds = array<i64: 128, 128>}, {transform_indices = @transform_5, window_bounds = array<i64: 128, 128>}]} {
    %c0_i32 = arith.constant 0 : i32
    %0 = arith.cmpi eq, %arg2, %c0_i32 : i32
    %1 = arith.extui %0 : i1 to i32
    %c0_i32_0 = arith.constant 0 : i32
    %2 = arith.cmpi ne, %1, %c0_i32_0 : i32
    scf.if %2 {
      %cst_10 = arith.constant 0.000000e+00 : f32
      %12 = vector.broadcast %cst_10 : f32 to vector<128x128xf32>
      %c0_11 = arith.constant 0 : index
      %c0_12 = arith.constant 0 : index
      %13 = vector.load %arg9[%c0_11, %c0_12] : memref<128x128xf32, #tpu.memory_space<vmem>>, vector<128x128xf32>
      tpu.vector_store %arg9[%c0_11, %c0_12], %12 {strides = array<i32>} : memref<128x128xf32, #tpu.memory_space<vmem>>, vector<128x128xf32>,
    } else {
    }
    %c0 = arith.constant 0 : index
    %c0_1 = arith.constant 0 : index
    %3 = vector.load %arg9[%c0, %c0_1] : memref<128x128xf32, #tpu.memory_space<vmem>>, vector<128x128xf32>
    %c0_2 = arith.constant 0 : index
    %c0_3 = arith.constant 0 : index
    %4 = vector.load %arg3[%c0_2, %c0_3] : memref<128x128xbf16, #tpu.memory_space<vmem>>, vector<128x128xbf16>
    %c0_4 = arith.constant 0 : index
    %c0_5 = arith.constant 0 : index
    %5 = vector.load %arg4[%c0_4, %c0_5] : memref<128x128xbf16, #tpu.memory_space<vmem>>, vector<128x128xbf16>
    %cst = arith.constant dense<0.000000e+00> : vector<128x128xf32>
    %6 = tpu.matmul %4, %5, %cst {dimension_numbers = #tpu.dot_dimension_numbers<[1], [0], [0], [1], [0, 0, 1, 1], [], []>} : vector<128x128xbf16>, vector<128x128xbf16>, vector<128x128xf32> -> vector<128x128xf32>
    %7 = arith.addf %3, %6 : vector<128x128xf32>
    %c0_6 = arith.constant 0 : index
    %c0_7 = arith.constant 0 : index
    %8 = vector.load %arg9[%c0_6, %c0_7] : memref<128x128xf32, #tpu.memory_space<vmem>>, vector<128x128xf32>
    tpu.vector_store %arg9[%c0_6, %c0_7], %7 {strides = array<i32>} : memref<128x128xf32, #tpu.memory_space<vmem>>, vector<128x128xf32>,
    %c0_i32_8 = arith.constant 0 : i32
    %9 = arith.cmpi eq, %arg2, %c0_i32_8 : i32
    %10 = arith.extui %9 : i1 to i32
    %c0_i32_9 = arith.constant 0 : i32
    %11 = arith.cmpi ne, %10, %c0_i32_9 : i32
    scf.if %11 {
      %c0_10 = arith.constant 0 : index
      %c0_11 = arith.constant 0 : index
      %12 = vector.load %arg9[%c0_10, %c0_11] : memref<128x128xf32, #tpu.memory_space<vmem>>, vector<128x128xf32>
      %c0_12 = arith.constant 0 : index
      %c0_13 = arith.constant 0 : index
      %13 = vector.load %arg5[%c0_12, %c0_13] : memref<1x128xf32, #tpu.memory_space<vmem>>, vector<1x128xf32>
      %14 = vector.broadcast %13 : vector<1x128xf32> to vector<128x128xf32>
      %15 = arith.mulf %12, %14 : vector<128x128xf32>
      %c0_14 = arith.constant 0 : index
      %c0_15 = arith.constant 0 : index
      %16 = vector.load %arg6[%c0_14, %c0_15] : memref<1x128xf32, #tpu.memory_space<vmem>>, vector<1x128xf32>
      %17 = vector.broadcast %16 : vector<1x128xf32> to vector<128x128xf32>
      %18 = arith.addf %15, %17 : vector<128x128xf32>
      %c0_16 = arith.constant 0 : index
      %c0_17 = arith.constant 0 : index
      %19 = vector.load %arg7[%c0_16, %c0_17] : memref<128x128xbf16, #tpu.memory_space<vmem>>, vector<128x128xbf16>
      %20 = arith.extf %19 : vector<128x128xbf16> to vector<128x128xf32>
      %21 = arith.addf %18, %20 : vector<128x128xf32>
      %cst_18 = arith.constant 0.000000e+00 : f32
      %22 = vector.broadcast %cst_18 : f32 to vector<128x128xf32>
      %23 = arith.maximumf %21, %22 : vector<128x128xf32>
      %24 = arith.truncf %23 : vector<128x128xf32> to vector<128x128xbf16>
      %c0_19 = arith.constant 0 : index
      %c0_20 = arith.constant 0 : index
      %25 = vector.load %arg8[%c0_19, %c0_20] : memref<128x128xbf16, #tpu.memory_space<vmem>>, vector<128x128xbf16>
      tpu.vector_store %arg8[%c0_19, %c0_20], %24 {strides = array<i32>} : memref<128x128xbf16, #tpu.memory_space<vmem>>, vector<128x128xbf16>,
    } else {
    }
    return
  }
  func.func @transform_0(%arg0: i32, %arg1: i32, %arg2: i32) -> (i32, i32) {
    %c0_i32 = arith.constant 0 : i32
    return %arg0, %arg2 : i32, i32
  }
  func.func @transform_1(%arg0: i32, %arg1: i32, %arg2: i32) -> (i32, i32) {
    %c0_i32 = arith.constant 0 : i32
    return %arg2, %arg1 : i32, i32
  }
  func.func @transform_2(%arg0: i32, %arg1: i32, %arg2: i32) -> (i32, i32) {
    %c0_i32 = arith.constant 0 : i32
    %c0_i32_0 = arith.constant 0 : i32
    return %c0_i32, %arg1 : i32, i32
  }
  func.func @transform_3(%arg0: i32, %arg1: i32, %arg2: i32) -> (i32, i32) {
    %c0_i32 = arith.constant 0 : i32
    %c0_i32_0 = arith.constant 0 : i32
    return %c0_i32, %arg1 : i32, i32
  }
  func.func @transform_4(%arg0: i32, %arg1: i32, %arg2: i32) -> (i32, i32) {
    %c0_i32 = arith.constant 0 : i32
    return %arg0, %arg1 : i32, i32
  }
  func.func @transform_5(%arg0: i32, %arg1: i32, %arg2: i32) -> (i32, i32) {
    %c0_i32 = arith.constant 0 : i32
    return %arg0, %arg1 : i32, i32
  }
}

module attributes {stable_mosaic.version = 11 : i64} {
  func.func @kernel(%arg0: i32, %arg1: i32, %arg2: i32, %arg3: memref<128x128xbf16, #tpu.memory_space<vmem>>, %arg4: memref<128x128xbf16, #tpu.memory_space<vmem>>, %arg5: memref<1x128xf32, #tpu.memory_space<vmem>>, %arg6: memref<1x128xf32, #tpu.memory_space<vmem>>, %arg7: memref<128x128xbf16, #tpu.memory_space<vmem>>, %arg8: memref<128x128xf32, #tpu.memory_space<vmem>>) attributes {dimension_semantics = [#tpu.dimension_semantics<parallel>, #tpu.dimension_semantics<parallel>, #tpu.dimension_semantics<arbitrary>], iteration_bounds = array<i64: 1, 1, 1>, scalar_prefetch = 0 : i64, scratch_operands = 1 : i64, tpu.core_type = #tpu.core_type<tc>, window_params = [{transform_indices = @transform_0, window_bounds = array<i64: 128, 128>}, {transform_indices = @transform_1, window_bounds = array<i64: 128, 128>}, {transform_indices = @transform_2, window_bounds = array<i64: 1, 128>}, {transform_indices = @transform_3, window_bounds = array<i64: 1, 128>}, {transform_indices = @transform_4, window_bounds = array<i64: 128, 128>}]} {
    %c0_i32 = arith.constant 0 : i32
    %0 = arith.cmpi eq, %arg2, %c0_i32 : i32
    %1 = arith.extui %0 : i1 to i32
    %c0_i32_0 = arith.constant 0 : i32
    %2 = arith.cmpi ne, %1, %c0_i32_0 : i32
    scf.if %2 {
      %cst_10 = arith.constant 0.000000e+00 : f32
      %12 = vector.broadcast %cst_10 : f32 to vector<128x128xf32>
      %c0_11 = arith.constant 0 : index
      %c0_12 = arith.constant 0 : index
      %13 = vector.load %arg8[%c0_11, %c0_12] : memref<128x128xf32, #tpu.memory_space<vmem>>, vector<128x128xf32>
      tpu.vector_store %arg8[%c0_11, %c0_12], %12 {strides = array<i32>} : memref<128x128xf32, #tpu.memory_space<vmem>>, vector<128x128xf32>,
    } else {
    }
    %c0 = arith.constant 0 : index
    %c0_1 = arith.constant 0 : index
    %3 = vector.load %arg8[%c0, %c0_1] : memref<128x128xf32, #tpu.memory_space<vmem>>, vector<128x128xf32>
    %c0_2 = arith.constant 0 : index
    %c0_3 = arith.constant 0 : index
    %4 = vector.load %arg3[%c0_2, %c0_3] : memref<128x128xbf16, #tpu.memory_space<vmem>>, vector<128x128xbf16>
    %c0_4 = arith.constant 0 : index
    %c0_5 = arith.constant 0 : index
    %5 = vector.load %arg4[%c0_4, %c0_5] : memref<128x128xbf16, #tpu.memory_space<vmem>>, vector<128x128xbf16>
    %cst = arith.constant dense<0.000000e+00> : vector<128x128xf32>
    %6 = tpu.matmul %4, %5, %cst {dimension_numbers = #tpu.dot_dimension_numbers<[1], [0], [0], [1], [0, 0, 1, 1], [], []>} : vector<128x128xbf16>, vector<128x128xbf16>, vector<128x128xf32> -> vector<128x128xf32>
    %7 = arith.addf %3, %6 : vector<128x128xf32>
    %c0_6 = arith.constant 0 : index
    %c0_7 = arith.constant 0 : index
    %8 = vector.load %arg8[%c0_6, %c0_7] : memref<128x128xf32, #tpu.memory_space<vmem>>, vector<128x128xf32>
    tpu.vector_store %arg8[%c0_6, %c0_7], %7 {strides = array<i32>} : memref<128x128xf32, #tpu.memory_space<vmem>>, vector<128x128xf32>,
    %c0_i32_8 = arith.constant 0 : i32
    %9 = arith.cmpi eq, %arg2, %c0_i32_8 : i32
    %10 = arith.extui %9 : i1 to i32
    %c0_i32_9 = arith.constant 0 : i32
    %11 = arith.cmpi ne, %10, %c0_i32_9 : i32
    scf.if %11 {
      %c0_10 = arith.constant 0 : index
      %c0_11 = arith.constant 0 : index
      %12 = vector.load %arg8[%c0_10, %c0_11] : memref<128x128xf32, #tpu.memory_space<vmem>>, vector<128x128xf32>
      %c0_12 = arith.constant 0 : index
      %c0_13 = arith.constant 0 : index
      %13 = vector.load %arg5[%c0_12, %c0_13] : memref<1x128xf32, #tpu.memory_space<vmem>>, vector<1x128xf32>
      %14 = vector.broadcast %13 : vector<1x128xf32> to vector<128x128xf32>
      %15 = arith.mulf %12, %14 : vector<128x128xf32>
      %c0_14 = arith.constant 0 : index
      %c0_15 = arith.constant 0 : index
      %16 = vector.load %arg6[%c0_14, %c0_15] : memref<1x128xf32, #tpu.memory_space<vmem>>, vector<1x128xf32>
      %17 = vector.broadcast %16 : vector<1x128xf32> to vector<128x128xf32>
      %18 = arith.addf %15, %17 : vector<128x128xf32>
      %19 = arith.truncf %18 : vector<128x128xf32> to vector<128x128xbf16>
      %c0_16 = arith.constant 0 : index
      %c0_17 = arith.constant 0 : index
      %20 = vector.load %arg7[%c0_16, %c0_17] : memref<128x128xbf16, #tpu.memory_space<vmem>>, vector<128x128xbf16>
      tpu.vector_store %arg7[%c0_16, %c0_17], %19 {strides = array<i32>} : memref<128x128xbf16, #tpu.memory_space<vmem>>, vector<128x128xbf16>,
    } else {
    }
    return
  }
  func.func @transform_0(%arg0: i32, %arg1: i32, %arg2: i32) -> (i32, i32) {
    %c0_i32 = arith.constant 0 : i32
    return %arg0, %arg2 : i32, i32
  }
  func.func @transform_1(%arg0: i32, %arg1: i32, %arg2: i32) -> (i32, i32) {
    %c0_i32 = arith.constant 0 : i32
    return %arg2, %arg1 : i32, i32
  }
  func.func @transform_2(%arg0: i32, %arg1: i32, %arg2: i32) -> (i32, i32) {
    %c0_i32 = arith.constant 0 : i32
    %c0_i32_0 = arith.constant 0 : i32
    return %c0_i32, %arg1 : i32, i32
  }
  func.func @transform_3(%arg0: i32, %arg1: i32, %arg2: i32) -> (i32, i32) {
    %c0_i32 = arith.constant 0 : i32
    %c0_i32_0 = arith.constant 0 : i32
    return %c0_i32, %arg1 : i32, i32
  }
  func.func @transform_4(%arg0: i32, %arg1: i32, %arg2: i32) -> (i32, i32) {
    %c0_i32 = arith.constant 0 : i32
    return %arg0, %arg1 : i32, i32
  }
}

module attributes {stable_mosaic.version = 11 : i64} {
  func.func @kernel(%arg0: i32, %arg1: i32, %arg2: i32, %arg3: memref<128x256xbf16, #tpu.memory_space<vmem>>, %arg4: memref<256x128xbf16, #tpu.memory_space<vmem>>, %arg5: memref<1x128xf32, #tpu.memory_space<vmem>>, %arg6: memref<1x128xf32, #tpu.memory_space<vmem>>, %arg7: memref<128x128xbf16, #tpu.memory_space<vmem>>, %arg8: memref<128x128xf32, #tpu.memory_space<vmem>>) attributes {dimension_semantics = [#tpu.dimension_semantics<parallel>, #tpu.dimension_semantics<parallel>, #tpu.dimension_semantics<arbitrary>], iteration_bounds = array<i64: 1, 1, 1>, scalar_prefetch = 0 : i64, scratch_operands = 1 : i64, tpu.core_type = #tpu.core_type<tc>, window_params = [{transform_indices = @transform_0, window_bounds = array<i64: 128, 256>}, {transform_indices = @transform_1, window_bounds = array<i64: 256, 128>}, {transform_indices = @transform_2, window_bounds = array<i64: 1, 128>}, {transform_indices = @transform_3, window_bounds = array<i64: 1, 128>}, {transform_indices = @transform_4, window_bounds = array<i64: 128, 128>}]} {
    %c0_i32 = arith.constant 0 : i32
    %0 = arith.cmpi eq, %arg2, %c0_i32 : i32
    %1 = arith.extui %0 : i1 to i32
    %c0_i32_0 = arith.constant 0 : i32
    %2 = arith.cmpi ne, %1, %c0_i32_0 : i32
    scf.if %2 {
      %cst_10 = arith.constant 0.000000e+00 : f32
      %12 = vector.broadcast %cst_10 : f32 to vector<128x128xf32>
      %c0_11 = arith.constant 0 : index
      %c0_12 = arith.constant 0 : index
      %13 = vector.load %arg8[%c0_11, %c0_12] : memref<128x128xf32, #tpu.memory_space<vmem>>, vector<128x128xf32>
      tpu.vector_store %arg8[%c0_11, %c0_12], %12 {strides = array<i32>} : memref<128x128xf32, #tpu.memory_space<vmem>>, vector<128x128xf32>,
    } else {
    }
    %c0 = arith.constant 0 : index
    %c0_1 = arith.constant 0 : index
    %3 = vector.load %arg8[%c0, %c0_1] : memref<128x128xf32, #tpu.memory_space<vmem>>, vector<128x128xf32>
    %c0_2 = arith.constant 0 : index
    %c0_3 = arith.constant 0 : index
    %4 = vector.load %arg3[%c0_2, %c0_3] : memref<128x256xbf16, #tpu.memory_space<vmem>>, vector<128x256xbf16>
    %c0_4 = arith.constant 0 : index
    %c0_5 = arith.constant 0 : index
    %5 = vector.load %arg4[%c0_4, %c0_5] : memref<256x128xbf16, #tpu.memory_space<vmem>>, vector<256x128xbf16>
    %cst = arith.constant dense<0.000000e+00> : vector<128x128xf32>
    %6 = tpu.matmul %4, %5, %cst {dimension_numbers = #tpu.dot_dimension_numbers<[1], [0], [0], [1], [0, 0, 1, 1], [], []>} : vector<128x256xbf16>, vector<256x128xbf16>, vector<128x128xf32> -> vector<128x128xf32>
    %7 = arith.addf %3, %6 : vector<128x128xf32>
    %c0_6 = arith.constant 0 : index
    %c0_7 = arith.constant 0 : index
    %8 = vector.load %arg8[%c0_6, %c0_7] : memref<128x128xf32, #tpu.memory_space<vmem>>, vector<128x128xf32>
    tpu.vector_store %arg8[%c0_6, %c0_7], %7 {strides = array<i32>} : memref<128x128xf32, #tpu.memory_space<vmem>>, vector<128x128xf32>,
    %c0_i32_8 = arith.constant 0 : i32
    %9 = arith.cmpi eq, %arg2, %c0_i32_8 : i32
    %10 = arith.extui %9 : i1 to i32
    %c0_i32_9 = arith.constant 0 : i32
    %11 = arith.cmpi ne, %10, %c0_i32_9 : i32
    scf.if %11 {
      %c0_10 = arith.constant 0 : index
      %c0_11 = arith.constant 0 : index
      %12 = vector.load %arg8[%c0_10, %c0_11] : memref<128x128xf32, #tpu.memory_space<vmem>>, vector<128x128xf32>
      %c0_12 = arith.constant 0 : index
      %c0_13 = arith.constant 0 : index
      %13 = vector.load %arg5[%c0_12, %c0_13] : memref<1x128xf32, #tpu.memory_space<vmem>>, vector<1x128xf32>
      %14 = vector.broadcast %13 : vector<1x128xf32> to vector<128x128xf32>
      %15 = arith.mulf %12, %14 : vector<128x128xf32>
      %c0_14 = arith.constant 0 : index
      %c0_15 = arith.constant 0 : index
      %16 = vector.load %arg6[%c0_14, %c0_15] : memref<1x128xf32, #tpu.memory_space<vmem>>, vector<1x128xf32>
      %17 = vector.broadcast %16 : vector<1x128xf32> to vector<128x128xf32>
      %18 = arith.addf %15, %17 : vector<128x128xf32>
      %cst_16 = arith.constant 0.000000e+00 : f32
      %19 = vector.broadcast %cst_16 : f32 to vector<128x128xf32>
      %20 = arith.maximumf %18, %19 : vector<128x128xf32>
      %21 = arith.truncf %20 : vector<128x128xf32> to vector<128x128xbf16>
      %c0_17 = arith.constant 0 : index
      %c0_18 = arith.constant 0 : index
      %22 = vector.load %arg7[%c0_17, %c0_18] : memref<128x128xbf16, #tpu.memory_space<vmem>>, vector<128x128xbf16>
      tpu.vector_store %arg7[%c0_17, %c0_18], %21 {strides = array<i32>} : memref<128x128xbf16, #tpu.memory_space<vmem>>, vector<128x128xbf16>,
    } else {
    }
    return
  }
  func.func @transform_0(%arg0: i32, %arg1: i32, %arg2: i32) -> (i32, i32) {
    %c0_i32 = arith.constant 0 : i32
    return %arg0, %arg2 : i32, i32
  }
  func.func @transform_1(%arg0: i32, %arg1: i32, %arg2: i32) -> (i32, i32) {
    %c0_i32 = arith.constant 0 : i32
    return %arg2, %arg1 : i32, i32
  }
  func.func @transform_2(%arg0: i32, %arg1: i32, %arg2: i32) -> (i32, i32) {
    %c0_i32 = arith.constant 0 : i32
    %c0_i32_0 = arith.constant 0 : i32
    return %c0_i32, %arg1 : i32, i32
  }
  func.func @transform_3(%arg0: i32, %arg1: i32, %arg2: i32) -> (i32, i32) {
    %c0_i32 = arith.constant 0 : i32
    %c0_i32_0 = arith.constant 0 : i32
    return %c0_i32, %arg1 : i32, i32
  }
  func.func @transform_4(%arg0: i32, %arg1: i32, %arg2: i32) -> (i32, i32) {
    %c0_i32 = arith.constant 0 : i32
    return %arg0, %arg1 : i32, i32
  }
}

module attributes {stable_mosaic.version = 11 : i64} {
  func.func @kernel(%arg0: i32, %arg1: i32, %arg2: i32, %arg3: memref<32x128xbf16, #tpu.memory_space<vmem>>, %arg4: memref<128x128xbf16, #tpu.memory_space<vmem>>, %arg5: memref<1x128xf32, #tpu.memory_space<vmem>>, %arg6: memref<1x128xf32, #tpu.memory_space<vmem>>, %arg7: memref<32x128xbf16, #tpu.memory_space<vmem>>, %arg8: memref<32x128xf32, #tpu.memory_space<vmem>>) attributes {dimension_semantics = [#tpu.dimension_semantics<parallel>, #tpu.dimension_semantics<parallel>, #tpu.dimension_semantics<arbitrary>], iteration_bounds = array<i64: 1, 1, 1>, scalar_prefetch = 0 : i64, scratch_operands = 1 : i64, tpu.core_type = #tpu.core_type<tc>, window_params = [{transform_indices = @transform_0, window_bounds = array<i64: 32, 128>}, {transform_indices = @transform_1, window_bounds = array<i64: 128, 128>}, {transform_indices = @transform_2, window_bounds = array<i64: 1, 128>}, {transform_indices = @transform_3, window_bounds = array<i64: 1, 128>}, {transform_indices = @transform_4, window_bounds = array<i64: 32, 128>}]} {
    %c0_i32 = arith.constant 0 : i32
    %0 = arith.cmpi eq, %arg2, %c0_i32 : i32
    %1 = arith.extui %0 : i1 to i32
    %c0_i32_0 = arith.constant 0 : i32
    %2 = arith.cmpi ne, %1, %c0_i32_0 : i32
    scf.if %2 {
      %cst_10 = arith.constant 0.000000e+00 : f32
      %12 = vector.broadcast %cst_10 : f32 to vector<32x128xf32>
      %c0_11 = arith.constant 0 : index
      %c0_12 = arith.constant 0 : index
      %13 = vector.load %arg8[%c0_11, %c0_12] : memref<32x128xf32, #tpu.memory_space<vmem>>, vector<32x128xf32>
      tpu.vector_store %arg8[%c0_11, %c0_12], %12 {strides = array<i32>} : memref<32x128xf32, #tpu.memory_space<vmem>>, vector<32x128xf32>,
    } else {
    }
    %c0 = arith.constant 0 : index
    %c0_1 = arith.constant 0 : index
    %3 = vector.load %arg8[%c0, %c0_1] : memref<32x128xf32, #tpu.memory_space<vmem>>, vector<32x128xf32>
    %c0_2 = arith.constant 0 : index
    %c0_3 = arith.constant 0 : index
    %4 = vector.load %arg3[%c0_2, %c0_3] : memref<32x128xbf16, #tpu.memory_space<vmem>>, vector<32x128xbf16>
    %c0_4 = arith.constant 0 : index
    %c0_5 = arith.constant 0 : index
    %5 = vector.load %arg4[%c0_4, %c0_5] : memref<128x128xbf16, #tpu.memory_space<vmem>>, vector<128x128xbf16>
    %cst = arith.constant dense<0.000000e+00> : vector<32x128xf32>
    %6 = tpu.matmul %4, %5, %cst {dimension_numbers = #tpu.dot_dimension_numbers<[1], [0], [0], [1], [0, 0, 1, 1], [], []>} : vector<32x128xbf16>, vector<128x128xbf16>, vector<32x128xf32> -> vector<32x128xf32>
    %7 = arith.addf %3, %6 : vector<32x128xf32>
    %c0_6 = arith.constant 0 : index
    %c0_7 = arith.constant 0 : index
    %8 = vector.load %arg8[%c0_6, %c0_7] : memref<32x128xf32, #tpu.memory_space<vmem>>, vector<32x128xf32>
    tpu.vector_store %arg8[%c0_6, %c0_7], %7 {strides = array<i32>} : memref<32x128xf32, #tpu.memory_space<vmem>>, vector<32x128xf32>,
    %c0_i32_8 = arith.constant 0 : i32
    %9 = arith.cmpi eq, %arg2, %c0_i32_8 : i32
    %10 = arith.extui %9 : i1 to i32
    %c0_i32_9 = arith.constant 0 : i32
    %11 = arith.cmpi ne, %10, %c0_i32_9 : i32
    scf.if %11 {
      %c0_10 = arith.constant 0 : index
      %c0_11 = arith.constant 0 : index
      %12 = vector.load %arg8[%c0_10, %c0_11] : memref<32x128xf32, #tpu.memory_space<vmem>>, vector<32x128xf32>
      %c0_12 = arith.constant 0 : index
      %c0_13 = arith.constant 0 : index
      %13 = vector.load %arg5[%c0_12, %c0_13] : memref<1x128xf32, #tpu.memory_space<vmem>>, vector<1x128xf32>
      %14 = vector.broadcast %13 : vector<1x128xf32> to vector<32x128xf32>
      %15 = arith.mulf %12, %14 : vector<32x128xf32>
      %c0_14 = arith.constant 0 : index
      %c0_15 = arith.constant 0 : index
      %16 = vector.load %arg6[%c0_14, %c0_15] : memref<1x128xf32, #tpu.memory_space<vmem>>, vector<1x128xf32>
      %17 = vector.broadcast %16 : vector<1x128xf32> to vector<32x128xf32>
      %18 = arith.addf %15, %17 : vector<32x128xf32>
      %19 = arith.truncf %18 : vector<32x128xf32> to vector<32x128xbf16>
      %c0_16 = arith.constant 0 : index
      %c0_17 = arith.constant 0 : index
      %20 = vector.load %arg7[%c0_16, %c0_17] : memref<32x128xbf16, #tpu.memory_space<vmem>>, vector<32x128xbf16>
      tpu.vector_store %arg7[%c0_16, %c0_17], %19 {strides = array<i32>} : memref<32x128xbf16, #tpu.memory_space<vmem>>, vector<32x128xbf16>,
    } else {
    }
    return
  }
  func.func @transform_0(%arg0: i32, %arg1: i32, %arg2: i32) -> (i32, i32) {
    %c0_i32 = arith.constant 0 : i32
    return %arg0, %arg2 : i32, i32
  }
  func.func @transform_1(%arg0: i32, %arg1: i32, %arg2: i32) -> (i32, i32) {
    %c0_i32 = arith.constant 0 : i32
    return %arg2, %arg1 : i32, i32
  }
  func.func @transform_2(%arg0: i32, %arg1: i32, %arg2: i32) -> (i32, i32) {
    %c0_i32 = arith.constant 0 : i32
    %c0_i32_0 = arith.constant 0 : i32
    return %c0_i32, %arg1 : i32, i32
  }
  func.func @transform_3(%arg0: i32, %arg1: i32, %arg2: i32) -> (i32, i32) {
    %c0_i32 = arith.constant 0 : i32
    %c0_i32_0 = arith.constant 0 : i32
    return %c0_i32, %arg1 : i32, i32
  }
  func.func @transform_4(%arg0: i32, %arg1: i32, %arg2: i32) -> (i32, i32) {
    %c0_i32 = arith.constant 0 : i32
    return %arg0, %arg1 : i32, i32
  }
}

module attributes {stable_mosaic.version = 11 : i64} {
  func.func @kernel(%arg0: i32, %arg1: i32, %arg2: i32, %arg3: memref<32x128xbf16, #tpu.memory_space<vmem>>, %arg4: memref<128x128xbf16, #tpu.memory_space<vmem>>, %arg5: memref<1x128xf32, #tpu.memory_space<vmem>>, %arg6: memref<1x128xf32, #tpu.memory_space<vmem>>, %arg7: memref<32x128xbf16, #tpu.memory_space<vmem>>, %arg8: memref<32x128xbf16, #tpu.memory_space<vmem>>, %arg9: memref<32x128xf32, #tpu.memory_space<vmem>>) attributes {dimension_semantics = [#tpu.dimension_semantics<parallel>, #tpu.dimension_semantics<parallel>, #tpu.dimension_semantics<arbitrary>], iteration_bounds = array<i64: 1, 1, 1>, scalar_prefetch = 0 : i64, scratch_operands = 1 : i64, tpu.core_type = #tpu.core_type<tc>, window_params = [{transform_indices = @transform_0, window_bounds = array<i64: 32, 128>}, {transform_indices = @transform_1, window_bounds = array<i64: 128, 128>}, {transform_indices = @transform_2, window_bounds = array<i64: 1, 128>}, {transform_indices = @transform_3, window_bounds = array<i64: 1, 128>}, {transform_indices = @transform_4, window_bounds = array<i64: 32, 128>}, {transform_indices = @transform_5, window_bounds = array<i64: 32, 128>}]} {
    %c0_i32 = arith.constant 0 : i32
    %0 = arith.cmpi eq, %arg2, %c0_i32 : i32
    %1 = arith.extui %0 : i1 to i32
    %c0_i32_0 = arith.constant 0 : i32
    %2 = arith.cmpi ne, %1, %c0_i32_0 : i32
    scf.if %2 {
      %cst_10 = arith.constant 0.000000e+00 : f32
      %12 = vector.broadcast %cst_10 : f32 to vector<32x128xf32>
      %c0_11 = arith.constant 0 : index
      %c0_12 = arith.constant 0 : index
      %13 = vector.load %arg9[%c0_11, %c0_12] : memref<32x128xf32, #tpu.memory_space<vmem>>, vector<32x128xf32>
      tpu.vector_store %arg9[%c0_11, %c0_12], %12 {strides = array<i32>} : memref<32x128xf32, #tpu.memory_space<vmem>>, vector<32x128xf32>,
    } else {
    }
    %c0 = arith.constant 0 : index
    %c0_1 = arith.constant 0 : index
    %3 = vector.load %arg9[%c0, %c0_1] : memref<32x128xf32, #tpu.memory_space<vmem>>, vector<32x128xf32>
    %c0_2 = arith.constant 0 : index
    %c0_3 = arith.constant 0 : index
    %4 = vector.load %arg3[%c0_2, %c0_3] : memref<32x128xbf16, #tpu.memory_space<vmem>>, vector<32x128xbf16>
    %c0_4 = arith.constant 0 : index
    %c0_5 = arith.constant 0 : index
    %5 = vector.load %arg4[%c0_4, %c0_5] : memref<128x128xbf16, #tpu.memory_space<vmem>>, vector<128x128xbf16>
    %cst = arith.constant dense<0.000000e+00> : vector<32x128xf32>
    %6 = tpu.matmul %4, %5, %cst {dimension_numbers = #tpu.dot_dimension_numbers<[1], [0], [0], [1], [0, 0, 1, 1], [], []>} : vector<32x128xbf16>, vector<128x128xbf16>, vector<32x128xf32> -> vector<32x128xf32>
    %7 = arith.addf %3, %6 : vector<32x128xf32>
    %c0_6 = arith.constant 0 : index
    %c0_7 = arith.constant 0 : index
    %8 = vector.load %arg9[%c0_6, %c0_7] : memref<32x128xf32, #tpu.memory_space<vmem>>, vector<32x128xf32>
    tpu.vector_store %arg9[%c0_6, %c0_7], %7 {strides = array<i32>} : memref<32x128xf32, #tpu.memory_space<vmem>>, vector<32x128xf32>,
    %c0_i32_8 = arith.constant 0 : i32
    %9 = arith.cmpi eq, %arg2, %c0_i32_8 : i32
    %10 = arith.extui %9 : i1 to i32
    %c0_i32_9 = arith.constant 0 : i32
    %11 = arith.cmpi ne, %10, %c0_i32_9 : i32
    scf.if %11 {
      %c0_10 = arith.constant 0 : index
      %c0_11 = arith.constant 0 : index
      %12 = vector.load %arg9[%c0_10, %c0_11] : memref<32x128xf32, #tpu.memory_space<vmem>>, vector<32x128xf32>
      %c0_12 = arith.constant 0 : index
      %c0_13 = arith.constant 0 : index
      %13 = vector.load %arg5[%c0_12, %c0_13] : memref<1x128xf32, #tpu.memory_space<vmem>>, vector<1x128xf32>
      %14 = vector.broadcast %13 : vector<1x128xf32> to vector<32x128xf32>
      %15 = arith.mulf %12, %14 : vector<32x128xf32>
      %c0_14 = arith.constant 0 : index
      %c0_15 = arith.constant 0 : index
      %16 = vector.load %arg6[%c0_14, %c0_15] : memref<1x128xf32, #tpu.memory_space<vmem>>, vector<1x128xf32>
      %17 = vector.broadcast %16 : vector<1x128xf32> to vector<32x128xf32>
      %18 = arith.addf %15, %17 : vector<32x128xf32>
      %c0_16 = arith.constant 0 : index
      %c0_17 = arith.constant 0 : index
      %19 = vector.load %arg7[%c0_16, %c0_17] : memref<32x128xbf16, #tpu.memory_space<vmem>>, vector<32x128xbf16>
      %20 = arith.extf %19 : vector<32x128xbf16> to vector<32x128xf32>
      %21 = arith.addf %18, %20 : vector<32x128xf32>
      %cst_18 = arith.constant 0.000000e+00 : f32
      %22 = vector.broadcast %cst_18 : f32 to vector<32x128xf32>
      %23 = arith.maximumf %21, %22 : vector<32x128xf32>
      %24 = arith.truncf %23 : vector<32x128xf32> to vector<32x128xbf16>
      %c0_19 = arith.constant 0 : index
      %c0_20 = arith.constant 0 : index
      %25 = vector.load %arg8[%c0_19, %c0_20] : memref<32x128xbf16, #tpu.memory_space<vmem>>, vector<32x128xbf16>
      tpu.vector_store %arg8[%c0_19, %c0_20], %24 {strides = array<i32>} : memref<32x128xbf16, #tpu.memory_space<vmem>>, vector<32x128xbf16>,
    } else {
    }
    return
  }
  func.func @transform_0(%arg0: i32, %arg1: i32, %arg2: i32) -> (i32, i32) {
    %c0_i32 = arith.constant 0 : i32
    return %arg0, %arg2 : i32, i32
  }
  func.func @transform_1(%arg0: i32, %arg1: i32, %arg2: i32) -> (i32, i32) {
    %c0_i32 = arith.constant 0 : i32
    return %arg2, %arg1 : i32, i32
  }
  func.func @transform_2(%arg0: i32, %arg1: i32, %arg2: i32) -> (i32, i32) {
    %c0_i32 = arith.constant 0 : i32
    %c0_i32_0 = arith.constant 0 : i32
    return %c0_i32, %arg1 : i32, i32
  }
  func.func @transform_3(%arg0: i32, %arg1: i32, %arg2: i32) -> (i32, i32) {
    %c0_i32 = arith.constant 0 : i32
    %c0_i32_0 = arith.constant 0 : i32
    return %c0_i32, %arg1 : i32, i32
  }
  func.func @transform_4(%arg0: i32, %arg1: i32, %arg2: i32) -> (i32, i32) {
    %c0_i32 = arith.constant 0 : i32
    return %arg0, %arg1 : i32, i32
  }
  func.func @transform_5(%arg0: i32, %arg1: i32, %arg2: i32) -> (i32, i32) {
    %c0_i32 = arith.constant 0 : i32
    return %arg0, %arg1 : i32, i32
  }
}

module attributes {stable_mosaic.version = 11 : i64} {
  func.func @kernel(%arg0: i32, %arg1: i32, %arg2: i32, %arg3: memref<32x128xbf16, #tpu.memory_space<vmem>>, %arg4: memref<128x128xbf16, #tpu.memory_space<vmem>>, %arg5: memref<1x128xf32, #tpu.memory_space<vmem>>, %arg6: memref<1x128xf32, #tpu.memory_space<vmem>>, %arg7: memref<32x128xbf16, #tpu.memory_space<vmem>>, %arg8: memref<32x128xf32, #tpu.memory_space<vmem>>) attributes {dimension_semantics = [#tpu.dimension_semantics<parallel>, #tpu.dimension_semantics<parallel>, #tpu.dimension_semantics<arbitrary>], iteration_bounds = array<i64: 1, 1, 1>, scalar_prefetch = 0 : i64, scratch_operands = 1 : i64, tpu.core_type = #tpu.core_type<tc>, window_params = [{transform_indices = @transform_0, window_bounds = array<i64: 32, 128>}, {transform_indices = @transform_1, window_bounds = array<i64: 128, 128>}, {transform_indices = @transform_2, window_bounds = array<i64: 1, 128>}, {transform_indices = @transform_3, window_bounds = array<i64: 1, 128>}, {transform_indices = @transform_4, window_bounds = array<i64: 32, 128>}]} {
    %c0_i32 = arith.constant 0 : i32
    %0 = arith.cmpi eq, %arg2, %c0_i32 : i32
    %1 = arith.extui %0 : i1 to i32
    %c0_i32_0 = arith.constant 0 : i32
    %2 = arith.cmpi ne, %1, %c0_i32_0 : i32
    scf.if %2 {
      %cst_10 = arith.constant 0.000000e+00 : f32
      %12 = vector.broadcast %cst_10 : f32 to vector<32x128xf32>
      %c0_11 = arith.constant 0 : index
      %c0_12 = arith.constant 0 : index
      %13 = vector.load %arg8[%c0_11, %c0_12] : memref<32x128xf32, #tpu.memory_space<vmem>>, vector<32x128xf32>
      tpu.vector_store %arg8[%c0_11, %c0_12], %12 {strides = array<i32>} : memref<32x128xf32, #tpu.memory_space<vmem>>, vector<32x128xf32>,
    } else {
    }
    %c0 = arith.constant 0 : index
    %c0_1 = arith.constant 0 : index
    %3 = vector.load %arg8[%c0, %c0_1] : memref<32x128xf32, #tpu.memory_space<vmem>>, vector<32x128xf32>
    %c0_2 = arith.constant 0 : index
    %c0_3 = arith.constant 0 : index
    %4 = vector.load %arg3[%c0_2, %c0_3] : memref<32x128xbf16, #tpu.memory_space<vmem>>, vector<32x128xbf16>
    %c0_4 = arith.constant 0 : index
    %c0_5 = arith.constant 0 : index
    %5 = vector.load %arg4[%c0_4, %c0_5] : memref<128x128xbf16, #tpu.memory_space<vmem>>, vector<128x128xbf16>
    %cst = arith.constant dense<0.000000e+00> : vector<32x128xf32>
    %6 = tpu.matmul %4, %5, %cst {dimension_numbers = #tpu.dot_dimension_numbers<[1], [0], [0], [1], [0, 0, 1, 1], [], []>} : vector<32x128xbf16>, vector<128x128xbf16>, vector<32x128xf32> -> vector<32x128xf32>
    %7 = arith.addf %3, %6 : vector<32x128xf32>
    %c0_6 = arith.constant 0 : index
    %c0_7 = arith.constant 0 : index
    %8 = vector.load %arg8[%c0_6, %c0_7] : memref<32x128xf32, #tpu.memory_space<vmem>>, vector<32x128xf32>
    tpu.vector_store %arg8[%c0_6, %c0_7], %7 {strides = array<i32>} : memref<32x128xf32, #tpu.memory_space<vmem>>, vector<32x128xf32>,
    %c0_i32_8 = arith.constant 0 : i32
    %9 = arith.cmpi eq, %arg2, %c0_i32_8 : i32
    %10 = arith.extui %9 : i1 to i32
    %c0_i32_9 = arith.constant 0 : i32
    %11 = arith.cmpi ne, %10, %c0_i32_9 : i32
    scf.if %11 {
      %c0_10 = arith.constant 0 : index
      %c0_11 = arith.constant 0 : index
      %12 = vector.load %arg8[%c0_10, %c0_11] : memref<32x128xf32, #tpu.memory_space<vmem>>, vector<32x128xf32>
      %c0_12 = arith.constant 0 : index
      %c0_13 = arith.constant 0 : index
      %13 = vector.load %arg5[%c0_12, %c0_13] : memref<1x128xf32, #tpu.memory_space<vmem>>, vector<1x128xf32>
      %14 = vector.broadcast %13 : vector<1x128xf32> to vector<32x128xf32>
      %15 = arith.mulf %12, %14 : vector<32x128xf32>
      %c0_14 = arith.constant 0 : index
      %c0_15 = arith.constant 0 : index
      %16 = vector.load %arg6[%c0_14, %c0_15] : memref<1x128xf32, #tpu.memory_space<vmem>>, vector<1x128xf32>
      %17 = vector.broadcast %16 : vector<1x128xf32> to vector<32x128xf32>
      %18 = arith.addf %15, %17 : vector<32x128xf32>
      %cst_16 = arith.constant 0.000000e+00 : f32
      %19 = vector.broadcast %cst_16 : f32 to vector<32x128xf32>
      %20 = arith.maximumf %18, %19 : vector<32x128xf32>
      %21 = arith.truncf %20 : vector<32x128xf32> to vector<32x128xbf16>
      %c0_17 = arith.constant 0 : index
      %c0_18 = arith.constant 0 : index
      %22 = vector.load %arg7[%c0_17, %c0_18] : memref<32x128xbf16, #tpu.memory_space<vmem>>, vector<32x128xbf16>
      tpu.vector_store %arg7[%c0_17, %c0_18], %21 {strides = array<i32>} : memref<32x128xbf16, #tpu.memory_space<vmem>>, vector<32x128xbf16>,
    } else {
    }
    return
  }
  func.func @transform_0(%arg0: i32, %arg1: i32, %arg2: i32) -> (i32, i32) {
    %c0_i32 = arith.constant 0 : i32
    return %arg0, %arg2 : i32, i32
  }
  func.func @transform_1(%arg0: i32, %arg1: i32, %arg2: i32) -> (i32, i32) {
    %c0_i32 = arith.constant 0 : i32
    return %arg2, %arg1 : i32, i32
  }
  func.func @transform_2(%arg0: i32, %arg1: i32, %arg2: i32) -> (i32, i32) {
    %c0_i32 = arith.constant 0 : i32
    %c0_i32_0 = arith.constant 0 : i32
    return %c0_i32, %arg1 : i32, i32
  }
  func.func @transform_3(%arg0: i32, %arg1: i32, %arg2: i32) -> (i32, i32) {
    %c0_i32 = arith.constant 0 : i32
    %c0_i32_0 = arith.constant 0 : i32
    return %c0_i32, %arg1 : i32, i32
  }
  func.func @transform_4(%arg0: i32, %arg1: i32, %arg2: i32) -> (i32, i32) {
    %c0_i32 = arith.constant 0 : i32
    return %arg0, %arg1 : i32, i32
  }
}

module attributes {stable_mosaic.version = 11 : i64} {
  func.func @kernel(%arg0: i32, %arg1: i32, %arg2: i32, %arg3: memref<16x128xbf16, #tpu.memory_space<vmem>>, %arg4: memref<128x128xbf16, #tpu.memory_space<vmem>>, %arg5: memref<1x128xf32, #tpu.memory_space<vmem>>, %arg6: memref<1x128xf32, #tpu.memory_space<vmem>>, %arg7: memref<16x128xbf16, #tpu.memory_space<vmem>>, %arg8: memref<16x128xbf16, #tpu.memory_space<vmem>>, %arg9: memref<16x128xf32, #tpu.memory_space<vmem>>) attributes {dimension_semantics = [#tpu.dimension_semantics<parallel>, #tpu.dimension_semantics<parallel>, #tpu.dimension_semantics<arbitrary>], iteration_bounds = array<i64: 1, 1, 1>, scalar_prefetch = 0 : i64, scratch_operands = 1 : i64, tpu.core_type = #tpu.core_type<tc>, window_params = [{transform_indices = @transform_0, window_bounds = array<i64: 16, 128>}, {transform_indices = @transform_1, window_bounds = array<i64: 128, 128>}, {transform_indices = @transform_2, window_bounds = array<i64: 1, 128>}, {transform_indices = @transform_3, window_bounds = array<i64: 1, 128>}, {transform_indices = @transform_4, window_bounds = array<i64: 16, 128>}, {transform_indices = @transform_5, window_bounds = array<i64: 16, 128>}]} {
    %c0_i32 = arith.constant 0 : i32
    %0 = arith.cmpi eq, %arg2, %c0_i32 : i32
    %1 = arith.extui %0 : i1 to i32
    %c0_i32_0 = arith.constant 0 : i32
    %2 = arith.cmpi ne, %1, %c0_i32_0 : i32
    scf.if %2 {
      %cst_10 = arith.constant 0.000000e+00 : f32
      %12 = vector.broadcast %cst_10 : f32 to vector<16x128xf32>
      %c0_11 = arith.constant 0 : index
      %c0_12 = arith.constant 0 : index
      %13 = vector.load %arg9[%c0_11, %c0_12] : memref<16x128xf32, #tpu.memory_space<vmem>>, vector<16x128xf32>
      tpu.vector_store %arg9[%c0_11, %c0_12], %12 {strides = array<i32>} : memref<16x128xf32, #tpu.memory_space<vmem>>, vector<16x128xf32>,
    } else {
    }
    %c0 = arith.constant 0 : index
    %c0_1 = arith.constant 0 : index
    %3 = vector.load %arg9[%c0, %c0_1] : memref<16x128xf32, #tpu.memory_space<vmem>>, vector<16x128xf32>
    %c0_2 = arith.constant 0 : index
    %c0_3 = arith.constant 0 : index
    %4 = vector.load %arg3[%c0_2, %c0_3] : memref<16x128xbf16, #tpu.memory_space<vmem>>, vector<16x128xbf16>
    %c0_4 = arith.constant 0 : index
    %c0_5 = arith.constant 0 : index
    %5 = vector.load %arg4[%c0_4, %c0_5] : memref<128x128xbf16, #tpu.memory_space<vmem>>, vector<128x128xbf16>
    %cst = arith.constant dense<0.000000e+00> : vector<16x128xf32>
    %6 = tpu.matmul %4, %5, %cst {dimension_numbers = #tpu.dot_dimension_numbers<[1], [0], [0], [1], [0, 0, 1, 1], [], []>} : vector<16x128xbf16>, vector<128x128xbf16>, vector<16x128xf32> -> vector<16x128xf32>
    %7 = arith.addf %3, %6 : vector<16x128xf32>
    %c0_6 = arith.constant 0 : index
    %c0_7 = arith.constant 0 : index
    %8 = vector.load %arg9[%c0_6, %c0_7] : memref<16x128xf32, #tpu.memory_space<vmem>>, vector<16x128xf32>
    tpu.vector_store %arg9[%c0_6, %c0_7], %7 {strides = array<i32>} : memref<16x128xf32, #tpu.memory_space<vmem>>, vector<16x128xf32>,
    %c0_i32_8 = arith.constant 0 : i32
    %9 = arith.cmpi eq, %arg2, %c0_i32_8 : i32
    %10 = arith.extui %9 : i1 to i32
    %c0_i32_9 = arith.constant 0 : i32
    %11 = arith.cmpi ne, %10, %c0_i32_9 : i32
    scf.if %11 {
      %c0_10 = arith.constant 0 : index
      %c0_11 = arith.constant 0 : index
      %12 = vector.load %arg9[%c0_10, %c0_11] : memref<16x128xf32, #tpu.memory_space<vmem>>, vector<16x128xf32>
      %c0_12 = arith.constant 0 : index
      %c0_13 = arith.constant 0 : index
      %13 = vector.load %arg5[%c0_12, %c0_13] : memref<1x128xf32, #tpu.memory_space<vmem>>, vector<1x128xf32>
      %14 = vector.broadcast %13 : vector<1x128xf32> to vector<16x128xf32>
      %15 = arith.mulf %12, %14 : vector<16x128xf32>
      %c0_14 = arith.constant 0 : index
      %c0_15 = arith.constant 0 : index
      %16 = vector.load %arg6[%c0_14, %c0_15] : memref<1x128xf32, #tpu.memory_space<vmem>>, vector<1x128xf32>
      %17 = vector.broadcast %16 : vector<1x128xf32> to vector<16x128xf32>
      %18 = arith.addf %15, %17 : vector<16x128xf32>
      %c0_16 = arith.constant 0 : index
      %c0_17 = arith.constant 0 : index
      %19 = vector.load %arg7[%c0_16, %c0_17] : memref<16x128xbf16, #tpu.memory_space<vmem>>, vector<16x128xbf16>
      %20 = arith.extf %19 : vector<16x128xbf16> to vector<16x128xf32>
      %21 = arith.addf %18, %20 : vector<16x128xf32>
      %cst_18 = arith.constant 0.000000e+00 : f32
      %22 = vector.broadcast %cst_18 : f32 to vector<16x128xf32>
      %23 = arith.maximumf %21, %22 : vector<16x128xf32>
      %24 = arith.truncf %23 : vector<16x128xf32> to vector<16x128xbf16>
      %c0_19 = arith.constant 0 : index
      %c0_20 = arith.constant 0 : index
      %25 = vector.load %arg8[%c0_19, %c0_20] : memref<16x128xbf16, #tpu.memory_space<vmem>>, vector<16x128xbf16>
      tpu.vector_store %arg8[%c0_19, %c0_20], %24 {strides = array<i32>} : memref<16x128xbf16, #tpu.memory_space<vmem>>, vector<16x128xbf16>,
    } else {
    }
    return
  }
  func.func @transform_0(%arg0: i32, %arg1: i32, %arg2: i32) -> (i32, i32) {
    %c0_i32 = arith.constant 0 : i32
    return %arg0, %arg2 : i32, i32
  }
  func.func @transform_1(%arg0: i32, %arg1: i32, %arg2: i32) -> (i32, i32) {
    %c0_i32 = arith.constant 0 : i32
    return %arg2, %arg1 : i32, i32
  }
  func.func @transform_2(%arg0: i32, %arg1: i32, %arg2: i32) -> (i32, i32) {
    %c0_i32 = arith.constant 0 : i32
    %c0_i32_0 = arith.constant 0 : i32
    return %c0_i32, %arg1 : i32, i32
  }
  func.func @transform_3(%arg0: i32, %arg1: i32, %arg2: i32) -> (i32, i32) {
    %c0_i32 = arith.constant 0 : i32
    %c0_i32_0 = arith.constant 0 : i32
    return %c0_i32, %arg1 : i32, i32
  }
  func.func @transform_4(%arg0: i32, %arg1: i32, %arg2: i32) -> (i32, i32) {
    %c0_i32 = arith.constant 0 : i32
    return %arg0, %arg1 : i32, i32
  }
  func.func @transform_5(%arg0: i32, %arg1: i32, %arg2: i32) -> (i32, i32) {
    %c0_i32 = arith.constant 0 : i32
    return %arg0, %arg1 : i32, i32
  }
}

module attributes {stable_mosaic.version = 11 : i64} {
  func.func @kernel(%arg0: i32, %arg1: i32, %arg2: i32, %arg3: memref<32x384xbf16, #tpu.memory_space<vmem>>, %arg4: memref<384x128xbf16, #tpu.memory_space<vmem>>, %arg5: memref<1x128xf32, #tpu.memory_space<vmem>>, %arg6: memref<1x128xf32, #tpu.memory_space<vmem>>, %arg7: memref<32x128xbf16, #tpu.memory_space<vmem>>, %arg8: memref<32x128xf32, #tpu.memory_space<vmem>>) attributes {dimension_semantics = [#tpu.dimension_semantics<parallel>, #tpu.dimension_semantics<parallel>, #tpu.dimension_semantics<arbitrary>], iteration_bounds = array<i64: 1, 1, 1>, scalar_prefetch = 0 : i64, scratch_operands = 1 : i64, tpu.core_type = #tpu.core_type<tc>, window_params = [{transform_indices = @transform_0, window_bounds = array<i64: 32, 384>}, {transform_indices = @transform_1, window_bounds = array<i64: 384, 128>}, {transform_indices = @transform_2, window_bounds = array<i64: 1, 128>}, {transform_indices = @transform_3, window_bounds = array<i64: 1, 128>}, {transform_indices = @transform_4, window_bounds = array<i64: 32, 128>}]} {
    %c0_i32 = arith.constant 0 : i32
    %0 = arith.cmpi eq, %arg2, %c0_i32 : i32
    %1 = arith.extui %0 : i1 to i32
    %c0_i32_0 = arith.constant 0 : i32
    %2 = arith.cmpi ne, %1, %c0_i32_0 : i32
    scf.if %2 {
      %cst_10 = arith.constant 0.000000e+00 : f32
      %12 = vector.broadcast %cst_10 : f32 to vector<32x128xf32>
      %c0_11 = arith.constant 0 : index
      %c0_12 = arith.constant 0 : index
      %13 = vector.load %arg8[%c0_11, %c0_12] : memref<32x128xf32, #tpu.memory_space<vmem>>, vector<32x128xf32>
      tpu.vector_store %arg8[%c0_11, %c0_12], %12 {strides = array<i32>} : memref<32x128xf32, #tpu.memory_space<vmem>>, vector<32x128xf32>,
    } else {
    }
    %c0 = arith.constant 0 : index
    %c0_1 = arith.constant 0 : index
    %3 = vector.load %arg8[%c0, %c0_1] : memref<32x128xf32, #tpu.memory_space<vmem>>, vector<32x128xf32>
    %c0_2 = arith.constant 0 : index
    %c0_3 = arith.constant 0 : index
    %4 = vector.load %arg3[%c0_2, %c0_3] : memref<32x384xbf16, #tpu.memory_space<vmem>>, vector<32x384xbf16>
    %c0_4 = arith.constant 0 : index
    %c0_5 = arith.constant 0 : index
    %5 = vector.load %arg4[%c0_4, %c0_5] : memref<384x128xbf16, #tpu.memory_space<vmem>>, vector<384x128xbf16>
    %cst = arith.constant dense<0.000000e+00> : vector<32x128xf32>
    %6 = tpu.matmul %4, %5, %cst {dimension_numbers = #tpu.dot_dimension_numbers<[1], [0], [0], [1], [0, 0, 1, 1], [], []>} : vector<32x384xbf16>, vector<384x128xbf16>, vector<32x128xf32> -> vector<32x128xf32>
    %7 = arith.addf %3, %6 : vector<32x128xf32>
    %c0_6 = arith.constant 0 : index
    %c0_7 = arith.constant 0 : index
    %8 = vector.load %arg8[%c0_6, %c0_7] : memref<32x128xf32, #tpu.memory_space<vmem>>, vector<32x128xf32>
    tpu.vector_store %arg8[%c0_6, %c0_7], %7 {strides = array<i32>} : memref<32x128xf32, #tpu.memory_space<vmem>>, vector<32x128xf32>,
    %c0_i32_8 = arith.constant 0 : i32
    %9 = arith.cmpi eq, %arg2, %c0_i32_8 : i32
    %10 = arith.extui %9 : i1 to i32
    %c0_i32_9 = arith.constant 0 : i32
    %11 = arith.cmpi ne, %10, %c0_i32_9 : i32
    scf.if %11 {
      %c0_10 = arith.constant 0 : index
      %c0_11 = arith.constant 0 : index
      %12 = vector.load %arg8[%c0_10, %c0_11] : memref<32x128xf32, #tpu.memory_space<vmem>>, vector<32x128xf32>
      %c0_12 = arith.constant 0 : index
      %c0_13 = arith.constant 0 : index
      %13 = vector.load %arg5[%c0_12, %c0_13] : memref<1x128xf32, #tpu.memory_space<vmem>>, vector<1x128xf32>
      %14 = vector.broadcast %13 : vector<1x128xf32> to vector<32x128xf32>
      %15 = arith.mulf %12, %14 : vector<32x128xf32>
      %c0_14 = arith.constant 0 : index
      %c0_15 = arith.constant 0 : index
      %16 = vector.load %arg6[%c0_14, %c0_15] : memref<1x128xf32, #tpu.memory_space<vmem>>, vector<1x128xf32>
      %17 = vector.broadcast %16 : vector<1x128xf32> to vector<32x128xf32>
      %18 = arith.addf %15, %17 : vector<32x128xf32>
      %cst_16 = arith.constant 0.000000e+00 : f32
      %19 = vector.broadcast %cst_16 : f32 to vector<32x128xf32>
      %20 = arith.maximumf %18, %19 : vector<32x128xf32>
      %21 = arith.truncf %20 : vector<32x128xf32> to vector<32x128xbf16>
      %c0_17 = arith.constant 0 : index
      %c0_18 = arith.constant 0 : index
      %22 = vector.load %arg7[%c0_17, %c0_18] : memref<32x128xbf16, #tpu.memory_space<vmem>>, vector<32x128xbf16>
      tpu.vector_store %arg7[%c0_17, %c0_18], %21 {strides = array<i32>} : memref<32x128xbf16, #tpu.memory_space<vmem>>, vector<32x128xbf16>,
    } else {
    }
    return
  }
  func.func @transform_0(%arg0: i32, %arg1: i32, %arg2: i32) -> (i32, i32) {
    %c0_i32 = arith.constant 0 : i32
    return %arg0, %arg2 : i32, i32
  }
  func.func @transform_1(%arg0: i32, %arg1: i32, %arg2: i32) -> (i32, i32) {
    %c0_i32 = arith.constant 0 : i32
    return %arg2, %arg1 : i32, i32
  }
  func.func @transform_2(%arg0: i32, %arg1: i32, %arg2: i32) -> (i32, i32) {
    %c0_i32 = arith.constant 0 : i32
    %c0_i32_0 = arith.constant 0 : i32
    return %c0_i32, %arg1 : i32, i32
  }
  func.func @transform_3(%arg0: i32, %arg1: i32, %arg2: i32) -> (i32, i32) {
    %c0_i32 = arith.constant 0 : i32
    %c0_i32_0 = arith.constant 0 : i32
    return %c0_i32, %arg1 : i32, i32
  }
  func.func @transform_4(%arg0: i32, %arg1: i32, %arg2: i32) -> (i32, i32) {
    %c0_i32 = arith.constant 0 : i32
    return %arg0, %arg1 : i32, i32
  }
}

module attributes {stable_mosaic.version = 11 : i64} {
  func.func @kernel(%arg0: i32, %arg1: i32, %arg2: i32, %arg3: memref<16x128xbf16, #tpu.memory_space<vmem>>, %arg4: memref<128x128xbf16, #tpu.memory_space<vmem>>, %arg5: memref<1x128xf32, #tpu.memory_space<vmem>>, %arg6: memref<1x128xf32, #tpu.memory_space<vmem>>, %arg7: memref<16x128xbf16, #tpu.memory_space<vmem>>, %arg8: memref<16x128xf32, #tpu.memory_space<vmem>>) attributes {dimension_semantics = [#tpu.dimension_semantics<parallel>, #tpu.dimension_semantics<parallel>, #tpu.dimension_semantics<arbitrary>], iteration_bounds = array<i64: 1, 1, 1>, scalar_prefetch = 0 : i64, scratch_operands = 1 : i64, tpu.core_type = #tpu.core_type<tc>, window_params = [{transform_indices = @transform_0, window_bounds = array<i64: 16, 128>}, {transform_indices = @transform_1, window_bounds = array<i64: 128, 128>}, {transform_indices = @transform_2, window_bounds = array<i64: 1, 128>}, {transform_indices = @transform_3, window_bounds = array<i64: 1, 128>}, {transform_indices = @transform_4, window_bounds = array<i64: 16, 128>}]} {
    %c0_i32 = arith.constant 0 : i32
    %0 = arith.cmpi eq, %arg2, %c0_i32 : i32
    %1 = arith.extui %0 : i1 to i32
    %c0_i32_0 = arith.constant 0 : i32
    %2 = arith.cmpi ne, %1, %c0_i32_0 : i32
    scf.if %2 {
      %cst_10 = arith.constant 0.000000e+00 : f32
      %12 = vector.broadcast %cst_10 : f32 to vector<16x128xf32>
      %c0_11 = arith.constant 0 : index
      %c0_12 = arith.constant 0 : index
      %13 = vector.load %arg8[%c0_11, %c0_12] : memref<16x128xf32, #tpu.memory_space<vmem>>, vector<16x128xf32>
      tpu.vector_store %arg8[%c0_11, %c0_12], %12 {strides = array<i32>} : memref<16x128xf32, #tpu.memory_space<vmem>>, vector<16x128xf32>,
    } else {
    }
    %c0 = arith.constant 0 : index
    %c0_1 = arith.constant 0 : index
    %3 = vector.load %arg8[%c0, %c0_1] : memref<16x128xf32, #tpu.memory_space<vmem>>, vector<16x128xf32>
    %c0_2 = arith.constant 0 : index
    %c0_3 = arith.constant 0 : index
    %4 = vector.load %arg3[%c0_2, %c0_3] : memref<16x128xbf16, #tpu.memory_space<vmem>>, vector<16x128xbf16>
    %c0_4 = arith.constant 0 : index
    %c0_5 = arith.constant 0 : index
    %5 = vector.load %arg4[%c0_4, %c0_5] : memref<128x128xbf16, #tpu.memory_space<vmem>>, vector<128x128xbf16>
    %cst = arith.constant dense<0.000000e+00> : vector<16x128xf32>
    %6 = tpu.matmul %4, %5, %cst {dimension_numbers = #tpu.dot_dimension_numbers<[1], [0], [0], [1], [0, 0, 1, 1], [], []>} : vector<16x128xbf16>, vector<128x128xbf16>, vector<16x128xf32> -> vector<16x128xf32>
    %7 = arith.addf %3, %6 : vector<16x128xf32>
    %c0_6 = arith.constant 0 : index
    %c0_7 = arith.constant 0 : index
    %8 = vector.load %arg8[%c0_6, %c0_7] : memref<16x128xf32, #tpu.memory_space<vmem>>, vector<16x128xf32>
    tpu.vector_store %arg8[%c0_6, %c0_7], %7 {strides = array<i32>} : memref<16x128xf32, #tpu.memory_space<vmem>>, vector<16x128xf32>,
    %c0_i32_8 = arith.constant 0 : i32
    %9 = arith.cmpi eq, %arg2, %c0_i32_8 : i32
    %10 = arith.extui %9 : i1 to i32
    %c0_i32_9 = arith.constant 0 : i32
    %11 = arith.cmpi ne, %10, %c0_i32_9 : i32
    scf.if %11 {
      %c0_10 = arith.constant 0 : index
      %c0_11 = arith.constant 0 : index
      %12 = vector.load %arg8[%c0_10, %c0_11] : memref<16x128xf32, #tpu.memory_space<vmem>>, vector<16x128xf32>
      %c0_12 = arith.constant 0 : index
      %c0_13 = arith.constant 0 : index
      %13 = vector.load %arg5[%c0_12, %c0_13] : memref<1x128xf32, #tpu.memory_space<vmem>>, vector<1x128xf32>
      %14 = vector.broadcast %13 : vector<1x128xf32> to vector<16x128xf32>
      %15 = arith.mulf %12, %14 : vector<16x128xf32>
      %c0_14 = arith.constant 0 : index
      %c0_15 = arith.constant 0 : index
      %16 = vector.load %arg6[%c0_14, %c0_15] : memref<1x128xf32, #tpu.memory_space<vmem>>, vector<1x128xf32>
      %17 = vector.broadcast %16 : vector<1x128xf32> to vector<16x128xf32>
      %18 = arith.addf %15, %17 : vector<16x128xf32>
      %19 = arith.truncf %18 : vector<16x128xf32> to vector<16x128xbf16>
      %c0_16 = arith.constant 0 : index
      %c0_17 = arith.constant 0 : index
      %20 = vector.load %arg7[%c0_16, %c0_17] : memref<16x128xbf16, #tpu.memory_space<vmem>>, vector<16x128xbf16>
      tpu.vector_store %arg7[%c0_16, %c0_17], %19 {strides = array<i32>} : memref<16x128xbf16, #tpu.memory_space<vmem>>, vector<16x128xbf16>,
    } else {
    }
    return
  }
  func.func @transform_0(%arg0: i32, %arg1: i32, %arg2: i32) -> (i32, i32) {
    %c0_i32 = arith.constant 0 : i32
    return %arg0, %arg2 : i32, i32
  }
  func.func @transform_1(%arg0: i32, %arg1: i32, %arg2: i32) -> (i32, i32) {
    %c0_i32 = arith.constant 0 : i32
    return %arg2, %arg1 : i32, i32
  }
  func.func @transform_2(%arg0: i32, %arg1: i32, %arg2: i32) -> (i32, i32) {
    %c0_i32 = arith.constant 0 : i32
    %c0_i32_0 = arith.constant 0 : i32
    return %c0_i32, %arg1 : i32, i32
  }
  func.func @transform_3(%arg0: i32, %arg1: i32, %arg2: i32) -> (i32, i32) {
    %c0_i32 = arith.constant 0 : i32
    %c0_i32_0 = arith.constant 0 : i32
    return %c0_i32, %arg1 : i32, i32
  }
  func.func @transform_4(%arg0: i32, %arg1: i32, %arg2: i32) -> (i32, i32) {
    %c0_i32 = arith.constant 0 : i32
    return %arg0, %arg1 : i32, i32
  }
}

module attributes {stable_mosaic.version = 11 : i64} {
  func.func @kernel(%arg0: i32, %arg1: i32, %arg2: i32, %arg3: memref<16x128xbf16, #tpu.memory_space<vmem>>, %arg4: memref<128x128xbf16, #tpu.memory_space<vmem>>, %arg5: memref<1x128xf32, #tpu.memory_space<vmem>>, %arg6: memref<1x128xf32, #tpu.memory_space<vmem>>, %arg7: memref<16x128xbf16, #tpu.memory_space<vmem>>, %arg8: memref<16x128xf32, #tpu.memory_space<vmem>>) attributes {dimension_semantics = [#tpu.dimension_semantics<parallel>, #tpu.dimension_semantics<parallel>, #tpu.dimension_semantics<arbitrary>], iteration_bounds = array<i64: 1, 1, 1>, scalar_prefetch = 0 : i64, scratch_operands = 1 : i64, tpu.core_type = #tpu.core_type<tc>, window_params = [{transform_indices = @transform_0, window_bounds = array<i64: 16, 128>}, {transform_indices = @transform_1, window_bounds = array<i64: 128, 128>}, {transform_indices = @transform_2, window_bounds = array<i64: 1, 128>}, {transform_indices = @transform_3, window_bounds = array<i64: 1, 128>}, {transform_indices = @transform_4, window_bounds = array<i64: 16, 128>}]} {
    %c0_i32 = arith.constant 0 : i32
    %0 = arith.cmpi eq, %arg2, %c0_i32 : i32
    %1 = arith.extui %0 : i1 to i32
    %c0_i32_0 = arith.constant 0 : i32
    %2 = arith.cmpi ne, %1, %c0_i32_0 : i32
    scf.if %2 {
      %cst_10 = arith.constant 0.000000e+00 : f32
      %12 = vector.broadcast %cst_10 : f32 to vector<16x128xf32>
      %c0_11 = arith.constant 0 : index
      %c0_12 = arith.constant 0 : index
      %13 = vector.load %arg8[%c0_11, %c0_12] : memref<16x128xf32, #tpu.memory_space<vmem>>, vector<16x128xf32>
      tpu.vector_store %arg8[%c0_11, %c0_12], %12 {strides = array<i32>} : memref<16x128xf32, #tpu.memory_space<vmem>>, vector<16x128xf32>,
    } else {
    }
    %c0 = arith.constant 0 : index
    %c0_1 = arith.constant 0 : index
    %3 = vector.load %arg8[%c0, %c0_1] : memref<16x128xf32, #tpu.memory_space<vmem>>, vector<16x128xf32>
    %c0_2 = arith.constant 0 : index
    %c0_3 = arith.constant 0 : index
    %4 = vector.load %arg3[%c0_2, %c0_3] : memref<16x128xbf16, #tpu.memory_space<vmem>>, vector<16x128xbf16>
    %c0_4 = arith.constant 0 : index
    %c0_5 = arith.constant 0 : index
    %5 = vector.load %arg4[%c0_4, %c0_5] : memref<128x128xbf16, #tpu.memory_space<vmem>>, vector<128x128xbf16>
    %cst = arith.constant dense<0.000000e+00> : vector<16x128xf32>
    %6 = tpu.matmul %4, %5, %cst {dimension_numbers = #tpu.dot_dimension_numbers<[1], [0], [0], [1], [0, 0, 1, 1], [], []>} : vector<16x128xbf16>, vector<128x128xbf16>, vector<16x128xf32> -> vector<16x128xf32>
    %7 = arith.addf %3, %6 : vector<16x128xf32>
    %c0_6 = arith.constant 0 : index
    %c0_7 = arith.constant 0 : index
    %8 = vector.load %arg8[%c0_6, %c0_7] : memref<16x128xf32, #tpu.memory_space<vmem>>, vector<16x128xf32>
    tpu.vector_store %arg8[%c0_6, %c0_7], %7 {strides = array<i32>} : memref<16x128xf32, #tpu.memory_space<vmem>>, vector<16x128xf32>,
    %c0_i32_8 = arith.constant 0 : i32
    %9 = arith.cmpi eq, %arg2, %c0_i32_8 : i32
    %10 = arith.extui %9 : i1 to i32
    %c0_i32_9 = arith.constant 0 : i32
    %11 = arith.cmpi ne, %10, %c0_i32_9 : i32
    scf.if %11 {
      %c0_10 = arith.constant 0 : index
      %c0_11 = arith.constant 0 : index
      %12 = vector.load %arg8[%c0_10, %c0_11] : memref<16x128xf32, #tpu.memory_space<vmem>>, vector<16x128xf32>
      %c0_12 = arith.constant 0 : index
      %c0_13 = arith.constant 0 : index
      %13 = vector.load %arg5[%c0_12, %c0_13] : memref<1x128xf32, #tpu.memory_space<vmem>>, vector<1x128xf32>
      %14 = vector.broadcast %13 : vector<1x128xf32> to vector<16x128xf32>
      %15 = arith.mulf %12, %14 : vector<16x128xf32>
      %c0_14 = arith.constant 0 : index
      %c0_15 = arith.constant 0 : index
      %16 = vector.load %arg6[%c0_14, %c0_15] : memref<1x128xf32, #tpu.memory_space<vmem>>, vector<1x128xf32>
      %17 = vector.broadcast %16 : vector<1x128xf32> to vector<16x128xf32>
      %18 = arith.addf %15, %17 : vector<16x128xf32>
      %cst_16 = arith.constant 0.000000e+00 : f32
      %19 = vector.broadcast %cst_16 : f32 to vector<16x128xf32>
      %20 = arith.maximumf %18, %19 : vector<16x128xf32>
      %21 = arith.truncf %20 : vector<16x128xf32> to vector<16x128xbf16>
      %c0_17 = arith.constant 0 : index
      %c0_18 = arith.constant 0 : index
      %22 = vector.load %arg7[%c0_17, %c0_18] : memref<16x128xbf16, #tpu.memory_space<vmem>>, vector<16x128xbf16>
      tpu.vector_store %arg7[%c0_17, %c0_18], %21 {strides = array<i32>} : memref<16x128xbf16, #tpu.memory_space<vmem>>, vector<16x128xbf16>,
    } else {
    }
    return
  }
  func.func @transform_0(%arg0: i32, %arg1: i32, %arg2: i32) -> (i32, i32) {
    %c0_i32 = arith.constant 0 : i32
    return %arg0, %arg2 : i32, i32
  }
  func.func @transform_1(%arg0: i32, %arg1: i32, %arg2: i32) -> (i32, i32) {
    %c0_i32 = arith.constant 0 : i32
    return %arg2, %arg1 : i32, i32
  }
  func.func @transform_2(%arg0: i32, %arg1: i32, %arg2: i32) -> (i32, i32) {
    %c0_i32 = arith.constant 0 : i32
    %c0_i32_0 = arith.constant 0 : i32
    return %c0_i32, %arg1 : i32, i32
  }
  func.func @transform_3(%arg0: i32, %arg1: i32, %arg2: i32) -> (i32, i32) {
    %c0_i32 = arith.constant 0 : i32
    %c0_i32_0 = arith.constant 0 : i32
    return %c0_i32, %arg1 : i32, i32
  }
  func.func @transform_4(%arg0: i32, %arg1: i32, %arg2: i32) -> (i32, i32) {
    %c0_i32 = arith.constant 0 : i32
    return %arg0, %arg1 : i32, i32
  }
}

module attributes {stable_mosaic.version = 11 : i64} {
  func.func @kernel(%arg0: i32, %arg1: i32, %arg2: i32, %arg3: memref<16x128xbf16, #tpu.memory_space<vmem>>, %arg4: memref<128x128xbf16, #tpu.memory_space<vmem>>, %arg5: memref<1x128xf32, #tpu.memory_space<vmem>>, %arg6: memref<1x128xf32, #tpu.memory_space<vmem>>, %arg7: memref<16x128xbf16, #tpu.memory_space<vmem>>, %arg8: memref<16x128xf32, #tpu.memory_space<vmem>>) attributes {dimension_semantics = [#tpu.dimension_semantics<parallel>, #tpu.dimension_semantics<parallel>, #tpu.dimension_semantics<arbitrary>], iteration_bounds = array<i64: 1, 1, 5>, scalar_prefetch = 0 : i64, scratch_operands = 1 : i64, tpu.core_type = #tpu.core_type<tc>, window_params = [{transform_indices = @transform_0, window_bounds = array<i64: 16, 128>}, {transform_indices = @transform_1, window_bounds = array<i64: 128, 128>}, {transform_indices = @transform_2, window_bounds = array<i64: 1, 128>}, {transform_indices = @transform_3, window_bounds = array<i64: 1, 128>}, {transform_indices = @transform_4, window_bounds = array<i64: 16, 128>}]} {
    %c0_i32 = arith.constant 0 : i32
    %0 = arith.cmpi eq, %arg2, %c0_i32 : i32
    %1 = arith.extui %0 : i1 to i32
    %c0_i32_0 = arith.constant 0 : i32
    %2 = arith.cmpi ne, %1, %c0_i32_0 : i32
    scf.if %2 {
      %cst_9 = arith.constant 0.000000e+00 : f32
      %12 = vector.broadcast %cst_9 : f32 to vector<16x128xf32>
      %c0_10 = arith.constant 0 : index
      %c0_11 = arith.constant 0 : index
      %13 = vector.load %arg8[%c0_10, %c0_11] : memref<16x128xf32, #tpu.memory_space<vmem>>, vector<16x128xf32>
      tpu.vector_store %arg8[%c0_10, %c0_11], %12 {strides = array<i32>} : memref<16x128xf32, #tpu.memory_space<vmem>>, vector<16x128xf32>,
    } else {
    }
    %c0 = arith.constant 0 : index
    %c0_1 = arith.constant 0 : index
    %3 = vector.load %arg8[%c0, %c0_1] : memref<16x128xf32, #tpu.memory_space<vmem>>, vector<16x128xf32>
    %c0_2 = arith.constant 0 : index
    %c0_3 = arith.constant 0 : index
    %4 = vector.load %arg3[%c0_2, %c0_3] : memref<16x128xbf16, #tpu.memory_space<vmem>>, vector<16x128xbf16>
    %c0_4 = arith.constant 0 : index
    %c0_5 = arith.constant 0 : index
    %5 = vector.load %arg4[%c0_4, %c0_5] : memref<128x128xbf16, #tpu.memory_space<vmem>>, vector<128x128xbf16>
    %cst = arith.constant dense<0.000000e+00> : vector<16x128xf32>
    %6 = tpu.matmul %4, %5, %cst {dimension_numbers = #tpu.dot_dimension_numbers<[1], [0], [0], [1], [0, 0, 1, 1], [], []>} : vector<16x128xbf16>, vector<128x128xbf16>, vector<16x128xf32> -> vector<16x128xf32>
    %7 = arith.addf %3, %6 : vector<16x128xf32>
    %c0_6 = arith.constant 0 : index
    %c0_7 = arith.constant 0 : index
    %8 = vector.load %arg8[%c0_6, %c0_7] : memref<16x128xf32, #tpu.memory_space<vmem>>, vector<16x128xf32>
    tpu.vector_store %arg8[%c0_6, %c0_7], %7 {strides = array<i32>} : memref<16x128xf32, #tpu.memory_space<vmem>>, vector<16x128xf32>,
    %c4_i32 = arith.constant 4 : i32
    %9 = arith.cmpi eq, %arg2, %c4_i32 : i32
    %10 = arith.extui %9 : i1 to i32
    %c0_i32_8 = arith.constant 0 : i32
    %11 = arith.cmpi ne, %10, %c0_i32_8 : i32
    scf.if %11 {
      %c0_9 = arith.constant 0 : index
      %c0_10 = arith.constant 0 : index
      %12 = vector.load %arg8[%c0_9, %c0_10] : memref<16x128xf32, #tpu.memory_space<vmem>>, vector<16x128xf32>
      %c0_11 = arith.constant 0 : index
      %c0_12 = arith.constant 0 : index
      %13 = vector.load %arg5[%c0_11, %c0_12] : memref<1x128xf32, #tpu.memory_space<vmem>>, vector<1x128xf32>
      %14 = vector.broadcast %13 : vector<1x128xf32> to vector<16x128xf32>
      %15 = arith.mulf %12, %14 : vector<16x128xf32>
      %c0_13 = arith.constant 0 : index
      %c0_14 = arith.constant 0 : index
      %16 = vector.load %arg6[%c0_13, %c0_14] : memref<1x128xf32, #tpu.memory_space<vmem>>, vector<1x128xf32>
      %17 = vector.broadcast %16 : vector<1x128xf32> to vector<16x128xf32>
      %18 = arith.addf %15, %17 : vector<16x128xf32>
      %cst_15 = arith.constant 0.000000e+00 : f32
      %19 = vector.broadcast %cst_15 : f32 to vector<16x128xf32>
      %20 = arith.maximumf %18, %19 : vector<16x128xf32>
      %21 = arith.truncf %20 : vector<16x128xf32> to vector<16x128xbf16>
      %c0_16 = arith.constant 0 : index
      %c0_17 = arith.constant 0 : index
      %22 = vector.load %arg7[%c0_16, %c0_17] : memref<16x128xbf16, #tpu.memory_space<vmem>>, vector<16x128xbf16>
      tpu.vector_store %arg7[%c0_16, %c0_17], %21 {strides = array<i32>} : memref<16x128xbf16, #tpu.memory_space<vmem>>, vector<16x128xbf16>,
    } else {
    }
    return
  }
  func.func @transform_0(%arg0: i32, %arg1: i32, %arg2: i32) -> (i32, i32) {
    %c0_i32 = arith.constant 0 : i32
    return %arg0, %arg2 : i32, i32
  }
  func.func @transform_1(%arg0: i32, %arg1: i32, %arg2: i32) -> (i32, i32) {
    %c0_i32 = arith.constant 0 : i32
    return %arg2, %arg1 : i32, i32
  }
  func.func @transform_2(%arg0: i32, %arg1: i32, %arg2: i32) -> (i32, i32) {
    %c0_i32 = arith.constant 0 : i32
    %c0_i32_0 = arith.constant 0 : i32
    return %c0_i32, %arg1 : i32, i32
  }
  func.func @transform_3(%arg0: i32, %arg1: i32, %arg2: i32) -> (i32, i32) {
    %c0_i32 = arith.constant 0 : i32
    %c0_i32_0 = arith.constant 0 : i32
    return %c0_i32, %arg1 : i32, i32
  }
  func.func @transform_4(%arg0: i32, %arg1: i32, %arg2: i32) -> (i32, i32) {
    %c0_i32 = arith.constant 0 : i32
    return %arg0, %arg1 : i32, i32
  }
}

module attributes {stable_mosaic.version = 11 : i64} {
  func.func @kernel(%arg0: i32, %arg1: i32, %arg2: i32, %arg3: memref<16x128xbf16, #tpu.memory_space<vmem>>, %arg4: memref<128x256xbf16, #tpu.memory_space<vmem>>, %arg5: memref<1x256xf32, #tpu.memory_space<vmem>>, %arg6: memref<1x256xf32, #tpu.memory_space<vmem>>, %arg7: memref<16x256xbf16, #tpu.memory_space<vmem>>, %arg8: memref<16x256xf32, #tpu.memory_space<vmem>>) attributes {dimension_semantics = [#tpu.dimension_semantics<parallel>, #tpu.dimension_semantics<parallel>, #tpu.dimension_semantics<arbitrary>], iteration_bounds = array<i64: 1, 1, 1>, scalar_prefetch = 0 : i64, scratch_operands = 1 : i64, tpu.core_type = #tpu.core_type<tc>, window_params = [{transform_indices = @transform_0, window_bounds = array<i64: 16, 128>}, {transform_indices = @transform_1, window_bounds = array<i64: 128, 256>}, {transform_indices = @transform_2, window_bounds = array<i64: 1, 256>}, {transform_indices = @transform_3, window_bounds = array<i64: 1, 256>}, {transform_indices = @transform_4, window_bounds = array<i64: 16, 256>}]} {
    %c0_i32 = arith.constant 0 : i32
    %0 = arith.cmpi eq, %arg2, %c0_i32 : i32
    %1 = arith.extui %0 : i1 to i32
    %c0_i32_0 = arith.constant 0 : i32
    %2 = arith.cmpi ne, %1, %c0_i32_0 : i32
    scf.if %2 {
      %cst_10 = arith.constant 0.000000e+00 : f32
      %12 = vector.broadcast %cst_10 : f32 to vector<16x256xf32>
      %c0_11 = arith.constant 0 : index
      %c0_12 = arith.constant 0 : index
      %13 = vector.load %arg8[%c0_11, %c0_12] : memref<16x256xf32, #tpu.memory_space<vmem>>, vector<16x256xf32>
      tpu.vector_store %arg8[%c0_11, %c0_12], %12 {strides = array<i32>} : memref<16x256xf32, #tpu.memory_space<vmem>>, vector<16x256xf32>,
    } else {
    }
    %c0 = arith.constant 0 : index
    %c0_1 = arith.constant 0 : index
    %3 = vector.load %arg8[%c0, %c0_1] : memref<16x256xf32, #tpu.memory_space<vmem>>, vector<16x256xf32>
    %c0_2 = arith.constant 0 : index
    %c0_3 = arith.constant 0 : index
    %4 = vector.load %arg3[%c0_2, %c0_3] : memref<16x128xbf16, #tpu.memory_space<vmem>>, vector<16x128xbf16>
    %c0_4 = arith.constant 0 : index
    %c0_5 = arith.constant 0 : index
    %5 = vector.load %arg4[%c0_4, %c0_5] : memref<128x256xbf16, #tpu.memory_space<vmem>>, vector<128x256xbf16>
    %cst = arith.constant dense<0.000000e+00> : vector<16x256xf32>
    %6 = tpu.matmul %4, %5, %cst {dimension_numbers = #tpu.dot_dimension_numbers<[1], [0], [0], [1], [0, 0, 1, 1], [], []>} : vector<16x128xbf16>, vector<128x256xbf16>, vector<16x256xf32> -> vector<16x256xf32>
    %7 = arith.addf %3, %6 : vector<16x256xf32>
    %c0_6 = arith.constant 0 : index
    %c0_7 = arith.constant 0 : index
    %8 = vector.load %arg8[%c0_6, %c0_7] : memref<16x256xf32, #tpu.memory_space<vmem>>, vector<16x256xf32>
    tpu.vector_store %arg8[%c0_6, %c0_7], %7 {strides = array<i32>} : memref<16x256xf32, #tpu.memory_space<vmem>>, vector<16x256xf32>,
    %c0_i32_8 = arith.constant 0 : i32
    %9 = arith.cmpi eq, %arg2, %c0_i32_8 : i32
    %10 = arith.extui %9 : i1 to i32
    %c0_i32_9 = arith.constant 0 : i32
    %11 = arith.cmpi ne, %10, %c0_i32_9 : i32
    scf.if %11 {
      %c0_10 = arith.constant 0 : index
      %c0_11 = arith.constant 0 : index
      %12 = vector.load %arg8[%c0_10, %c0_11] : memref<16x256xf32, #tpu.memory_space<vmem>>, vector<16x256xf32>
      %c0_12 = arith.constant 0 : index
      %c0_13 = arith.constant 0 : index
      %13 = vector.load %arg5[%c0_12, %c0_13] : memref<1x256xf32, #tpu.memory_space<vmem>>, vector<1x256xf32>
      %14 = vector.broadcast %13 : vector<1x256xf32> to vector<16x256xf32>
      %15 = arith.mulf %12, %14 : vector<16x256xf32>
      %c0_14 = arith.constant 0 : index
      %c0_15 = arith.constant 0 : index
      %16 = vector.load %arg6[%c0_14, %c0_15] : memref<1x256xf32, #tpu.memory_space<vmem>>, vector<1x256xf32>
      %17 = vector.broadcast %16 : vector<1x256xf32> to vector<16x256xf32>
      %18 = arith.addf %15, %17 : vector<16x256xf32>
      %19 = arith.truncf %18 : vector<16x256xf32> to vector<16x256xbf16>
      %c0_16 = arith.constant 0 : index
      %c0_17 = arith.constant 0 : index
      %20 = vector.load %arg7[%c0_16, %c0_17] : memref<16x256xbf16, #tpu.memory_space<vmem>>, vector<16x256xbf16>
      tpu.vector_store %arg7[%c0_16, %c0_17], %19 {strides = array<i32>} : memref<16x256xbf16, #tpu.memory_space<vmem>>, vector<16x256xbf16>,
    } else {
    }
    return
  }
  func.func @transform_0(%arg0: i32, %arg1: i32, %arg2: i32) -> (i32, i32) {
    %c0_i32 = arith.constant 0 : i32
    return %arg0, %arg2 : i32, i32
  }
  func.func @transform_1(%arg0: i32, %arg1: i32, %arg2: i32) -> (i32, i32) {
    %c0_i32 = arith.constant 0 : i32
    return %arg2, %arg1 : i32, i32
  }
  func.func @transform_2(%arg0: i32, %arg1: i32, %arg2: i32) -> (i32, i32) {
    %c0_i32 = arith.constant 0 : i32
    %c0_i32_0 = arith.constant 0 : i32
    return %c0_i32, %arg1 : i32, i32
  }
  func.func @transform_3(%arg0: i32, %arg1: i32, %arg2: i32) -> (i32, i32) {
    %c0_i32 = arith.constant 0 : i32
    %c0_i32_0 = arith.constant 0 : i32
    return %c0_i32, %arg1 : i32, i32
  }
  func.func @transform_4(%arg0: i32, %arg1: i32, %arg2: i32) -> (i32, i32) {
    %c0_i32 = arith.constant 0 : i32
    return %arg0, %arg1 : i32, i32
  }
}

module attributes {stable_mosaic.version = 11 : i64} {
  func.func @kernel(%arg0: i32, %arg1: i32, %arg2: i32, %arg3: memref<16x128xbf16, #tpu.memory_space<vmem>>, %arg4: memref<128x256xbf16, #tpu.memory_space<vmem>>, %arg5: memref<1x256xf32, #tpu.memory_space<vmem>>, %arg6: memref<1x256xf32, #tpu.memory_space<vmem>>, %arg7: memref<16x256xbf16, #tpu.memory_space<vmem>>, %arg8: memref<16x256xbf16, #tpu.memory_space<vmem>>, %arg9: memref<16x256xf32, #tpu.memory_space<vmem>>) attributes {dimension_semantics = [#tpu.dimension_semantics<parallel>, #tpu.dimension_semantics<parallel>, #tpu.dimension_semantics<arbitrary>], iteration_bounds = array<i64: 1, 1, 1>, scalar_prefetch = 0 : i64, scratch_operands = 1 : i64, tpu.core_type = #tpu.core_type<tc>, window_params = [{transform_indices = @transform_0, window_bounds = array<i64: 16, 128>}, {transform_indices = @transform_1, window_bounds = array<i64: 128, 256>}, {transform_indices = @transform_2, window_bounds = array<i64: 1, 256>}, {transform_indices = @transform_3, window_bounds = array<i64: 1, 256>}, {transform_indices = @transform_4, window_bounds = array<i64: 16, 256>}, {transform_indices = @transform_5, window_bounds = array<i64: 16, 256>}]} {
    %c0_i32 = arith.constant 0 : i32
    %0 = arith.cmpi eq, %arg2, %c0_i32 : i32
    %1 = arith.extui %0 : i1 to i32
    %c0_i32_0 = arith.constant 0 : i32
    %2 = arith.cmpi ne, %1, %c0_i32_0 : i32
    scf.if %2 {
      %cst_10 = arith.constant 0.000000e+00 : f32
      %12 = vector.broadcast %cst_10 : f32 to vector<16x256xf32>
      %c0_11 = arith.constant 0 : index
      %c0_12 = arith.constant 0 : index
      %13 = vector.load %arg9[%c0_11, %c0_12] : memref<16x256xf32, #tpu.memory_space<vmem>>, vector<16x256xf32>
      tpu.vector_store %arg9[%c0_11, %c0_12], %12 {strides = array<i32>} : memref<16x256xf32, #tpu.memory_space<vmem>>, vector<16x256xf32>,
    } else {
    }
    %c0 = arith.constant 0 : index
    %c0_1 = arith.constant 0 : index
    %3 = vector.load %arg9[%c0, %c0_1] : memref<16x256xf32, #tpu.memory_space<vmem>>, vector<16x256xf32>
    %c0_2 = arith.constant 0 : index
    %c0_3 = arith.constant 0 : index
    %4 = vector.load %arg3[%c0_2, %c0_3] : memref<16x128xbf16, #tpu.memory_space<vmem>>, vector<16x128xbf16>
    %c0_4 = arith.constant 0 : index
    %c0_5 = arith.constant 0 : index
    %5 = vector.load %arg4[%c0_4, %c0_5] : memref<128x256xbf16, #tpu.memory_space<vmem>>, vector<128x256xbf16>
    %cst = arith.constant dense<0.000000e+00> : vector<16x256xf32>
    %6 = tpu.matmul %4, %5, %cst {dimension_numbers = #tpu.dot_dimension_numbers<[1], [0], [0], [1], [0, 0, 1, 1], [], []>} : vector<16x128xbf16>, vector<128x256xbf16>, vector<16x256xf32> -> vector<16x256xf32>
    %7 = arith.addf %3, %6 : vector<16x256xf32>
    %c0_6 = arith.constant 0 : index
    %c0_7 = arith.constant 0 : index
    %8 = vector.load %arg9[%c0_6, %c0_7] : memref<16x256xf32, #tpu.memory_space<vmem>>, vector<16x256xf32>
    tpu.vector_store %arg9[%c0_6, %c0_7], %7 {strides = array<i32>} : memref<16x256xf32, #tpu.memory_space<vmem>>, vector<16x256xf32>,
    %c0_i32_8 = arith.constant 0 : i32
    %9 = arith.cmpi eq, %arg2, %c0_i32_8 : i32
    %10 = arith.extui %9 : i1 to i32
    %c0_i32_9 = arith.constant 0 : i32
    %11 = arith.cmpi ne, %10, %c0_i32_9 : i32
    scf.if %11 {
      %c0_10 = arith.constant 0 : index
      %c0_11 = arith.constant 0 : index
      %12 = vector.load %arg9[%c0_10, %c0_11] : memref<16x256xf32, #tpu.memory_space<vmem>>, vector<16x256xf32>
      %c0_12 = arith.constant 0 : index
      %c0_13 = arith.constant 0 : index
      %13 = vector.load %arg5[%c0_12, %c0_13] : memref<1x256xf32, #tpu.memory_space<vmem>>, vector<1x256xf32>
      %14 = vector.broadcast %13 : vector<1x256xf32> to vector<16x256xf32>
      %15 = arith.mulf %12, %14 : vector<16x256xf32>
      %c0_14 = arith.constant 0 : index
      %c0_15 = arith.constant 0 : index
      %16 = vector.load %arg6[%c0_14, %c0_15] : memref<1x256xf32, #tpu.memory_space<vmem>>, vector<1x256xf32>
      %17 = vector.broadcast %16 : vector<1x256xf32> to vector<16x256xf32>
      %18 = arith.addf %15, %17 : vector<16x256xf32>
      %c0_16 = arith.constant 0 : index
      %c0_17 = arith.constant 0 : index
      %19 = vector.load %arg7[%c0_16, %c0_17] : memref<16x256xbf16, #tpu.memory_space<vmem>>, vector<16x256xbf16>
      %20 = arith.extf %19 : vector<16x256xbf16> to vector<16x256xf32>
      %21 = arith.addf %18, %20 : vector<16x256xf32>
      %cst_18 = arith.constant 0.000000e+00 : f32
      %22 = vector.broadcast %cst_18 : f32 to vector<16x256xf32>
      %23 = arith.maximumf %21, %22 : vector<16x256xf32>
      %24 = arith.truncf %23 : vector<16x256xf32> to vector<16x256xbf16>
      %c0_19 = arith.constant 0 : index
      %c0_20 = arith.constant 0 : index
      %25 = vector.load %arg8[%c0_19, %c0_20] : memref<16x256xbf16, #tpu.memory_space<vmem>>, vector<16x256xbf16>
      tpu.vector_store %arg8[%c0_19, %c0_20], %24 {strides = array<i32>} : memref<16x256xbf16, #tpu.memory_space<vmem>>, vector<16x256xbf16>,
    } else {
    }
    return
  }
  func.func @transform_0(%arg0: i32, %arg1: i32, %arg2: i32) -> (i32, i32) {
    %c0_i32 = arith.constant 0 : i32
    return %arg0, %arg2 : i32, i32
  }
  func.func @transform_1(%arg0: i32, %arg1: i32, %arg2: i32) -> (i32, i32) {
    %c0_i32 = arith.constant 0 : i32
    return %arg2, %arg1 : i32, i32
  }
  func.func @transform_2(%arg0: i32, %arg1: i32, %arg2: i32) -> (i32, i32) {
    %c0_i32 = arith.constant 0 : i32
    %c0_i32_0 = arith.constant 0 : i32
    return %c0_i32, %arg1 : i32, i32
  }
  func.func @transform_3(%arg0: i32, %arg1: i32, %arg2: i32) -> (i32, i32) {
    %c0_i32 = arith.constant 0 : i32
    %c0_i32_0 = arith.constant 0 : i32
    return %c0_i32, %arg1 : i32, i32
  }
  func.func @transform_4(%arg0: i32, %arg1: i32, %arg2: i32) -> (i32, i32) {
    %c0_i32 = arith.constant 0 : i32
    return %arg0, %arg1 : i32, i32
  }
  func.func @transform_5(%arg0: i32, %arg1: i32, %arg2: i32) -> (i32, i32) {
    %c0_i32 = arith.constant 0 : i32
    return %arg0, %arg1 : i32, i32
  }
}

module attributes {stable_mosaic.version = 11 : i64} {
  func.func @kernel(%arg0: i32, %arg1: i32, %arg2: i32, %arg3: memref<16x256xbf16, #tpu.memory_space<vmem>>, %arg4: memref<256x512xbf16, #tpu.memory_space<vmem>>, %arg5: memref<1x512xf32, #tpu.memory_space<vmem>>, %arg6: memref<1x512xf32, #tpu.memory_space<vmem>>, %arg7: memref<16x512xbf16, #tpu.memory_space<vmem>>, %arg8: memref<16x512xf32, #tpu.memory_space<vmem>>) attributes {dimension_semantics = [#tpu.dimension_semantics<parallel>, #tpu.dimension_semantics<parallel>, #tpu.dimension_semantics<arbitrary>], iteration_bounds = array<i64: 1, 1, 1>, scalar_prefetch = 0 : i64, scratch_operands = 1 : i64, tpu.core_type = #tpu.core_type<tc>, window_params = [{transform_indices = @transform_0, window_bounds = array<i64: 16, 256>}, {transform_indices = @transform_1, window_bounds = array<i64: 256, 512>}, {transform_indices = @transform_2, window_bounds = array<i64: 1, 512>}, {transform_indices = @transform_3, window_bounds = array<i64: 1, 512>}, {transform_indices = @transform_4, window_bounds = array<i64: 16, 512>}]} {
    %c0_i32 = arith.constant 0 : i32
    %0 = arith.cmpi eq, %arg2, %c0_i32 : i32
    %1 = arith.extui %0 : i1 to i32
    %c0_i32_0 = arith.constant 0 : i32
    %2 = arith.cmpi ne, %1, %c0_i32_0 : i32
    scf.if %2 {
      %cst_10 = arith.constant 0.000000e+00 : f32
      %12 = vector.broadcast %cst_10 : f32 to vector<16x512xf32>
      %c0_11 = arith.constant 0 : index
      %c0_12 = arith.constant 0 : index
      %13 = vector.load %arg8[%c0_11, %c0_12] : memref<16x512xf32, #tpu.memory_space<vmem>>, vector<16x512xf32>
      tpu.vector_store %arg8[%c0_11, %c0_12], %12 {strides = array<i32>} : memref<16x512xf32, #tpu.memory_space<vmem>>, vector<16x512xf32>,
    } else {
    }
    %c0 = arith.constant 0 : index
    %c0_1 = arith.constant 0 : index
    %3 = vector.load %arg8[%c0, %c0_1] : memref<16x512xf32, #tpu.memory_space<vmem>>, vector<16x512xf32>
    %c0_2 = arith.constant 0 : index
    %c0_3 = arith.constant 0 : index
    %4 = vector.load %arg3[%c0_2, %c0_3] : memref<16x256xbf16, #tpu.memory_space<vmem>>, vector<16x256xbf16>
    %c0_4 = arith.constant 0 : index
    %c0_5 = arith.constant 0 : index
    %5 = vector.load %arg4[%c0_4, %c0_5] : memref<256x512xbf16, #tpu.memory_space<vmem>>, vector<256x512xbf16>
    %cst = arith.constant dense<0.000000e+00> : vector<16x512xf32>
    %6 = tpu.matmul %4, %5, %cst {dimension_numbers = #tpu.dot_dimension_numbers<[1], [0], [0], [1], [0, 0, 1, 1], [], []>} : vector<16x256xbf16>, vector<256x512xbf16>, vector<16x512xf32> -> vector<16x512xf32>
    %7 = arith.addf %3, %6 : vector<16x512xf32>
    %c0_6 = arith.constant 0 : index
    %c0_7 = arith.constant 0 : index
    %8 = vector.load %arg8[%c0_6, %c0_7] : memref<16x512xf32, #tpu.memory_space<vmem>>, vector<16x512xf32>
    tpu.vector_store %arg8[%c0_6, %c0_7], %7 {strides = array<i32>} : memref<16x512xf32, #tpu.memory_space<vmem>>, vector<16x512xf32>,
    %c0_i32_8 = arith.constant 0 : i32
    %9 = arith.cmpi eq, %arg2, %c0_i32_8 : i32
    %10 = arith.extui %9 : i1 to i32
    %c0_i32_9 = arith.constant 0 : i32
    %11 = arith.cmpi ne, %10, %c0_i32_9 : i32
    scf.if %11 {
      %c0_10 = arith.constant 0 : index
      %c0_11 = arith.constant 0 : index
      %12 = vector.load %arg8[%c0_10, %c0_11] : memref<16x512xf32, #tpu.memory_space<vmem>>, vector<16x512xf32>
      %c0_12 = arith.constant 0 : index
      %c0_13 = arith.constant 0 : index
      %13 = vector.load %arg5[%c0_12, %c0_13] : memref<1x512xf32, #tpu.memory_space<vmem>>, vector<1x512xf32>
      %14 = vector.broadcast %13 : vector<1x512xf32> to vector<16x512xf32>
      %15 = arith.mulf %12, %14 : vector<16x512xf32>
      %c0_14 = arith.constant 0 : index
      %c0_15 = arith.constant 0 : index
      %16 = vector.load %arg6[%c0_14, %c0_15] : memref<1x512xf32, #tpu.memory_space<vmem>>, vector<1x512xf32>
      %17 = vector.broadcast %16 : vector<1x512xf32> to vector<16x512xf32>
      %18 = arith.addf %15, %17 : vector<16x512xf32>
      %19 = arith.truncf %18 : vector<16x512xf32> to vector<16x512xbf16>
      %c0_16 = arith.constant 0 : index
      %c0_17 = arith.constant 0 : index
      %20 = vector.load %arg7[%c0_16, %c0_17] : memref<16x512xbf16, #tpu.memory_space<vmem>>, vector<16x512xbf16>
      tpu.vector_store %arg7[%c0_16, %c0_17], %19 {strides = array<i32>} : memref<16x512xbf16, #tpu.memory_space<vmem>>, vector<16x512xbf16>,
    } else {
    }
    return
  }
  func.func @transform_0(%arg0: i32, %arg1: i32, %arg2: i32) -> (i32, i32) {
    %c0_i32 = arith.constant 0 : i32
    return %arg0, %arg2 : i32, i32
  }
  func.func @transform_1(%arg0: i32, %arg1: i32, %arg2: i32) -> (i32, i32) {
    %c0_i32 = arith.constant 0 : i32
    return %arg2, %arg1 : i32, i32
  }
  func.func @transform_2(%arg0: i32, %arg1: i32, %arg2: i32) -> (i32, i32) {
    %c0_i32 = arith.constant 0 : i32
    %c0_i32_0 = arith.constant 0 : i32
    return %c0_i32, %arg1 : i32, i32
  }
  func.func @transform_3(%arg0: i32, %arg1: i32, %arg2: i32) -> (i32, i32) {
    %c0_i32 = arith.constant 0 : i32
    %c0_i32_0 = arith.constant 0 : i32
    return %c0_i32, %arg1 : i32, i32
  }
  func.func @transform_4(%arg0: i32, %arg1: i32, %arg2: i32) -> (i32, i32) {
    %c0_i32 = arith.constant 0 : i32
    return %arg0, %arg1 : i32, i32
  }
}

module attributes {stable_mosaic.version = 11 : i64} {
  func.func @_mha_kernel(%arg0: memref<8x1x64xf32, #tpu.memory_space<vmem>>, %arg1: memref<8x2x64xf32, #tpu.memory_space<vmem>>, %arg2: memref<8x2x64xf32, #tpu.memory_space<vmem>>, %arg3: memref<8x1x64xf32, #tpu.memory_space<vmem>>) attributes {dimension_semantics = [], scalar_prefetch = 0 : i64, scratch_operands = 0 : i64, tpu.core_type = #tpu.core_type<tc>} {
    %c0 = arith.constant 0 : index
    %c0_0 = arith.constant 0 : index
    %c0_1 = arith.constant 0 : index
    %0 = vector.load %arg0[%c0, %c0_0, %c0_1] : memref<8x1x64xf32, #tpu.memory_space<vmem>>, vector<8x1x64xf32>
    %c0_2 = arith.constant 0 : index
    %c0_3 = arith.constant 0 : index
    %c0_4 = arith.constant 0 : index
    %1 = vector.load %arg1[%c0_2, %c0_3, %c0_4] : memref<8x2x64xf32, #tpu.memory_space<vmem>>, vector<8x2x64xf32>
    %c0_5 = arith.constant 0 : index
    %c0_6 = arith.constant 0 : index
    %c0_7 = arith.constant 0 : index
    %2 = vector.load %arg2[%c0_5, %c0_6, %c0_7] : memref<8x2x64xf32, #tpu.memory_space<vmem>>, vector<8x2x64xf32>
    "tpu.trace_start"() <{level = 10 : i32, message = "bqd,bkd->bqk"}> : () -> ()
    %cst = arith.constant dense<0.000000e+00> : vector<8x1x2xf32>
    %3 = tpu.matmul %0, %1, %cst {dimension_numbers = #tpu.dot_dimension_numbers<[2], [2], [1], [1], [0, 0, 0, 1, 1, 1], [0], [0]>} : vector<8x1x64xf32>, vector<8x2x64xf32>, vector<8x1x2xf32> -> vector<8x1x2xf32>
    "tpu.trace_stop"() : () -> ()
    %cst_8 = arith.constant dense<0xFF800000> : vector<8x1xf32>
    %4 = vector.multi_reduction <maximumf>, %3, %cst_8 [2] : vector<8x1x2xf32> to vector<8x1xf32>
    %5 = vector.shape_cast %4 : vector<8x1xf32> to vector<8x1x1xf32>
    %6 = vector.broadcast %5 : vector<8x1x1xf32> to vector<8x1x2xf32>
    %7 = arith.subf %3, %6 : vector<8x1x2xf32>
    %8 = math.exp %7 : vector<8x1x2xf32>
    %cst_9 = arith.constant dense<0.000000e+00> : vector<8x1xf32>
    %9 = vector.multi_reduction <add>, %8, %cst_9 [2] : vector<8x1x2xf32> to vector<8x1xf32>
    %10 = vector.shape_cast %9 : vector<8x1xf32> to vector<8x1x1xf32>
    %11 = tpu.reciprocal %10 {approx = true} : vector<8x1x1xf32> -> vector<8x1x1xf32>
    %12 = vector.broadcast %11 : vector<8x1x1xf32> to vector<8x1x2xf32>
    %13 = arith.mulf %8, %12 : vector<8x1x2xf32>
    "tpu.trace_start"() <{level = 10 : i32, message = "bqk,bkd->bqd"}> : () -> ()
    %cst_10 = arith.constant dense<0.000000e+00> : vector<8x1x64xf32>
    %14 = tpu.matmul %13, %2, %cst_10 {dimension_numbers = #tpu.dot_dimension_numbers<[2], [1], [1], [2], [0, 0, 0, 1, 1, 2], [0], [0]>} : vector<8x1x2xf32>, vector<8x2x64xf32>, vector<8x1x64xf32> -> vector<8x1x64xf32>
    "tpu.trace_stop"() : () -> ()
    %c0_11 = arith.constant 0 : index
    %c0_12 = arith.constant 0 : index
    %c0_13 = arith.constant 0 : index
    %15 = vector.load %arg3[%c0_11, %c0_12, %c0_13] : memref<8x1x64xf32, #tpu.memory_space<vmem>>, vector<8x1x64xf32>
    tpu.vector_store %arg3[%c0_11, %c0_12, %c0_13], %14 {strides = array<i32>} : memref<8x1x64xf32, #tpu.memory_space<vmem>>, vector<8x1x64xf32>,
    return
  }
}

module attributes {stable_mosaic.version = 11 : i64} {
  func.func @kernel(%arg0: i32, %arg1: i32, %arg2: i32, %arg3: memref<16x256xbf16, #tpu.memory_space<vmem>>, %arg4: memref<256x256xbf16, #tpu.memory_space<vmem>>, %arg5: memref<1x256xf32, #tpu.memory_space<vmem>>, %arg6: memref<1x256xf32, #tpu.memory_space<vmem>>, %arg7: memref<16x256xbf16, #tpu.memory_space<vmem>>, %arg8: memref<16x256xf32, #tpu.memory_space<vmem>>) attributes {dimension_semantics = [#tpu.dimension_semantics<parallel>, #tpu.dimension_semantics<parallel>, #tpu.dimension_semantics<arbitrary>], iteration_bounds = array<i64: 1, 1, 1>, scalar_prefetch = 0 : i64, scratch_operands = 1 : i64, tpu.core_type = #tpu.core_type<tc>, window_params = [{transform_indices = @transform_0, window_bounds = array<i64: 16, 256>}, {transform_indices = @transform_1, window_bounds = array<i64: 256, 256>}, {transform_indices = @transform_2, window_bounds = array<i64: 1, 256>}, {transform_indices = @transform_3, window_bounds = array<i64: 1, 256>}, {transform_indices = @transform_4, window_bounds = array<i64: 16, 256>}]} {
    %c0_i32 = arith.constant 0 : i32
    %0 = arith.cmpi eq, %arg2, %c0_i32 : i32
    %1 = arith.extui %0 : i1 to i32
    %c0_i32_0 = arith.constant 0 : i32
    %2 = arith.cmpi ne, %1, %c0_i32_0 : i32
    scf.if %2 {
      %cst_10 = arith.constant 0.000000e+00 : f32
      %12 = vector.broadcast %cst_10 : f32 to vector<16x256xf32>
      %c0_11 = arith.constant 0 : index
      %c0_12 = arith.constant 0 : index
      %13 = vector.load %arg8[%c0_11, %c0_12] : memref<16x256xf32, #tpu.memory_space<vmem>>, vector<16x256xf32>
      tpu.vector_store %arg8[%c0_11, %c0_12], %12 {strides = array<i32>} : memref<16x256xf32, #tpu.memory_space<vmem>>, vector<16x256xf32>,
    } else {
    }
    %c0 = arith.constant 0 : index
    %c0_1 = arith.constant 0 : index
    %3 = vector.load %arg8[%c0, %c0_1] : memref<16x256xf32, #tpu.memory_space<vmem>>, vector<16x256xf32>
    %c0_2 = arith.constant 0 : index
    %c0_3 = arith.constant 0 : index
    %4 = vector.load %arg3[%c0_2, %c0_3] : memref<16x256xbf16, #tpu.memory_space<vmem>>, vector<16x256xbf16>
    %c0_4 = arith.constant 0 : index
    %c0_5 = arith.constant 0 : index
    %5 = vector.load %arg4[%c0_4, %c0_5] : memref<256x256xbf16, #tpu.memory_space<vmem>>, vector<256x256xbf16>
    %cst = arith.constant dense<0.000000e+00> : vector<16x256xf32>
    %6 = tpu.matmul %4, %5, %cst {dimension_numbers = #tpu.dot_dimension_numbers<[1], [0], [0], [1], [0, 0, 1, 1], [], []>} : vector<16x256xbf16>, vector<256x256xbf16>, vector<16x256xf32> -> vector<16x256xf32>
    %7 = arith.addf %3, %6 : vector<16x256xf32>
    %c0_6 = arith.constant 0 : index
    %c0_7 = arith.constant 0 : index
    %8 = vector.load %arg8[%c0_6, %c0_7] : memref<16x256xf32, #tpu.memory_space<vmem>>, vector<16x256xf32>
    tpu.vector_store %arg8[%c0_6, %c0_7], %7 {strides = array<i32>} : memref<16x256xf32, #tpu.memory_space<vmem>>, vector<16x256xf32>,
    %c0_i32_8 = arith.constant 0 : i32
    %9 = arith.cmpi eq, %arg2, %c0_i32_8 : i32
    %10 = arith.extui %9 : i1 to i32
    %c0_i32_9 = arith.constant 0 : i32
    %11 = arith.cmpi ne, %10, %c0_i32_9 : i32
    scf.if %11 {
      %c0_10 = arith.constant 0 : index
      %c0_11 = arith.constant 0 : index
      %12 = vector.load %arg8[%c0_10, %c0_11] : memref<16x256xf32, #tpu.memory_space<vmem>>, vector<16x256xf32>
      %c0_12 = arith.constant 0 : index
      %c0_13 = arith.constant 0 : index
      %13 = vector.load %arg5[%c0_12, %c0_13] : memref<1x256xf32, #tpu.memory_space<vmem>>, vector<1x256xf32>
      %14 = vector.broadcast %13 : vector<1x256xf32> to vector<16x256xf32>
      %15 = arith.mulf %12, %14 : vector<16x256xf32>
      %c0_14 = arith.constant 0 : index
      %c0_15 = arith.constant 0 : index
      %16 = vector.load %arg6[%c0_14, %c0_15] : memref<1x256xf32, #tpu.memory_space<vmem>>, vector<1x256xf32>
      %17 = vector.broadcast %16 : vector<1x256xf32> to vector<16x256xf32>
      %18 = arith.addf %15, %17 : vector<16x256xf32>
      %19 = arith.truncf %18 : vector<16x256xf32> to vector<16x256xbf16>
      %c0_16 = arith.constant 0 : index
      %c0_17 = arith.constant 0 : index
      %20 = vector.load %arg7[%c0_16, %c0_17] : memref<16x256xbf16, #tpu.memory_space<vmem>>, vector<16x256xbf16>
      tpu.vector_store %arg7[%c0_16, %c0_17], %19 {strides = array<i32>} : memref<16x256xbf16, #tpu.memory_space<vmem>>, vector<16x256xbf16>,
    } else {
    }
    return
  }
  func.func @transform_0(%arg0: i32, %arg1: i32, %arg2: i32) -> (i32, i32) {
    %c0_i32 = arith.constant 0 : i32
    return %arg0, %arg2 : i32, i32
  }
  func.func @transform_1(%arg0: i32, %arg1: i32, %arg2: i32) -> (i32, i32) {
    %c0_i32 = arith.constant 0 : i32
    return %arg2, %arg1 : i32, i32
  }
  func.func @transform_2(%arg0: i32, %arg1: i32, %arg2: i32) -> (i32, i32) {
    %c0_i32 = arith.constant 0 : i32
    %c0_i32_0 = arith.constant 0 : i32
    return %c0_i32, %arg1 : i32, i32
  }
  func.func @transform_3(%arg0: i32, %arg1: i32, %arg2: i32) -> (i32, i32) {
    %c0_i32 = arith.constant 0 : i32
    %c0_i32_0 = arith.constant 0 : i32
    return %c0_i32, %arg1 : i32, i32
  }
  func.func @transform_4(%arg0: i32, %arg1: i32, %arg2: i32) -> (i32, i32) {
    %c0_i32 = arith.constant 0 : i32
    return %arg0, %arg1 : i32, i32
  }
}

module attributes {stable_mosaic.version = 11 : i64} {
  func.func @kernel(%arg0: i32, %arg1: i32, %arg2: i32, %arg3: memref<16x256xbf16, #tpu.memory_space<vmem>>, %arg4: memref<256x128xbf16, #tpu.memory_space<vmem>>, %arg5: memref<1x128xf32, #tpu.memory_space<vmem>>, %arg6: memref<1x128xf32, #tpu.memory_space<vmem>>, %arg7: memref<16x128xf32, #tpu.memory_space<vmem>>, %arg8: memref<16x128xf32, #tpu.memory_space<vmem>>) attributes {dimension_semantics = [#tpu.dimension_semantics<parallel>, #tpu.dimension_semantics<parallel>, #tpu.dimension_semantics<arbitrary>], iteration_bounds = array<i64: 1, 1, 1>, scalar_prefetch = 0 : i64, scratch_operands = 1 : i64, tpu.core_type = #tpu.core_type<tc>, window_params = [{transform_indices = @transform_0, window_bounds = array<i64: 16, 256>}, {transform_indices = @transform_1, window_bounds = array<i64: 256, 128>}, {transform_indices = @transform_2, window_bounds = array<i64: 1, 128>}, {transform_indices = @transform_3, window_bounds = array<i64: 1, 128>}, {transform_indices = @transform_4, window_bounds = array<i64: 16, 128>}]} {
    %c0_i32 = arith.constant 0 : i32
    %0 = arith.cmpi eq, %arg2, %c0_i32 : i32
    %1 = arith.extui %0 : i1 to i32
    %c0_i32_0 = arith.constant 0 : i32
    %2 = arith.cmpi ne, %1, %c0_i32_0 : i32
    scf.if %2 {
      %cst_10 = arith.constant 0.000000e+00 : f32
      %12 = vector.broadcast %cst_10 : f32 to vector<16x128xf32>
      %c0_11 = arith.constant 0 : index
      %c0_12 = arith.constant 0 : index
      %13 = vector.load %arg8[%c0_11, %c0_12] : memref<16x128xf32, #tpu.memory_space<vmem>>, vector<16x128xf32>
      tpu.vector_store %arg8[%c0_11, %c0_12], %12 {strides = array<i32>} : memref<16x128xf32, #tpu.memory_space<vmem>>, vector<16x128xf32>,
    } else {
    }
    %c0 = arith.constant 0 : index
    %c0_1 = arith.constant 0 : index
    %3 = vector.load %arg8[%c0, %c0_1] : memref<16x128xf32, #tpu.memory_space<vmem>>, vector<16x128xf32>
    %c0_2 = arith.constant 0 : index
    %c0_3 = arith.constant 0 : index
    %4 = vector.load %arg3[%c0_2, %c0_3] : memref<16x256xbf16, #tpu.memory_space<vmem>>, vector<16x256xbf16>
    %c0_4 = arith.constant 0 : index
    %c0_5 = arith.constant 0 : index
    %5 = vector.load %arg4[%c0_4, %c0_5] : memref<256x128xbf16, #tpu.memory_space<vmem>>, vector<256x128xbf16>
    %cst = arith.constant dense<0.000000e+00> : vector<16x128xf32>
    %6 = tpu.matmul %4, %5, %cst {dimension_numbers = #tpu.dot_dimension_numbers<[1], [0], [0], [1], [0, 0, 1, 1], [], []>} : vector<16x256xbf16>, vector<256x128xbf16>, vector<16x128xf32> -> vector<16x128xf32>
    %7 = arith.addf %3, %6 : vector<16x128xf32>
    %c0_6 = arith.constant 0 : index
    %c0_7 = arith.constant 0 : index
    %8 = vector.load %arg8[%c0_6, %c0_7] : memref<16x128xf32, #tpu.memory_space<vmem>>, vector<16x128xf32>
    tpu.vector_store %arg8[%c0_6, %c0_7], %7 {strides = array<i32>} : memref<16x128xf32, #tpu.memory_space<vmem>>, vector<16x128xf32>,
    %c0_i32_8 = arith.constant 0 : i32
    %9 = arith.cmpi eq, %arg2, %c0_i32_8 : i32
    %10 = arith.extui %9 : i1 to i32
    %c0_i32_9 = arith.constant 0 : i32
    %11 = arith.cmpi ne, %10, %c0_i32_9 : i32
    scf.if %11 {
      %c0_10 = arith.constant 0 : index
      %c0_11 = arith.constant 0 : index
      %12 = vector.load %arg8[%c0_10, %c0_11] : memref<16x128xf32, #tpu.memory_space<vmem>>, vector<16x128xf32>
      %c0_12 = arith.constant 0 : index
      %c0_13 = arith.constant 0 : index
      %13 = vector.load %arg5[%c0_12, %c0_13] : memref<1x128xf32, #tpu.memory_space<vmem>>, vector<1x128xf32>
      %14 = vector.broadcast %13 : vector<1x128xf32> to vector<16x128xf32>
      %15 = arith.mulf %12, %14 : vector<16x128xf32>
      %c0_14 = arith.constant 0 : index
      %c0_15 = arith.constant 0 : index
      %16 = vector.load %arg6[%c0_14, %c0_15] : memref<1x128xf32, #tpu.memory_space<vmem>>, vector<1x128xf32>
      %17 = vector.broadcast %16 : vector<1x128xf32> to vector<16x128xf32>
      %18 = arith.addf %15, %17 : vector<16x128xf32>
      %c0_16 = arith.constant 0 : index
      %c0_17 = arith.constant 0 : index
      %19 = vector.load %arg7[%c0_16, %c0_17] : memref<16x128xf32, #tpu.memory_space<vmem>>, vector<16x128xf32>
      tpu.vector_store %arg7[%c0_16, %c0_17], %18 {strides = array<i32>} : memref<16x128xf32, #tpu.memory_space<vmem>>, vector<16x128xf32>,
    } else {
    }
    return
  }
  func.func @transform_0(%arg0: i32, %arg1: i32, %arg2: i32) -> (i32, i32) {
    %c0_i32 = arith.constant 0 : i32
    return %arg0, %arg2 : i32, i32
  }
  func.func @transform_1(%arg0: i32, %arg1: i32, %arg2: i32) -> (i32, i32) {
    %c0_i32 = arith.constant 0 : i32
    return %arg2, %arg1 : i32, i32
  }
  func.func @transform_2(%arg0: i32, %arg1: i32, %arg2: i32) -> (i32, i32) {
    %c0_i32 = arith.constant 0 : i32
    %c0_i32_0 = arith.constant 0 : i32
    return %c0_i32, %arg1 : i32, i32
  }
  func.func @transform_3(%arg0: i32, %arg1: i32, %arg2: i32) -> (i32, i32) {
    %c0_i32 = arith.constant 0 : i32
    %c0_i32_0 = arith.constant 0 : i32
    return %c0_i32, %arg1 : i32, i32
  }
  func.func @transform_4(%arg0: i32, %arg1: i32, %arg2: i32) -> (i32, i32) {
    %c0_i32 = arith.constant 0 : i32
    return %arg0, %arg1 : i32, i32
  }
}

</mosaic_0001>

<bundles_post_ra>
// kernel: modified_resnet_forward.23
= control target key start
LH: loop header
LB: loop body
LE: loop exit
PB: predicated region body
PF: predicated region fallthrough
CT: control target
= control target key end

     0   :  { %s2400_s1 = inlined_call_operand.vmem [shape: bf16[128,128], index: 1, kind: input, shape index: {}]   ;;  %s2401_s0 = inlined_call_operand.vmem [shape: bf16[512,128], index: 0, kind: input, shape index: {}]   ;;  %s2402_s2 = inlined_call_operand.vmem [shape: f32[1,128], index: 2, kind: input, shape index: {}]   ;;  %s2403_s3 = inlined_call_operand.vmem [shape: f32[1,128], index: 3, kind: input, shape index: {}]   ;;  %s2404_s4 = inlined_call_operand.vmem [shape: bf16[512,128], index: 4, kind: output, shape index: {}]  }
   0x1   :  { %v1981_v0 = vld [vmem:[%s2400_s1 + $0x38] sm:$0xff]   ;;  %v1982_v1 = vld [vmem:[%s2400_s1 + $0x30] sm:$0xff]   ;;  %v1983_v2 = vld [vmem:[%s2400_s1 + $0x28] sm:$0xff]  }
   0x2   :  { %1885 = vmatprep.subr.bf16.mxu0 %v1981_v0  ;;  %1965 = vmatprep.subr.bf16.mxu1 %v1981_v0  ;;  %v1984_v3 = vld [vmem:[%s2400_s1 + $0x20] sm:$0xff]   ;;  %v1985_v6 = vld [vmem:[%s2400_s1 + $0x18] sm:$0xff]   ;;  %v1986_v7 = vld [vmem:[%s2400_s1 + $0x10] sm:$0xff]  }
   0x3   :  { %1886 = vmatpush3.bf16.msra.mxu0 %v1981_v0  ;;  %1973 = vmatpush3.bf16.msra.mxu1 %v1981_v0  ;;  %v1989_v4 = vld [vmem:[%s2401_s0] sm:$0xff]   ;;  %v1987_v8 = vld [vmem:[%s2400_s1 + $0x8] sm:$0xff]   ;;  %v1993_v12 = vld [vmem:[%s2401_s0 + $0x10] sm:$0xff]  }
   0x4   :  { %1887 = vmatprep.subr.bf16.mxu0 %v1982_v1  ;;  %1966 = vmatprep.subr.bf16.mxu1 %v1982_v1  ;;  %v1990_v5 = vld [vmem:[%s2401_s0 + $0x80] sm:$0xff]   ;;  %v1991_v10 = vld [vmem:[%s2401_s0 + $0x8] sm:$0xff]   ;;  %v1994_v13 = vld [vmem:[%s2401_s0 + $0x90] sm:$0xff]  }
   0x5   :  { %1901 = vmatprep.mubr.bf16.mxu0 %v1989_v4  ;;  %1933 = vmatprep.mubr.bf16.mxu1 %v1990_v5  ;;  %v1988_v9 = vld [vmem:[%s2400_s1] sm:$0xff]   ;;  %v1992_v11 = vld [vmem:[%s2401_s0 + $0x88] sm:$0xff]   ;;  %v1995_v14 = vld [vmem:[%s2401_s0 + $0x18] sm:$0xff]  }
   0x6   :  { %v1996_v15 = vld [vmem:[%s2401_s0 + $0x98] sm:$0xff]   ;;  %v1997_v16 = vld [vmem:[%s2401_s0 + $0x20] sm:$0xff]   ;;  %v1999_v18 = vld [vmem:[%s2401_s0 + $0x28] sm:$0xff]  }
   0x7   :  { %1888 = vmatpush3.bf16.msra.mxu0 %v1982_v1  ;;  %1974 = vmatpush3.bf16.msra.mxu1 %v1982_v1  ;;  %v1998_v17 = vld [vmem:[%s2401_s0 + $0xa0] sm:$0xff]   ;;  %v2000_v19 = vld [vmem:[%s2401_s0 + $0xa8] sm:$0xff]   ;;  %v2001_v20 = vld [vmem:[%s2401_s0 + $0x30] sm:$0xff]  }
   0x8   :  { %1889 = vmatprep.subr.bf16.mxu0 %v1983_v2  ;;  %1967 = vmatprep.subr.bf16.mxu1 %v1983_v2  ;;  %v2002_v21 = vld [vmem:[%s2401_s0 + $0xb0] sm:$0xff]   ;;  %v2003_v22 = vld [vmem:[%s2401_s0 + $0x38] sm:$0xff]   ;;  %v2005_v24 = vld [vmem:[%s2401_s0 + $0x40] sm:$0xff]  }
   0x9   :  { %v2004_v23 = vld [vmem:[%s2401_s0 + $0xb8] sm:$0xff]   ;;  %v2006_v25 = vld [vmem:[%s2401_s0 + $0xc0] sm:$0xff]   ;;  %v2007_v26 = vld [vmem:[%s2401_s0 + $0x48] sm:$0xff]  }
   0xa   :  { %v2008_v27 = vld [vmem:[%s2401_s0 + $0xc8] sm:$0xff]   ;;  %v2009_v28 = vld [vmem:[%s2401_s0 + $0x50] sm:$0xff]   ;;  %v2011_v30 = vld [vmem:[%s2401_s0 + $0x58] sm:$0xff]  }
   0xb   :  { %1890 = vmatpush3.bf16.msra.mxu0 %v1983_v2  ;;  %1975 = vmatpush3.bf16.msra.mxu1 %v1983_v2  ;;  %v2010_v29 = vld [vmem:[%s2401_s0 + $0xd0] sm:$0xff]   ;;  %v2012_v31 = vld [vmem:[%s2401_s0 + $0xd8] sm:$0xff]   ;;  %v2013_v32 = vld [vmem:[%s2401_s0 + $0x60] sm:$0xff]  }
   0xc   :  { %1891 = vmatprep.subr.bf16.mxu0 %v1984_v3  ;;  %1968 = vmatprep.subr.bf16.mxu1 %v1984_v3  ;;  %v2014_v33 = vld [vmem:[%s2401_s0 + $0xe0] sm:$0xff]   ;;  %v2015_v34 = vld [vmem:[%s2401_s0 + $0x68] sm:$0xff]   ;;  %v2017_v36 = vld [vmem:[%s2401_s0 + $0x70] sm:$0xff]  }
   0xd   :  { %v2016_v35 = vld [vmem:[%s2401_s0 + $0xe8] sm:$0xff]   ;;  %v2018_v37 = vld [vmem:[%s2401_s0 + $0xf0] sm:$0xff]   ;;  %v2019_v38 = vld [vmem:[%s2401_s0 + $0x78] sm:$0xff]  }
   0xe   :  { %v2020_v39 = vld [vmem:[%s2401_s0 + $0xf8] sm:$0xff]   ;;  %v2169_v40 = vld [vmem:[%s2402_s2] ss:$0 sm:$0xff] }
   0xf   :  { %1892 = vmatpush3.bf16.msra.mxu0 %v1984_v3  ;;  %1976 = vmatpush3.bf16.msra.mxu1 %v1984_v3  ;;  %v2176_v45 = vld [vmem:[%s2403_s3] ss:$0 sm:$0xff] }
  0x10   :  { %1893 = vmatprep.subr.bf16.mxu0 %v1985_v6  ;;  %1969 = vmatprep.subr.bf16.mxu1 %v1985_v6 }
  0x13   :  { %1894 = vmatpush3.bf16.msra.mxu0 %v1985_v6  ;;  %1977 = vmatpush3.bf16.msra.mxu1 %v1985_v6 }
  0x14   :  { %1895 = vmatprep.subr.bf16.mxu0 %v1986_v7  ;;  %1970 = vmatprep.subr.bf16.mxu1 %v1986_v7 }
  0x17   :  { %1896 = vmatpush3.bf16.msra.mxu0 %v1986_v7  ;;  %1978 = vmatpush3.bf16.msra.mxu1 %v1986_v7 }
  0x18   :  { %1897 = vmatprep.subr.bf16.mxu0 %v1987_v8  ;;  %1971 = vmatprep.subr.bf16.mxu1 %v1987_v8 }
  0x1b   :  { %1898 = vmatpush3.bf16.msra.mxu0 %v1987_v8  ;;  %1979 = vmatpush3.bf16.msra.mxu1 %v1987_v8 }
  0x1c   :  { %1899 = vmatprep.subr.bf16.mxu0 %v1988_v9  ;;  %1972 = vmatprep.subr.bf16.mxu1 %v1988_v9 }
  0x1f   :  { %1900 = vmatpush3.bf16.msra.mxu0 %v1988_v9  ;;  %1980 = vmatpush3.bf16.msra.mxu1 %v1988_v9 }
  0x22   :  { %1902 = vmatmul.mubr.bf16.vlgmr.msra.gmra.mxu0 %v1991_v10  ;;  %1934 = vmatmul.mubr.bf16.vlgmr.msra.gmra.mxu1 %v1992_v11 }
  0x23   :  { %1905 = vmatprep.mubr.bf16.mxu0 %v1993_v12  ;;  %1937 = vmatprep.mubr.bf16.mxu1 %v1994_v13 }
  0x2a   :  { %1906 = vmatmul.mubr.bf16.gmra.mxu0 %v1995_v14  ;;  %1938 = vmatmul.mubr.bf16.gmra.mxu1 %v1996_v15 }
  0x2b   :  { %1909 = vmatprep.mubr.bf16.mxu0 %v1997_v16  ;;  %1941 = vmatprep.mubr.bf16.mxu1 %v1998_v17 }
  0x32   :  { %1910 = vmatmul.mubr.bf16.gmra.mxu0 %v1999_v18  ;;  %1942 = vmatmul.mubr.bf16.gmra.mxu1 %v2000_v19 }
  0x33   :  { %1913 = vmatprep.mubr.bf16.mxu0 %v2001_v20  ;;  %1945 = vmatprep.mubr.bf16.mxu1 %v2002_v21 }
  0x3a   :  { %1914 = vmatmul.mubr.bf16.gmra.mxu0 %v2003_v22  ;;  %1946 = vmatmul.mubr.bf16.gmra.mxu1 %v2004_v23 }
  0x3b   :  { %1917 = vmatprep.mubr.bf16.mxu0 %v2005_v24  ;;  %1949 = vmatprep.mubr.bf16.mxu1 %v2006_v25 }
  0x42   :  { %1918 = vmatmul.mubr.bf16.gmra.mxu0 %v2007_v26  ;;  %1950 = vmatmul.mubr.bf16.gmra.mxu1 %v2008_v27 }
  0x43   :  { %1921 = vmatprep.mubr.bf16.mxu0 %v2009_v28  ;;  %1953 = vmatprep.mubr.bf16.mxu1 %v2010_v29 }
  0x4a   :  { %1922 = vmatmul.mubr.bf16.gmra.mxu0 %v2011_v30  ;;  %1954 = vmatmul.mubr.bf16.gmra.mxu1 %v2012_v31 }
  0x4b   :  { %1925 = vmatprep.mubr.bf16.mxu0 %v2013_v32  ;;  %1957 = vmatprep.mubr.bf16.mxu1 %v2014_v33 }
  0x52   :  { %1926 = vmatmul.mubr.bf16.gmra.mxu0 %v2015_v34  ;;  %1958 = vmatmul.mubr.bf16.gmra.mxu1 %v2016_v35 }
  0x53   :  { %1929 = vmatprep.mubr.bf16.mxu0 %v2017_v36  ;;  %1961 = vmatprep.mubr.bf16.mxu1 %v2018_v37 }
  0x5a   :  { %1930 = vmatmul.mubr.bf16.gmra.mxu0 %v2019_v38  ;;  %1962 = vmatmul.mubr.bf16.gmra.mxu1 %v2020_v39 }
  0xe2   :  { %v1903_v41 = vpop.f32.mrf.mxu0  ;;  %v1935_v42 = vpop.f32.mrf.mxu1 }
  0xe3   :  { %v963_v43 = vmul.f32 %v1903_v41, %v2169_v40  ;;  %v995_v44 = vmul.f32 %v1935_v42, %v2169_v40 }
  0xe4   :  { %v504_v46 = vpop.f32.mrf.mxu0  ;;  %v632_v47 = vpop.f32.mrf.mxu1 }
  0xe5   :  { %v961_v48 = vmul.f32 %v2169_v40, %v504_v46  ;;  %v993_v49 = vmul.f32 %v2169_v40, %v632_v47  ;;  %v1034_v52 = vadd.f32 %v2176_v45, %v963_v43  ;;  %v1066_v53 = vadd.f32 %v2176_v45, %v995_v44 }
  0xe6   :  { %v1904_v50 = vpop.f32.mrf.mxu0  ;;  %v1936_v51 = vpop.f32.mrf.mxu1 }
  0xe7   :  { %v964_v54 = vmul.f32 %v1904_v50, %v2169_v40  ;;  %v996_v55 = vmul.f32 %v1936_v51, %v2169_v40  ;;  %v1032_v58 = vadd.f32 %v2176_v45, %v961_v48  ;;  %v1064_v59 = vadd.f32 %v2176_v45, %v993_v49 }
  0xe8   :  { %v507_v56 = vpop.f32.mrf.mxu0  ;;  %v635_v57 = vpop.f32.mrf.mxu1  ;;  %v1098_v2 = vmax.f32 %v1034_v52, 0.0  ;;  %v1130_v3 = vmax.f32 %v1066_v53, 0.0 }
  0xe9   :  { %v962_v60 = vmul.f32 %v2169_v40, %v507_v56  ;;  %v994_v61 = vmul.f32 %v2169_v40, %v635_v57  ;;  %v1035_v62 = vadd.f32 %v2176_v45, %v964_v54  ;;  %v1067_v63 = vadd.f32 %v2176_v45, %v996_v55 }
  0xea   :  { %v1907_v0 = vpop.f32.mrf.mxu0  ;;  %v1939_v1 = vpop.f32.mrf.mxu1  ;;  %v1096_v12 = vmax.f32 %v1032_v58, 0.0  ;;  %v1128_v13 = vmax.f32 %v1064_v59, 0.0 }
  0xeb   :  { %v1033_v4 = vadd.f32 %v2176_v45, %v962_v60  ;;  %v1065_v5 = vadd.f32 %v2176_v45, %v994_v61  ;;  %v1099_v6 = vmax.f32 %v1035_v62, 0.0  ;;  %v1131_v7 = vmax.f32 %v1067_v63, 0.0 }
  0xec   :  { %v967_v8 = vmul.f32 %v1907_v0, %v2169_v40  ;;  %v999_v9 = vmul.f32 %v1939_v1, %v2169_v40  ;;  %v520_v10 = vpop.f32.mrf.mxu0  ;;  %v648_v11 = vpop.f32.mrf.mxu1 }
  0xed   :  { %v1097_v14 = vmax.f32 %v1033_v4, 0.0  ;;  %v1129_v15 = vmax.f32 %v1065_v5, 0.0  ;;  %v1662_v16 = vpack.c.bf16 %v1099_v6, %v1098_v2  ;;  %v1742_v17 = vpack.c.bf16 %v1131_v7, %v1130_v3 }
  0xee   :  { %v965_v18 = vmul.f32 %v2169_v40, %v520_v10  ;;  %v997_v19 = vmul.f32 %v2169_v40, %v648_v11  ;;  %v1908_v20 = vpop.f32.mrf.mxu0  ;;  %v1940_v21 = vpop.f32.mrf.mxu1  ;;  %v1038_v24 = vadd.f32 %v2176_v45, %v967_v8  ;;  %v1070_v25 = vadd.f32 %v2176_v45, %v999_v9 }
  0xef   :  { %v1657_v22 = vpack.c.bf16 %v1097_v14, %v1096_v12  ;;  %v1737_v23 = vpack.c.bf16 %v1129_v15, %v1128_v13  ;;  %1814 = vst [vmem:[%s2404_s4 + $0x8] sm:$0xff] %v1662_v16   ;;  %1830 = vst [vmem:[%s2404_s4 + $0x88] sm:$0xff] %v1742_v17   ;;  %v968_v26 = vmul.f32 %v1908_v20, %v2169_v40 }
  0xf0   :  { %v1000_v27 = vmul.f32 %v1940_v21, %v2169_v40  ;;  %v523_v28 = vpop.f32.mrf.mxu0  ;;  %v651_v29 = vpop.f32.mrf.mxu1  ;;  %v1036_v30 = vadd.f32 %v2176_v45, %v965_v18  ;;  %v1068_v31 = vadd.f32 %v2176_v45, %v997_v19  ;;  %v1102_v43 = vmax.f32 %v1038_v24, 0.0 }
  0xf1   :  { %1658 = vst [vmem:[%s2404_s4] sm:$0xff] %v1657_v22   ;;  %1829 = vst [vmem:[%s2404_s4 + $0x80] sm:$0xff] %v1737_v23   ;;  %v966_v32 = vmul.f32 %v2169_v40, %v523_v28  ;;  %v998_v33 = vmul.f32 %v2169_v40, %v651_v29  ;;  %v1039_v34 = vadd.f32 %v2176_v45, %v968_v26  ;;  %v1134_v44 = vmax.f32 %v1070_v25, 0.0 }
  0xf2   :  { %v1071_v35 = vadd.f32 %v2176_v45, %v1000_v27  ;;  %v1911_v36 = vpop.f32.mrf.mxu0  ;;  %v1943_v37 = vpop.f32.mrf.mxu1  ;;  %v1100_v50 = vmax.f32 %v1036_v30, 0.0  ;;  %v1132_v51 = vmax.f32 %v1068_v31, 0.0 }
  0xf3   :  { %v1037_v38 = vadd.f32 %v2176_v45, %v966_v32  ;;  %v1069_v39 = vadd.f32 %v2176_v45, %v998_v33  ;;  %v971_v41 = vmul.f32 %v1911_v36, %v2169_v40  ;;  %v1003_v42 = vmul.f32 %v1943_v37, %v2169_v40 }
  0xf4   :  { %v1103_v46 = vmax.f32 %v1039_v34, 0.0  ;;  %v1135_v47 = vmax.f32 %v1071_v35, 0.0  ;;  %v536_v48 = vpop.f32.mrf.mxu0  ;;  %v664_v49 = vpop.f32.mrf.mxu1 }
  0xf5   :  { %v1101_v52 = vmax.f32 %v1037_v38, 0.0  ;;  %v1133_v53 = vmax.f32 %v1069_v39, 0.0  ;;  %v969_v56 = vmul.f32 %v2169_v40, %v536_v48  ;;  %v1001_v57 = vmul.f32 %v2169_v40, %v664_v49 }
  0xf6   :  { %v1672_v54 = vpack.c.bf16 %v1103_v46, %v1102_v43  ;;  %v1752_v55 = vpack.c.bf16 %v1135_v47, %v1134_v44  ;;  %v1912_v58 = vpop.f32.mrf.mxu0  ;;  %v1944_v59 = vpop.f32.mrf.mxu1  ;;  %v1042_v62 = vadd.f32 %v2176_v45, %v971_v41  ;;  %v1074_v63 = vadd.f32 %v2176_v45, %v1003_v42 }
  0xf7   :  { %v1667_v60 = vpack.c.bf16 %v1101_v52, %v1100_v50  ;;  %v1747_v61 = vpack.c.bf16 %v1133_v53, %v1132_v51  ;;  %v972_v0 = vmul.f32 %v1912_v58, %v2169_v40  ;;  %v1004_v1 = vmul.f32 %v1944_v59, %v2169_v40 }
  0xf8   :  { %1816 = vst [vmem:[%s2404_s4 + $0x18] sm:$0xff] %v1672_v54   ;;  %1832 = vst [vmem:[%s2404_s4 + $0x98] sm:$0xff] %v1752_v55   ;;  %v539_v2 = vpop.f32.mrf.mxu0  ;;  %v667_v3 = vpop.f32.mrf.mxu1  ;;  %v1040_v4 = vadd.f32 %v2176_v45, %v969_v56  ;;  %v1072_v5 = vadd.f32 %v2176_v45, %v1001_v57  ;;  %v1106_v12 = vmax.f32 %v1042_v62, 0.0  ;;  %v1138_v13 = vmax.f32 %v1074_v63, 0.0 }
  0xf9   :  { %1815 = vst [vmem:[%s2404_s4 + $0x10] sm:$0xff] %v1667_v60   ;;  %1831 = vst [vmem:[%s2404_s4 + $0x90] sm:$0xff] %v1747_v61   ;;  %v970_v6 = vmul.f32 %v2169_v40, %v539_v2  ;;  %v1002_v7 = vmul.f32 %v2169_v40, %v667_v3  ;;  %v1043_v8 = vadd.f32 %v2176_v45, %v972_v0 }
  0xfa   :  { %v1075_v9 = vadd.f32 %v2176_v45, %v1004_v1  ;;  %v1915_v10 = vpop.f32.mrf.mxu0  ;;  %v1947_v11 = vpop.f32.mrf.mxu1  ;;  %v1104_v22 = vmax.f32 %v1040_v4, 0.0  ;;  %v1136_v23 = vmax.f32 %v1072_v5, 0.0 }
  0xfb   :  { %v1041_v14 = vadd.f32 %v2176_v45, %v970_v6  ;;  %v1073_v15 = vadd.f32 %v2176_v45, %v1002_v7  ;;  %v1107_v16 = vmax.f32 %v1043_v8, 0.0  ;;  %v975_v18 = vmul.f32 %v1915_v10, %v2169_v40 }
  0xfc   :  { %v1139_v17 = vmax.f32 %v1075_v9, 0.0  ;;  %v1007_v19 = vmul.f32 %v1947_v11, %v2169_v40  ;;  %v552_v20 = vpop.f32.mrf.mxu0  ;;  %v680_v21 = vpop.f32.mrf.mxu1 }
  0xfd   :  { %v1105_v24 = vmax.f32 %v1041_v14, 0.0  ;;  %v1137_v25 = vmax.f32 %v1073_v15, 0.0  ;;  %v1682_v26 = vpack.c.bf16 %v1107_v16, %v1106_v12  ;;  %v973_v28 = vmul.f32 %v2169_v40, %v552_v20 }
  0xfe   :  { %v1762_v27 = vpack.c.bf16 %v1139_v17, %v1138_v13  ;;  %v1005_v29 = vmul.f32 %v2169_v40, %v680_v21  ;;  %v1916_v30 = vpop.f32.mrf.mxu0  ;;  %v1948_v31 = vpop.f32.mrf.mxu1  ;;  %v1046_v34 = vadd.f32 %v2176_v45, %v975_v18  ;;  %v1078_v35 = vadd.f32 %v2176_v45, %v1007_v19 }
  0xff   :  { %v1677_v32 = vpack.c.bf16 %v1105_v24, %v1104_v22  ;;  %v1757_v33 = vpack.c.bf16 %v1137_v25, %v1136_v23  ;;  %1818 = vst [vmem:[%s2404_s4 + $0x28] sm:$0xff] %v1682_v26   ;;  %v976_v36 = vmul.f32 %v1916_v30, %v2169_v40  ;;  %v1008_v37 = vmul.f32 %v1948_v31, %v2169_v40 }
 0x100   :  { %1834 = vst [vmem:[%s2404_s4 + $0xa8] sm:$0xff] %v1762_v27   ;;  %v555_v38 = vpop.f32.mrf.mxu0  ;;  %v683_v39 = vpop.f32.mrf.mxu1  ;;  %v1044_v41 = vadd.f32 %v2176_v45, %v973_v28  ;;  %v1076_v42 = vadd.f32 %v2176_v45, %v1005_v29  ;;  %v1110_v54 = vmax.f32 %v1046_v34, 0.0  ;;  %v1142_v55 = vmax.f32 %v1078_v35, 0.0 }
 0x101   :  { %1817 = vst [vmem:[%s2404_s4 + $0x20] sm:$0xff] %v1677_v32   ;;  %1833 = vst [vmem:[%s2404_s4 + $0xa0] sm:$0xff] %v1757_v33   ;;  %v974_v43 = vmul.f32 %v2169_v40, %v555_v38  ;;  %v1006_v44 = vmul.f32 %v2169_v40, %v683_v39  ;;  %v1047_v46 = vadd.f32 %v2176_v45, %v976_v36 }
 0x102   :  { %v1079_v47 = vadd.f32 %v2176_v45, %v1008_v37  ;;  %v1919_v48 = vpop.f32.mrf.mxu0  ;;  %v1951_v49 = vpop.f32.mrf.mxu1  ;;  %v1108_v60 = vmax.f32 %v1044_v41, 0.0  ;;  %v1140_v61 = vmax.f32 %v1076_v42, 0.0 }
 0x103   :  { %v1045_v50 = vadd.f32 %v2176_v45, %v974_v43  ;;  %v1077_v51 = vadd.f32 %v2176_v45, %v1006_v44  ;;  %v979_v52 = vmul.f32 %v1919_v48, %v2169_v40  ;;  %v1011_v53 = vmul.f32 %v1951_v49, %v2169_v40 }
 0x104   :  { %v1111_v56 = vmax.f32 %v1047_v46, 0.0  ;;  %v1143_v57 = vmax.f32 %v1079_v47, 0.0  ;;  %v568_v58 = vpop.f32.mrf.mxu0  ;;  %v696_v59 = vpop.f32.mrf.mxu1 }
 0x105   :  { %v1109_v62 = vmax.f32 %v1045_v50, 0.0  ;;  %v1141_v63 = vmax.f32 %v1077_v51, 0.0  ;;  %v977_v2 = vmul.f32 %v2169_v40, %v568_v58  ;;  %v1009_v3 = vmul.f32 %v2169_v40, %v696_v59 }
 0x106   :  { %v1692_v0 = vpack.c.bf16 %v1111_v56, %v1110_v54  ;;  %v1772_v1 = vpack.c.bf16 %v1143_v57, %v1142_v55  ;;  %v1920_v4 = vpop.f32.mrf.mxu0  ;;  %v1952_v5 = vpop.f32.mrf.mxu1  ;;  %v1050_v8 = vadd.f32 %v2176_v45, %v979_v52  ;;  %v1082_v9 = vadd.f32 %v2176_v45, %v1011_v53 }
 0x107   :  { %v1687_v6 = vpack.c.bf16 %v1109_v62, %v1108_v60  ;;  %v1767_v7 = vpack.c.bf16 %v1141_v63, %v1140_v61  ;;  %v980_v10 = vmul.f32 %v1920_v4, %v2169_v40  ;;  %v1012_v11 = vmul.f32 %v1952_v5, %v2169_v40 }
 0x108   :  { %1820 = vst [vmem:[%s2404_s4 + $0x38] sm:$0xff] %v1692_v0   ;;  %1836 = vst [vmem:[%s2404_s4 + $0xb8] sm:$0xff] %v1772_v1   ;;  %v571_v12 = vpop.f32.mrf.mxu0  ;;  %v699_v13 = vpop.f32.mrf.mxu1  ;;  %v1048_v14 = vadd.f32 %v2176_v45, %v977_v2  ;;  %v1080_v15 = vadd.f32 %v2176_v45, %v1009_v3  ;;  %v1114_v22 = vmax.f32 %v1050_v8, 0.0  ;;  %v1146_v23 = vmax.f32 %v1082_v9, 0.0 }
 0x109   :  { %1819 = vst [vmem:[%s2404_s4 + $0x30] sm:$0xff] %v1687_v6   ;;  %1835 = vst [vmem:[%s2404_s4 + $0xb0] sm:$0xff] %v1767_v7   ;;  %v978_v16 = vmul.f32 %v2169_v40, %v571_v12  ;;  %v1010_v17 = vmul.f32 %v2169_v40, %v699_v13  ;;  %v1051_v18 = vadd.f32 %v2176_v45, %v980_v10 }
 0x10a   :  { %v1083_v19 = vadd.f32 %v2176_v45, %v1012_v11  ;;  %v1923_v20 = vpop.f32.mrf.mxu0  ;;  %v1955_v21 = vpop.f32.mrf.mxu1  ;;  %v1112_v32 = vmax.f32 %v1048_v14, 0.0  ;;  %v1144_v33 = vmax.f32 %v1080_v15, 0.0 }
 0x10b   :  { %v1049_v24 = vadd.f32 %v2176_v45, %v978_v16  ;;  %v1081_v25 = vadd.f32 %v2176_v45, %v1010_v17  ;;  %v1115_v26 = vmax.f32 %v1051_v18, 0.0  ;;  %v983_v28 = vmul.f32 %v1923_v20, %v2169_v40 }
 0x10c   :  { %v1147_v27 = vmax.f32 %v1083_v19, 0.0  ;;  %v1015_v29 = vmul.f32 %v1955_v21, %v2169_v40  ;;  %v584_v30 = vpop.f32.mrf.mxu0  ;;  %v712_v31 = vpop.f32.mrf.mxu1 }
 0x10d   :  { %v1113_v34 = vmax.f32 %v1049_v24, 0.0  ;;  %v1145_v35 = vmax.f32 %v1081_v25, 0.0  ;;  %v1702_v36 = vpack.c.bf16 %v1115_v26, %v1114_v22  ;;  %v981_v38 = vmul.f32 %v2169_v40, %v584_v30 }
 0x10e   :  { %v1782_v37 = vpack.c.bf16 %v1147_v27, %v1146_v23  ;;  %v1013_v39 = vmul.f32 %v2169_v40, %v712_v31  ;;  %v1924_v41 = vpop.f32.mrf.mxu0  ;;  %v1956_v42 = vpop.f32.mrf.mxu1  ;;  %v1054_v46 = vadd.f32 %v2176_v45, %v983_v28  ;;  %v1086_v47 = vadd.f32 %v2176_v45, %v1015_v29 }
 0x10f   :  { %v1697_v43 = vpack.c.bf16 %v1113_v34, %v1112_v32  ;;  %v1777_v44 = vpack.c.bf16 %v1145_v35, %v1144_v33  ;;  %1822 = vst [vmem:[%s2404_s4 + $0x48] sm:$0xff] %v1702_v36   ;;  %v984_v48 = vmul.f32 %v1924_v41, %v2169_v40  ;;  %v1016_v49 = vmul.f32 %v1956_v42, %v2169_v40 }
 0x110   :  { %1838 = vst [vmem:[%s2404_s4 + $0xc8] sm:$0xff] %v1782_v37   ;;  %v587_v50 = vpop.f32.mrf.mxu0  ;;  %v715_v51 = vpop.f32.mrf.mxu1  ;;  %v1052_v52 = vadd.f32 %v2176_v45, %v981_v38  ;;  %v1084_v53 = vadd.f32 %v2176_v45, %v1013_v39  ;;  %v1118_v0 = vmax.f32 %v1054_v46, 0.0  ;;  %v1150_v1 = vmax.f32 %v1086_v47, 0.0 }
 0x111   :  { %1821 = vst [vmem:[%s2404_s4 + $0x40] sm:$0xff] %v1697_v43   ;;  %1837 = vst [vmem:[%s2404_s4 + $0xc0] sm:$0xff] %v1777_v44   ;;  %v982_v54 = vmul.f32 %v2169_v40, %v587_v50  ;;  %v1014_v55 = vmul.f32 %v2169_v40, %v715_v51  ;;  %v1055_v56 = vadd.f32 %v2176_v45, %v984_v48 }
 0x112   :  { %v1087_v57 = vadd.f32 %v2176_v45, %v1016_v49  ;;  %v1927_v58 = vpop.f32.mrf.mxu0  ;;  %v1959_v59 = vpop.f32.mrf.mxu1  ;;  %v1116_v6 = vmax.f32 %v1052_v52, 0.0  ;;  %v1148_v7 = vmax.f32 %v1084_v53, 0.0 }
 0x113   :  { %v1053_v60 = vadd.f32 %v2176_v45, %v982_v54  ;;  %v1085_v61 = vadd.f32 %v2176_v45, %v1014_v55  ;;  %v987_v62 = vmul.f32 %v1927_v58, %v2169_v40  ;;  %v1019_v63 = vmul.f32 %v1959_v59, %v2169_v40 }
 0x114   :  { %v1119_v2 = vmax.f32 %v1055_v56, 0.0  ;;  %v1151_v3 = vmax.f32 %v1087_v57, 0.0  ;;  %v600_v4 = vpop.f32.mrf.mxu0  ;;  %v728_v5 = vpop.f32.mrf.mxu1 }
 0x115   :  { %v1117_v8 = vmax.f32 %v1053_v60, 0.0  ;;  %v1149_v9 = vmax.f32 %v1085_v61, 0.0  ;;  %v985_v12 = vmul.f32 %v2169_v40, %v600_v4  ;;  %v1017_v13 = vmul.f32 %v2169_v40, %v728_v5 }
 0x116   :  { %v1712_v10 = vpack.c.bf16 %v1119_v2, %v1118_v0  ;;  %v1792_v11 = vpack.c.bf16 %v1151_v3, %v1150_v1  ;;  %v1928_v14 = vpop.f32.mrf.mxu0  ;;  %v1960_v15 = vpop.f32.mrf.mxu1  ;;  %v1058_v18 = vadd.f32 %v2176_v45, %v987_v62  ;;  %v1090_v19 = vadd.f32 %v2176_v45, %v1019_v63 }
 0x117   :  { %v1707_v16 = vpack.c.bf16 %v1117_v8, %v1116_v6  ;;  %v1787_v17 = vpack.c.bf16 %v1149_v9, %v1148_v7  ;;  %v988_v20 = vmul.f32 %v1928_v14, %v2169_v40  ;;  %v1020_v21 = vmul.f32 %v1960_v15, %v2169_v40 }
 0x118   :  { %1824 = vst [vmem:[%s2404_s4 + $0x58] sm:$0xff] %v1712_v10   ;;  %1840 = vst [vmem:[%s2404_s4 + $0xd8] sm:$0xff] %v1792_v11   ;;  %v603_v22 = vpop.f32.mrf.mxu0  ;;  %v731_v23 = vpop.f32.mrf.mxu1  ;;  %v1056_v24 = vadd.f32 %v2176_v45, %v985_v12  ;;  %v1088_v25 = vadd.f32 %v2176_v45, %v1017_v13  ;;  %v1122_v32 = vmax.f32 %v1058_v18, 0.0  ;;  %v1154_v33 = vmax.f32 %v1090_v19, 0.0 }
 0x119   :  { %1823 = vst [vmem:[%s2404_s4 + $0x50] sm:$0xff] %v1707_v16   ;;  %1839 = vst [vmem:[%s2404_s4 + $0xd0] sm:$0xff] %v1787_v17   ;;  %v986_v26 = vmul.f32 %v2169_v40, %v603_v22  ;;  %v1018_v27 = vmul.f32 %v2169_v40, %v731_v23  ;;  %v1059_v28 = vadd.f32 %v2176_v45, %v988_v20 }
 0x11a   :  { %v1091_v29 = vadd.f32 %v2176_v45, %v1020_v21  ;;  %v1931_v30 = vpop.f32.mrf.mxu0  ;;  %v1963_v31 = vpop.f32.mrf.mxu1  ;;  %v1120_v43 = vmax.f32 %v1056_v24, 0.0  ;;  %v1152_v44 = vmax.f32 %v1088_v25, 0.0 }
 0x11b   :  { %v1057_v34 = vadd.f32 %v2176_v45, %v986_v26  ;;  %v1089_v35 = vadd.f32 %v2176_v45, %v1018_v27  ;;  %v1123_v36 = vmax.f32 %v1059_v28, 0.0  ;;  %v991_v38 = vmul.f32 %v1931_v30, %v2169_v40 }
 0x11c   :  { %v1155_v37 = vmax.f32 %v1091_v29, 0.0  ;;  %v1023_v39 = vmul.f32 %v1963_v31, %v2169_v40  ;;  %v616_v41 = vpop.f32.mrf.mxu0  ;;  %v744_v42 = vpop.f32.mrf.mxu1 }
 0x11d   :  { %v1121_v46 = vmax.f32 %v1057_v34, 0.0  ;;  %v1153_v47 = vmax.f32 %v1089_v35, 0.0  ;;  %v1722_v48 = vpack.c.bf16 %v1123_v36, %v1122_v32  ;;  %v989_v50 = vmul.f32 %v2169_v40, %v616_v41 }
 0x11e   :  { %v1802_v49 = vpack.c.bf16 %v1155_v37, %v1154_v33  ;;  %v1021_v51 = vmul.f32 %v2169_v40, %v744_v42  ;;  %v1932_v52 = vpop.f32.mrf.mxu0  ;;  %v1964_v53 = vpop.f32.mrf.mxu1  ;;  %v1062_v56 = vadd.f32 %v2176_v45, %v991_v38  ;;  %v1094_v57 = vadd.f32 %v2176_v45, %v1023_v39 }
 0x11f   :  { %v1717_v54 = vpack.c.bf16 %v1121_v46, %v1120_v43  ;;  %v1797_v55 = vpack.c.bf16 %v1153_v47, %v1152_v44  ;;  %1826 = vst [vmem:[%s2404_s4 + $0x68] sm:$0xff] %v1722_v48   ;;  %v992_v58 = vmul.f32 %v1932_v52, %v2169_v40  ;;  %v1024_v59 = vmul.f32 %v1964_v53, %v2169_v40 }
 0x120   :  { %1842 = vst [vmem:[%s2404_s4 + $0xe8] sm:$0xff] %v1802_v49   ;;  %v619_v60 = vpop.f32.mrf.mxu0  ;;  %v747_v61 = vpop.f32.mrf.mxu1  ;;  %v1060_v62 = vadd.f32 %v2176_v45, %v989_v50  ;;  %v1092_v63 = vadd.f32 %v2176_v45, %v1021_v51  ;;  %v1126_v6 = vmax.f32 %v1062_v56, 0.0  ;;  %v1158_v7 = vmax.f32 %v1094_v57, 0.0 }
 0x121   :  { %1825 = vst [vmem:[%s2404_s4 + $0x60] sm:$0xff] %v1717_v54   ;;  %1841 = vst [vmem:[%s2404_s4 + $0xe0] sm:$0xff] %v1797_v55   ;;  %v990_v0 = vmul.f32 %v2169_v40, %v619_v60  ;;  %v1022_v1 = vmul.f32 %v2169_v40, %v747_v61  ;;  %v1063_v2 = vadd.f32 %v2176_v45, %v992_v58 }
 0x122   :  { %v1095_v3 = vadd.f32 %v2176_v45, %v1024_v59  ;;  %v1124_v10 = vmax.f32 %v1060_v62, 0.0  ;;  %v1156_v11 = vmax.f32 %v1092_v63, 0.0 }
 0x123   :  { %v1061_v4 = vadd.f32 %v2176_v45, %v990_v0  ;;  %v1093_v5 = vadd.f32 %v2176_v45, %v1022_v1  ;;  %v1127_v8 = vmax.f32 %v1063_v2, 0.0 }
 0x124   :  { %v1159_v9 = vmax.f32 %v1095_v3, 0.0 }
 0x125   :  { %v1125_v12 = vmax.f32 %v1061_v4, 0.0  ;;  %v1157_v13 = vmax.f32 %v1093_v5, 0.0  ;;  %v1732_v14 = vpack.c.bf16 %v1127_v8, %v1126_v6 }
 0x126   :  { %v1812_v15 = vpack.c.bf16 %v1159_v9, %v1158_v7 }
 0x127   :  { %v1727_v16 = vpack.c.bf16 %v1125_v12, %v1124_v10  ;;  %v1807_v40 = vpack.c.bf16 %v1157_v13, %v1156_v11  ;;  %1828 = vst [vmem:[%s2404_s4 + $0x78] sm:$0xff] %v1732_v14  }
 0x128   :  { %1844 = vst [vmem:[%s2404_s4 + $0xf8] sm:$0xff] %v1812_v15  }
 0x129   :  { %1827 = vst [vmem:[%s2404_s4 + $0x70] sm:$0xff] %v1727_v16   ;;  %1843 = vst [vmem:[%s2404_s4 + $0xf0] sm:$0xff] %v1807_v40  }

// kernel: modified_resnet_forward.26
= control target key start
LH: loop header
LB: loop body
LE: loop exit
PB: predicated region body
PF: predicated region fallthrough
CT: control target
= control target key end

     0   :  { %s774_s1 = inlined_call_operand.vmem [shape: bf16[128,128], index: 1, kind: input, shape index: {}]   ;;  %s775_s0 = inlined_call_operand.vmem [shape: bf16[128,128], index: 0, kind: input, shape index: {}]   ;;  %s776_s2 = inlined_call_operand.vmem [shape: f32[1,128], index: 2, kind: input, shape index: {}]   ;;  %s777_s3 = inlined_call_operand.vmem [shape: f32[1,128], index: 3, kind: input, shape index: {}]   ;;  %s778_s4 = inlined_call_operand.vmem [shape: bf16[128,128], index: 4, kind: output, shape index: {}]  }
   0x1   :  { %v637_v0 = vld [vmem:[%s774_s1 + $0x38] sm:$0xff]   ;;  %v638_v1 = vld [vmem:[%s774_s1 + $0x30] sm:$0xff]   ;;  %v639_v2 = vld [vmem:[%s774_s1 + $0x28] sm:$0xff]  }
   0x2   :  { %589 = vmatprep.subr.bf16.mxu0 %v637_v0  ;;  %621 = vmatprep.subr.bf16.mxu1 %v637_v0  ;;  %v640_v3 = vld [vmem:[%s774_s1 + $0x20] sm:$0xff]   ;;  %v641_v6 = vld [vmem:[%s774_s1 + $0x18] sm:$0xff]   ;;  %v642_v7 = vld [vmem:[%s774_s1 + $0x10] sm:$0xff]  }
   0x3   :  { %590 = vmatpush3.bf16.msra.mxu0 %v637_v0  ;;  %629 = vmatpush3.bf16.msra.mxu1 %v637_v0  ;;  %v645_v4 = vld [vmem:[%s775_s0] sm:$0xff]   ;;  %v643_v8 = vld [vmem:[%s774_s1 + $0x8] sm:$0xff]   ;;  %v649_v12 = vld [vmem:[%s775_s0 + $0x10] sm:$0xff]  }
   0x4   :  { %591 = vmatprep.subr.bf16.mxu0 %v638_v1  ;;  %622 = vmatprep.subr.bf16.mxu1 %v638_v1  ;;  %v646_v5 = vld [vmem:[%s775_s0 + $0x20] sm:$0xff]   ;;  %v647_v10 = vld [vmem:[%s775_s0 + $0x8] sm:$0xff]   ;;  %v650_v13 = vld [vmem:[%s775_s0 + $0x30] sm:$0xff]  }
   0x5   :  { %605 = vmatprep.mubr.bf16.mxu0 %v645_v4  ;;  %613 = vmatprep.mubr.bf16.mxu1 %v646_v5  ;;  %v644_v9 = vld [vmem:[%s774_s1] sm:$0xff]   ;;  %v648_v11 = vld [vmem:[%s775_s0 + $0x28] sm:$0xff]   ;;  %v651_v14 = vld [vmem:[%s775_s0 + $0x18] sm:$0xff]  }
   0x6   :  { %v652_v15 = vld [vmem:[%s775_s0 + $0x38] sm:$0xff]   ;;  %v729_v16 = vld [vmem:[%s776_s2] ss:$0 sm:$0xff] }
   0x7   :  { %592 = vmatpush3.bf16.msra.mxu0 %v638_v1  ;;  %630 = vmatpush3.bf16.msra.mxu1 %v638_v1  ;;  %v493_v21 = vld [vmem:[%s777_s3] ss:$0 sm:$0xff] }
   0x8   :  { %593 = vmatprep.subr.bf16.mxu0 %v639_v2  ;;  %623 = vmatprep.subr.bf16.mxu1 %v639_v2 }
   0xb   :  { %594 = vmatpush3.bf16.msra.mxu0 %v639_v2  ;;  %631 = vmatpush3.bf16.msra.mxu1 %v639_v2 }
   0xc   :  { %595 = vmatprep.subr.bf16.mxu0 %v640_v3  ;;  %624 = vmatprep.subr.bf16.mxu1 %v640_v3 }
   0xf   :  { %596 = vmatpush3.bf16.msra.mxu0 %v640_v3  ;;  %632 = vmatpush3.bf16.msra.mxu1 %v640_v3 }
  0x10   :  { %597 = vmatprep.subr.bf16.mxu0 %v641_v6  ;;  %625 = vmatprep.subr.bf16.mxu1 %v641_v6 }
  0x13   :  { %598 = vmatpush3.bf16.msra.mxu0 %v641_v6  ;;  %633 = vmatpush3.bf16.msra.mxu1 %v641_v6 }
  0x14   :  { %599 = vmatprep.subr.bf16.mxu0 %v642_v7  ;;  %626 = vmatprep.subr.bf16.mxu1 %v642_v7 }
  0x17   :  { %600 = vmatpush3.bf16.msra.mxu0 %v642_v7  ;;  %634 = vmatpush3.bf16.msra.mxu1 %v642_v7 }
  0x18   :  { %601 = vmatprep.subr.bf16.mxu0 %v643_v8  ;;  %627 = vmatprep.subr.bf16.mxu1 %v643_v8 }
  0x1b   :  { %602 = vmatpush3.bf16.msra.mxu0 %v643_v8  ;;  %635 = vmatpush3.bf16.msra.mxu1 %v643_v8 }
  0x1c   :  { %603 = vmatprep.subr.bf16.mxu0 %v644_v9  ;;  %628 = vmatprep.subr.bf16.mxu1 %v644_v9 }
  0x1f   :  { %604 = vmatpush3.bf16.msra.mxu0 %v644_v9  ;;  %636 = vmatpush3.bf16.msra.mxu1 %v644_v9 }
  0x22   :  { %606 = vmatmul.mubr.bf16.vlgmr.msra.gmra.mxu0 %v647_v10  ;;  %614 = vmatmul.mubr.bf16.vlgmr.msra.gmra.mxu1 %v648_v11 }
  0x23   :  { %609 = vmatprep.mubr.bf16.mxu0 %v649_v12  ;;  %617 = vmatprep.mubr.bf16.mxu1 %v650_v13 }
  0x2a   :  { %610 = vmatmul.mubr.bf16.gmra.mxu0 %v651_v14  ;;  %618 = vmatmul.mubr.bf16.gmra.mxu1 %v652_v15 }
  0xe2   :  { %v607_v17 = vpop.f32.mrf.mxu0  ;;  %v615_v18 = vpop.f32.mrf.mxu1 }
  0xe3   :  { %v339_v19 = vmul.f32 %v607_v17, %v729_v16  ;;  %v347_v20 = vmul.f32 %v615_v18, %v729_v16 }
  0xe4   :  { %v216_v22 = vpop.f32.mrf.mxu0  ;;  %v248_v23 = vpop.f32.mrf.mxu1 }
  0xe5   :  { %v337_v24 = vmul.f32 %v729_v16, %v216_v22  ;;  %v345_v25 = vmul.f32 %v729_v16, %v248_v23  ;;  %v362_v28 = vadd.f32 %v493_v21, %v339_v19  ;;  %v370_v29 = vadd.f32 %v493_v21, %v347_v20 }
  0xe6   :  { %v608_v26 = vpop.f32.mrf.mxu0  ;;  %v616_v27 = vpop.f32.mrf.mxu1 }
  0xe7   :  { %v340_v30 = vmul.f32 %v608_v26, %v729_v16  ;;  %v348_v31 = vmul.f32 %v616_v27, %v729_v16  ;;  %v360_v34 = vadd.f32 %v493_v21, %v337_v24  ;;  %v368_v35 = vadd.f32 %v493_v21, %v345_v25 }
  0xe8   :  { %v219_v32 = vpop.f32.mrf.mxu0  ;;  %v251_v33 = vpop.f32.mrf.mxu1  ;;  %v378_v42 = vmax.f32 %v362_v28, 0.0  ;;  %v386_v43 = vmax.f32 %v370_v29, 0.0 }
  0xe9   :  { %v338_v36 = vmul.f32 %v729_v16, %v219_v32  ;;  %v346_v37 = vmul.f32 %v729_v16, %v251_v33  ;;  %v363_v38 = vadd.f32 %v493_v21, %v340_v30  ;;  %v371_v39 = vadd.f32 %v493_v21, %v348_v31 }
  0xea   :  { %v611_v40 = vpop.f32.mrf.mxu0  ;;  %v619_v41 = vpop.f32.mrf.mxu1  ;;  %v376_v52 = vmax.f32 %v360_v34, 0.0  ;;  %v384_v53 = vmax.f32 %v368_v35, 0.0 }
  0xeb   :  { %v361_v44 = vadd.f32 %v493_v21, %v338_v36  ;;  %v369_v45 = vadd.f32 %v493_v21, %v346_v37  ;;  %v379_v46 = vmax.f32 %v363_v38, 0.0  ;;  %v387_v47 = vmax.f32 %v371_v39, 0.0 }
  0xec   :  { %v343_v48 = vmul.f32 %v611_v40, %v729_v16  ;;  %v351_v49 = vmul.f32 %v619_v41, %v729_v16  ;;  %v232_v50 = vpop.f32.mrf.mxu0  ;;  %v264_v51 = vpop.f32.mrf.mxu1 }
  0xed   :  { %v377_v54 = vmax.f32 %v361_v44, 0.0  ;;  %v385_v55 = vmax.f32 %v369_v45, 0.0  ;;  %v534_v56 = vpack.c.bf16 %v379_v46, %v378_v42  ;;  %v554_v57 = vpack.c.bf16 %v387_v47, %v386_v43 }
  0xee   :  { %v341_v58 = vmul.f32 %v729_v16, %v232_v50  ;;  %v349_v59 = vmul.f32 %v729_v16, %v264_v51  ;;  %v612_v60 = vpop.f32.mrf.mxu0  ;;  %v620_v61 = vpop.f32.mrf.mxu1  ;;  %v366_v0 = vadd.f32 %v493_v21, %v343_v48  ;;  %v374_v1 = vadd.f32 %v493_v21, %v351_v49 }
  0xef   :  { %v529_v62 = vpack.c.bf16 %v377_v54, %v376_v52  ;;  %v549_v63 = vpack.c.bf16 %v385_v55, %v384_v53  ;;  %566 = vst [vmem:[%s778_s4 + $0x8] sm:$0xff] %v534_v56   ;;  %570 = vst [vmem:[%s778_s4 + $0x28] sm:$0xff] %v554_v57   ;;  %v344_v2 = vmul.f32 %v612_v60, %v729_v16 }
  0xf0   :  { %v352_v3 = vmul.f32 %v620_v61, %v729_v16  ;;  %v235_v4 = vpop.f32.mrf.mxu0  ;;  %v267_v5 = vpop.f32.mrf.mxu1  ;;  %v364_v6 = vadd.f32 %v493_v21, %v341_v58  ;;  %v372_v7 = vadd.f32 %v493_v21, %v349_v59  ;;  %v382_v14 = vmax.f32 %v366_v0, 0.0 }
  0xf1   :  { %530 = vst [vmem:[%s778_s4] sm:$0xff] %v529_v62   ;;  %569 = vst [vmem:[%s778_s4 + $0x20] sm:$0xff] %v549_v63   ;;  %v342_v8 = vmul.f32 %v729_v16, %v235_v4  ;;  %v350_v9 = vmul.f32 %v729_v16, %v267_v5  ;;  %v367_v10 = vadd.f32 %v493_v21, %v344_v2  ;;  %v390_v15 = vmax.f32 %v374_v1, 0.0 }
  0xf2   :  { %v375_v11 = vadd.f32 %v493_v21, %v352_v3  ;;  %v380_v19 = vmax.f32 %v364_v6, 0.0  ;;  %v388_v20 = vmax.f32 %v372_v7, 0.0 }
  0xf3   :  { %v365_v12 = vadd.f32 %v493_v21, %v342_v8  ;;  %v373_v13 = vadd.f32 %v493_v21, %v350_v9  ;;  %v383_v17 = vmax.f32 %v367_v10, 0.0 }
  0xf4   :  { %v391_v18 = vmax.f32 %v375_v11, 0.0 }
  0xf5   :  { %v381_v22 = vmax.f32 %v365_v12, 0.0  ;;  %v389_v23 = vmax.f32 %v373_v13, 0.0  ;;  %v544_v24 = vpack.c.bf16 %v383_v17, %v382_v14 }
  0xf6   :  { %v564_v25 = vpack.c.bf16 %v391_v18, %v390_v15 }
  0xf7   :  { %v539_v26 = vpack.c.bf16 %v381_v22, %v380_v19  ;;  %v559_v27 = vpack.c.bf16 %v389_v23, %v388_v20  ;;  %568 = vst [vmem:[%s778_s4 + $0x18] sm:$0xff] %v544_v24  }
  0xf8   :  { %572 = vst [vmem:[%s778_s4 + $0x38] sm:$0xff] %v564_v25  }
  0xf9   :  { %567 = vst [vmem:[%s778_s4 + $0x10] sm:$0xff] %v539_v26   ;;  %571 = vst [vmem:[%s778_s4 + $0x30] sm:$0xff] %v559_v27  }

// kernel: modified_resnet_forward.28
= control target key start
LH: loop header
LB: loop body
LE: loop exit
PB: predicated region body
PF: predicated region fallthrough
CT: control target
= control target key end

     0   :  { %s740_s1 = inlined_call_operand.vmem [shape: bf16[128,128], index: 1, kind: input, shape index: {}]   ;;  %s741_s0 = inlined_call_operand.vmem [shape: bf16[128,128], index: 0, kind: input, shape index: {}]   ;;  %s742_s2 = inlined_call_operand.vmem [shape: f32[1,128], index: 2, kind: input, shape index: {}]   ;;  %s743_s3 = inlined_call_operand.vmem [shape: f32[1,128], index: 3, kind: input, shape index: {}]   ;;  %s744_s4 = inlined_call_operand.vmem [shape: bf16[128,128], index: 4, kind: output, shape index: {}]  }
   0x1   :  { %v621_v0 = vld [vmem:[%s740_s1 + $0x38] sm:$0xff]   ;;  %v622_v1 = vld [vmem:[%s740_s1 + $0x30] sm:$0xff]   ;;  %v623_v2 = vld [vmem:[%s740_s1 + $0x28] sm:$0xff]  }
   0x2   :  { %573 = vmatprep.subr.bf16.mxu0 %v621_v0  ;;  %605 = vmatprep.subr.bf16.mxu1 %v621_v0  ;;  %v624_v3 = vld [vmem:[%s740_s1 + $0x20] sm:$0xff]   ;;  %v625_v6 = vld [vmem:[%s740_s1 + $0x18] sm:$0xff]   ;;  %v626_v7 = vld [vmem:[%s740_s1 + $0x10] sm:$0xff]  }
   0x3   :  { %574 = vmatpush3.bf16.msra.mxu0 %v621_v0  ;;  %613 = vmatpush3.bf16.msra.mxu1 %v621_v0  ;;  %v629_v4 = vld [vmem:[%s741_s0] sm:$0xff]   ;;  %v627_v8 = vld [vmem:[%s740_s1 + $0x8] sm:$0xff]   ;;  %v633_v12 = vld [vmem:[%s741_s0 + $0x10] sm:$0xff]  }
   0x4   :  { %575 = vmatprep.subr.bf16.mxu0 %v622_v1  ;;  %606 = vmatprep.subr.bf16.mxu1 %v622_v1  ;;  %v630_v5 = vld [vmem:[%s741_s0 + $0x20] sm:$0xff]   ;;  %v631_v10 = vld [vmem:[%s741_s0 + $0x8] sm:$0xff]   ;;  %v634_v13 = vld [vmem:[%s741_s0 + $0x30] sm:$0xff]  }
   0x5   :  { %589 = vmatprep.mubr.bf16.mxu0 %v629_v4  ;;  %597 = vmatprep.mubr.bf16.mxu1 %v630_v5  ;;  %v628_v9 = vld [vmem:[%s740_s1] sm:$0xff]   ;;  %v632_v11 = vld [vmem:[%s741_s0 + $0x28] sm:$0xff]   ;;  %v635_v14 = vld [vmem:[%s741_s0 + $0x18] sm:$0xff]  }
   0x6   :  { %v636_v15 = vld [vmem:[%s741_s0 + $0x38] sm:$0xff]   ;;  %v476_v16 = vld [vmem:[%s742_s2] ss:$0 sm:$0xff] }
   0x7   :  { %576 = vmatpush3.bf16.msra.mxu0 %v622_v1  ;;  %614 = vmatpush3.bf16.msra.mxu1 %v622_v1  ;;  %v477_v23 = vld [vmem:[%s743_s3] ss:$0 sm:$0xff] }
   0x8   :  { %577 = vmatprep.subr.bf16.mxu0 %v623_v2  ;;  %607 = vmatprep.subr.bf16.mxu1 %v623_v2 }
   0xb   :  { %578 = vmatpush3.bf16.msra.mxu0 %v623_v2  ;;  %615 = vmatpush3.bf16.msra.mxu1 %v623_v2 }
   0xc   :  { %579 = vmatprep.subr.bf16.mxu0 %v624_v3  ;;  %608 = vmatprep.subr.bf16.mxu1 %v624_v3 }
   0xf   :  { %580 = vmatpush3.bf16.msra.mxu0 %v624_v3  ;;  %616 = vmatpush3.bf16.msra.mxu1 %v624_v3 }
  0x10   :  { %581 = vmatprep.subr.bf16.mxu0 %v625_v6  ;;  %609 = vmatprep.subr.bf16.mxu1 %v625_v6 }
  0x13   :  { %582 = vmatpush3.bf16.msra.mxu0 %v625_v6  ;;  %617 = vmatpush3.bf16.msra.mxu1 %v625_v6 }
  0x14   :  { %583 = vmatprep.subr.bf16.mxu0 %v626_v7  ;;  %610 = vmatprep.subr.bf16.mxu1 %v626_v7 }
  0x17   :  { %584 = vmatpush3.bf16.msra.mxu0 %v626_v7  ;;  %618 = vmatpush3.bf16.msra.mxu1 %v626_v7 }
  0x18   :  { %585 = vmatprep.subr.bf16.mxu0 %v627_v8  ;;  %611 = vmatprep.subr.bf16.mxu1 %v627_v8 }
  0x1b   :  { %586 = vmatpush3.bf16.msra.mxu0 %v627_v8  ;;  %619 = vmatpush3.bf16.msra.mxu1 %v627_v8 }
  0x1c   :  { %587 = vmatprep.subr.bf16.mxu0 %v628_v9  ;;  %612 = vmatprep.subr.bf16.mxu1 %v628_v9 }
  0x1f   :  { %588 = vmatpush3.bf16.msra.mxu0 %v628_v9  ;;  %620 = vmatpush3.bf16.msra.mxu1 %v628_v9 }
  0x22   :  { %590 = vmatmul.mubr.bf16.vlgmr.msra.gmra.mxu0 %v631_v10  ;;  %598 = vmatmul.mubr.bf16.vlgmr.msra.gmra.mxu1 %v632_v11 }
  0x23   :  { %593 = vmatprep.mubr.bf16.mxu0 %v633_v12  ;;  %601 = vmatprep.mubr.bf16.mxu1 %v634_v13 }
  0x2a   :  { %594 = vmatmul.mubr.bf16.gmra.mxu0 %v635_v14  ;;  %602 = vmatmul.mubr.bf16.gmra.mxu1 %v636_v15 }
  0xe2   :  { %v591_v17 = vpop.f32.mrf.mxu0  ;;  %v599_v18 = vpop.f32.mrf.mxu1 }
  0xe3   :  { %v339_v19 = vmul.f32 %v591_v17, %v476_v16  ;;  %v347_v20 = vmul.f32 %v599_v18, %v476_v16 }
  0xe4   :  { %v216_v21 = vpop.f32.mrf.mxu0  ;;  %v248_v22 = vpop.f32.mrf.mxu1 }
  0xe5   :  { %v337_v24 = vmul.f32 %v476_v16, %v216_v21  ;;  %v345_v25 = vmul.f32 %v476_v16, %v248_v22  ;;  %v362_v30 = vadd.f32 %v477_v23, %v339_v19  ;;  %v370_v31 = vadd.f32 %v477_v23, %v347_v20 }
  0xe6   :  { %v592_v26 = vpop.f32.mrf.mxu0  ;;  %v600_v27 = vpop.f32.mrf.mxu1 }
  0xe7   :  { %v340_v28 = vmul.f32 %v592_v26, %v476_v16  ;;  %v348_v29 = vmul.f32 %v600_v27, %v476_v16  ;;  %v360_v38 = vadd.f32 %v477_v23, %v337_v24  ;;  %v368_v39 = vadd.f32 %v477_v23, %v345_v25 }
  0xe8   :  { %v219_v32 = vpop.f32.mrf.mxu0  ;;  %v251_v33 = vpop.f32.mrf.mxu1 }
  0xe9   :  { %v363_v34 = vadd.f32 %v477_v23, %v340_v28  ;;  %v371_v35 = vadd.f32 %v477_v23, %v348_v29  ;;  %v338_v36 = vmul.f32 %v476_v16, %v219_v32  ;;  %v346_v37 = vmul.f32 %v476_v16, %v251_v33 }
  0xea   :  { %v595_v40 = vpop.f32.mrf.mxu0  ;;  %v603_v41 = vpop.f32.mrf.mxu1 }
  0xeb   :  { %v518_v42 = vpack.c.bf16 %v363_v34, %v362_v30  ;;  %v538_v43 = vpack.c.bf16 %v371_v35, %v370_v31  ;;  %v361_v44 = vadd.f32 %v477_v23, %v338_v36  ;;  %v369_v45 = vadd.f32 %v477_v23, %v346_v37 }
  0xec   :  { %v343_v46 = vmul.f32 %v595_v40, %v476_v16  ;;  %v351_v47 = vmul.f32 %v603_v41, %v476_v16  ;;  %v232_v48 = vpop.f32.mrf.mxu0  ;;  %v264_v49 = vpop.f32.mrf.mxu1 }
  0xed   :  { %550 = vst [vmem:[%s744_s4 + $0x8] sm:$0xff] %v518_v42   ;;  %554 = vst [vmem:[%s744_s4 + $0x28] sm:$0xff] %v538_v43   ;;  %v513_v50 = vpack.c.bf16 %v361_v44, %v360_v38  ;;  %v533_v51 = vpack.c.bf16 %v369_v45, %v368_v39  ;;  %v341_v52 = vmul.f32 %v476_v16, %v232_v48 }
  0xee   :  { %v349_v53 = vmul.f32 %v476_v16, %v264_v49  ;;  %v596_v54 = vpop.f32.mrf.mxu0  ;;  %v604_v55 = vpop.f32.mrf.mxu1  ;;  %v366_v58 = vadd.f32 %v477_v23, %v343_v46  ;;  %v374_v59 = vadd.f32 %v477_v23, %v351_v47 }
  0xef   :  { %514 = vst [vmem:[%s744_s4] sm:$0xff] %v513_v50   ;;  %553 = vst [vmem:[%s744_s4 + $0x20] sm:$0xff] %v533_v51   ;;  %v344_v56 = vmul.f32 %v596_v54, %v476_v16  ;;  %v352_v57 = vmul.f32 %v604_v55, %v476_v16  ;;  %v364_v2 = vadd.f32 %v477_v23, %v341_v52 }
  0xf0   :  { %v235_v60 = vpop.f32.mrf.mxu0  ;;  %v267_v61 = vpop.f32.mrf.mxu1  ;;  %v372_v3 = vadd.f32 %v477_v23, %v349_v53 }
  0xf1   :  { %v367_v62 = vadd.f32 %v477_v23, %v344_v56  ;;  %v375_v63 = vadd.f32 %v477_v23, %v352_v57  ;;  %v342_v0 = vmul.f32 %v476_v16, %v235_v60  ;;  %v350_v1 = vmul.f32 %v476_v16, %v267_v61 }
  0xf3   :  { %v528_v4 = vpack.c.bf16 %v367_v62, %v366_v58  ;;  %v548_v5 = vpack.c.bf16 %v375_v63, %v374_v59  ;;  %v365_v6 = vadd.f32 %v477_v23, %v342_v0  ;;  %v373_v7 = vadd.f32 %v477_v23, %v350_v1 }
  0xf5   :  { %552 = vst [vmem:[%s744_s4 + $0x18] sm:$0xff] %v528_v4   ;;  %556 = vst [vmem:[%s744_s4 + $0x38] sm:$0xff] %v548_v5   ;;  %v523_v8 = vpack.c.bf16 %v365_v6, %v364_v2  ;;  %v543_v9 = vpack.c.bf16 %v373_v7, %v372_v3 }
  0xf7   :  { %551 = vst [vmem:[%s744_s4 + $0x10] sm:$0xff] %v523_v8   ;;  %555 = vst [vmem:[%s744_s4 + $0x30] sm:$0xff] %v543_v9  }

// kernel: modified_resnet_forward.29
= control target key start
LH: loop header
LB: loop body
LE: loop exit
PB: predicated region body
PF: predicated region fallthrough
CT: control target
= control target key end

     0   :  { %s927_s1 = inlined_call_operand.vmem [shape: bf16[128,128], index: 1, kind: input, shape index: {}]   ;;  %s928_s0 = inlined_call_operand.vmem [shape: bf16[128,128], index: 0, kind: input, shape index: {}]   ;;  %s929_s2 = inlined_call_operand.vmem [shape: f32[1,128], index: 2, kind: input, shape index: {}]   ;;  %s930_s4 = inlined_call_operand.vmem [shape: bf16[128,128], index: 4, kind: input, shape index: {}]   ;;  %s931_s3 = inlined_call_operand.vmem [shape: f32[1,128], index: 3, kind: input, shape index: {}]   ;;  %s932_s5 = inlined_call_operand.vmem [shape: bf16[128,128], index: 5, kind: output, shape index: {}]  }
   0x1   :  { %v727_v0 = vld [vmem:[%s927_s1 + $0x38] sm:$0xff]   ;;  %v728_v1 = vld [vmem:[%s927_s1 + $0x30] sm:$0xff]   ;;  %v729_v2 = vld [vmem:[%s927_s1 + $0x28] sm:$0xff]  }
   0x2   :  { %679 = vmatprep.subr.bf16.mxu0 %v727_v0  ;;  %711 = vmatprep.subr.bf16.mxu1 %v727_v0  ;;  %v730_v3 = vld [vmem:[%s927_s1 + $0x20] sm:$0xff]   ;;  %v731_v6 = vld [vmem:[%s927_s1 + $0x18] sm:$0xff]   ;;  %v732_v7 = vld [vmem:[%s927_s1 + $0x10] sm:$0xff]  }
   0x3   :  { %680 = vmatpush3.bf16.msra.mxu0 %v727_v0  ;;  %719 = vmatpush3.bf16.msra.mxu1 %v727_v0  ;;  %v735_v4 = vld [vmem:[%s928_s0] sm:$0xff]   ;;  %v733_v8 = vld [vmem:[%s927_s1 + $0x8] sm:$0xff]   ;;  %v739_v12 = vld [vmem:[%s928_s0 + $0x10] sm:$0xff]  }
   0x4   :  { %681 = vmatprep.subr.bf16.mxu0 %v728_v1  ;;  %712 = vmatprep.subr.bf16.mxu1 %v728_v1  ;;  %v736_v5 = vld [vmem:[%s928_s0 + $0x20] sm:$0xff]   ;;  %v737_v10 = vld [vmem:[%s928_s0 + $0x8] sm:$0xff]   ;;  %v740_v13 = vld [vmem:[%s928_s0 + $0x30] sm:$0xff]  }
   0x5   :  { %695 = vmatprep.mubr.bf16.mxu0 %v735_v4  ;;  %703 = vmatprep.mubr.bf16.mxu1 %v736_v5  ;;  %v734_v9 = vld [vmem:[%s927_s1] sm:$0xff]   ;;  %v738_v11 = vld [vmem:[%s928_s0 + $0x28] sm:$0xff]   ;;  %v741_v14 = vld [vmem:[%s928_s0 + $0x18] sm:$0xff]  }
   0x6   :  { %v742_v15 = vld [vmem:[%s928_s0 + $0x38] sm:$0xff]   ;;  %v824_v16 = vld [vmem:[%s929_s2] ss:$0 sm:$0xff]  ;;  %v649_v17 = vld [vmem:[%s930_s4 + $0x8] sm:$0xff]  }
   0x7   :  { %682 = vmatpush3.bf16.msra.mxu0 %v728_v1  ;;  %720 = vmatpush3.bf16.msra.mxu1 %v728_v1  ;;  %v653_v18 = vld [vmem:[%s930_s4 + $0x28] sm:$0xff]   ;;  %v835_v20 = vld [vmem:[%s931_s3] ss:$0 sm:$0xff]  ;;  %v583_v26 = vunpack.c.l.bf16 %v649_v17  ;;  %v852_v34 = vld [vmem:[%s930_s4 + $0x18] sm:$0xff]   ;;  %v584_v39 = vunpack.c.h.bf16 %v649_v17 }
   0x8   :  { %683 = vmatprep.subr.bf16.mxu0 %v729_v2  ;;  %713 = vmatprep.subr.bf16.mxu1 %v729_v2  ;;  %v578_v24 = vld [vmem:[%s930_s4] sm:$0xff]   ;;  %v599_v27 = vunpack.c.l.bf16 %v653_v18  ;;  %v857_v35 = vld [vmem:[%s930_s4 + $0x38] sm:$0xff]   ;;  %v600_v41 = vunpack.c.h.bf16 %v653_v18  ;;  %v862_v42 = vld [vmem:[%s930_s4 + $0x10] sm:$0xff]   ;;  %v591_v52 = vunpack.c.l.bf16 %v852_v34 }
   0x9   :  { %v652_v25 = vld [vmem:[%s930_s4 + $0x20] sm:$0xff]   ;;  %v579_v36 = vunpack.c.l.bf16 %v578_v24  ;;  %v867_v43 = vld [vmem:[%s930_s4 + $0x30] sm:$0xff]   ;;  %v580_v46 = vunpack.c.h.bf16 %v578_v24  ;;  %v607_v53 = vunpack.c.l.bf16 %v857_v35  ;;  %v587_v56 = vunpack.c.l.bf16 %v862_v42 }
   0xa   :  { %v595_v37 = vunpack.c.l.bf16 %v652_v25  ;;  %v596_v47 = vunpack.c.h.bf16 %v652_v25  ;;  %v603_v57 = vunpack.c.l.bf16 %v867_v43 }
   0xb   :  { %684 = vmatpush3.bf16.msra.mxu0 %v729_v2  ;;  %721 = vmatpush3.bf16.msra.mxu1 %v729_v2 }
   0xc   :  { %685 = vmatprep.subr.bf16.mxu0 %v730_v3  ;;  %714 = vmatprep.subr.bf16.mxu1 %v730_v3 }
   0xf   :  { %686 = vmatpush3.bf16.msra.mxu0 %v730_v3  ;;  %722 = vmatpush3.bf16.msra.mxu1 %v730_v3 }
  0x10   :  { %687 = vmatprep.subr.bf16.mxu0 %v731_v6  ;;  %715 = vmatprep.subr.bf16.mxu1 %v731_v6 }
  0x13   :  { %688 = vmatpush3.bf16.msra.mxu0 %v731_v6  ;;  %723 = vmatpush3.bf16.msra.mxu1 %v731_v6 }
  0x14   :  { %689 = vmatprep.subr.bf16.mxu0 %v732_v7  ;;  %716 = vmatprep.subr.bf16.mxu1 %v732_v7 }
  0x17   :  { %690 = vmatpush3.bf16.msra.mxu0 %v732_v7  ;;  %724 = vmatpush3.bf16.msra.mxu1 %v732_v7 }
  0x18   :  { %691 = vmatprep.subr.bf16.mxu0 %v733_v8  ;;  %717 = vmatprep.subr.bf16.mxu1 %v733_v8 }
  0x1b   :  { %692 = vmatpush3.bf16.msra.mxu0 %v733_v8  ;;  %725 = vmatpush3.bf16.msra.mxu1 %v733_v8 }
  0x1c   :  { %693 = vmatprep.subr.bf16.mxu0 %v734_v9  ;;  %718 = vmatprep.subr.bf16.mxu1 %v734_v9 }
  0x1f   :  { %694 = vmatpush3.bf16.msra.mxu0 %v734_v9  ;;  %726 = vmatpush3.bf16.msra.mxu1 %v734_v9 }
  0x22   :  { %696 = vmatmul.mubr.bf16.vlgmr.msra.gmra.mxu0 %v737_v10  ;;  %704 = vmatmul.mubr.bf16.vlgmr.msra.gmra.mxu1 %v738_v11 }
  0x23   :  { %699 = vmatprep.mubr.bf16.mxu0 %v739_v12  ;;  %707 = vmatprep.mubr.bf16.mxu1 %v740_v13 }
  0x2a   :  { %700 = vmatmul.mubr.bf16.gmra.mxu0 %v741_v14  ;;  %708 = vmatmul.mubr.bf16.gmra.mxu1 %v742_v15 }
  0xe2   :  { %v697_v19 = vpop.f32.mrf.mxu0  ;;  %v705_v21 = vpop.f32.mrf.mxu1 }
  0xe3   :  { %v342_v22 = vmul.f32 %v697_v19, %v824_v16  ;;  %v350_v23 = vmul.f32 %v705_v21, %v824_v16 }
  0xe4   :  { %v219_v28 = vpop.f32.mrf.mxu0  ;;  %v251_v29 = vpop.f32.mrf.mxu1 }
  0xe5   :  { %v365_v30 = vadd.f32 %v835_v20, %v342_v22  ;;  %v373_v31 = vadd.f32 %v835_v20, %v350_v23  ;;  %v340_v32 = vmul.f32 %v824_v16, %v219_v28  ;;  %v348_v33 = vmul.f32 %v824_v16, %v251_v29 }
  0xe6   :  { %v698_v38 = vpop.f32.mrf.mxu0  ;;  %v706_v40 = vpop.f32.mrf.mxu1 }
  0xe7   :  { %v363_v44 = vadd.f32 %v835_v20, %v340_v32  ;;  %v371_v45 = vadd.f32 %v835_v20, %v348_v33  ;;  %v343_v48 = vmul.f32 %v698_v38, %v824_v16  ;;  %v351_v49 = vmul.f32 %v706_v40, %v824_v16 }
  0xe8   :  { %v222_v50 = vpop.f32.mrf.mxu0  ;;  %v254_v51 = vpop.f32.mrf.mxu1  ;;  %v413_v54 = vadd.f32 %v583_v26, %v365_v30  ;;  %v421_v55 = vadd.f32 %v599_v27, %v373_v31 }
  0xe9   :  { %v366_v58 = vadd.f32 %v835_v20, %v343_v48  ;;  %v374_v59 = vadd.f32 %v835_v20, %v351_v49  ;;  %v341_v60 = vmul.f32 %v824_v16, %v222_v50  ;;  %v349_v61 = vmul.f32 %v824_v16, %v254_v51 }
  0xea   :  { %v701_v62 = vpop.f32.mrf.mxu0  ;;  %v709_v63 = vpop.f32.mrf.mxu1  ;;  %v411_v0 = vadd.f32 %v579_v36, %v363_v44  ;;  %v419_v1 = vadd.f32 %v595_v37, %v371_v45  ;;  %v429_v10 = vmax.f32 %v413_v54, 0.0  ;;  %v437_v11 = vmax.f32 %v421_v55, 0.0 }
  0xeb   :  { %v346_v2 = vmul.f32 %v701_v62, %v824_v16  ;;  %v354_v3 = vmul.f32 %v709_v63, %v824_v16  ;;  %v414_v4 = vadd.f32 %v584_v39, %v366_v58  ;;  %v422_v5 = vadd.f32 %v600_v41, %v374_v59 }
  0xec   :  { %v364_v6 = vadd.f32 %v835_v20, %v341_v60  ;;  %v372_v7 = vadd.f32 %v835_v20, %v349_v61  ;;  %v235_v8 = vpop.f32.mrf.mxu0  ;;  %v267_v9 = vpop.f32.mrf.mxu1  ;;  %v427_v22 = vmax.f32 %v411_v0, 0.0  ;;  %v435_v23 = vmax.f32 %v419_v1, 0.0 }
  0xed   :  { %v344_v12 = vmul.f32 %v824_v16, %v235_v8  ;;  %v352_v13 = vmul.f32 %v824_v16, %v267_v9  ;;  %v430_v14 = vmax.f32 %v414_v4, 0.0  ;;  %v438_v15 = vmax.f32 %v422_v5, 0.0 }
  0xee   :  { %v412_v17 = vadd.f32 %v580_v46, %v364_v6  ;;  %v420_v18 = vadd.f32 %v596_v47, %v372_v7  ;;  %v702_v19 = vpop.f32.mrf.mxu0  ;;  %v710_v21 = vpop.f32.mrf.mxu1  ;;  %v369_v24 = vadd.f32 %v835_v20, %v346_v2  ;;  %v377_v25 = vadd.f32 %v835_v20, %v354_v3 }
  0xef   :  { %v617_v26 = vpack.c.bf16 %v430_v14, %v429_v10  ;;  %v637_v27 = vpack.c.bf16 %v438_v15, %v437_v11  ;;  %v367_v32 = vadd.f32 %v835_v20, %v344_v12  ;;  %v375_v33 = vadd.f32 %v835_v20, %v352_v13 }
  0xf0   :  { %v428_v28 = vmax.f32 %v412_v17, 0.0  ;;  %v436_v29 = vmax.f32 %v420_v18, 0.0  ;;  %v238_v30 = vpop.f32.mrf.mxu0  ;;  %v270_v31 = vpop.f32.mrf.mxu1  ;;  %v592_v36 = vunpack.c.h.bf16 %v852_v34  ;;  %v608_v37 = vunpack.c.h.bf16 %v857_v35 }
  0xf1   :  { %656 = vst [vmem:[%s932_s5 + $0x8] sm:$0xff] %v617_v26   ;;  %660 = vst [vmem:[%s932_s5 + $0x28] sm:$0xff] %v637_v27   ;;  %v347_v40 = vmul.f32 %v702_v19, %v824_v16  ;;  %v355_v41 = vmul.f32 %v710_v21, %v824_v16  ;;  %v345_v44 = vmul.f32 %v824_v16, %v238_v30  ;;  %v588_v34 = vunpack.c.h.bf16 %v862_v42 }
  0xf2   :  { %v612_v38 = vpack.c.bf16 %v428_v28, %v427_v22  ;;  %v632_v39 = vpack.c.bf16 %v436_v29, %v435_v23  ;;  %v353_v35 = vmul.f32 %v824_v16, %v270_v31  ;;  %v604_v45 = vunpack.c.h.bf16 %v867_v43 }
  0xf3   :  { %v417_v46 = vadd.f32 %v591_v52, %v369_v24  ;;  %v425_v47 = vadd.f32 %v607_v53, %v377_v25  ;;  %v370_v48 = vadd.f32 %v835_v20, %v347_v40  ;;  %v378_v49 = vadd.f32 %v835_v20, %v355_v41 }
  0xf4   :  { %613 = vst [vmem:[%s932_s5] sm:$0xff] %v612_v38   ;;  %659 = vst [vmem:[%s932_s5 + $0x20] sm:$0xff] %v632_v39   ;;  %v415_v50 = vadd.f32 %v587_v56, %v367_v32  ;;  %v423_v42 = vadd.f32 %v603_v57, %v375_v33  ;;  %v368_v16 = vadd.f32 %v835_v20, %v345_v44 }
  0xf5   :  { %v376_v43 = vadd.f32 %v835_v20, %v353_v35  ;;  %v418_v51 = vadd.f32 %v592_v36, %v370_v48  ;;  %v426_v54 = vadd.f32 %v608_v37, %v378_v49  ;;  %v433_v59 = vmax.f32 %v417_v46, 0.0 }
  0xf6   :  { %v416_v55 = vadd.f32 %v588_v34, %v368_v16  ;;  %v441_v60 = vmax.f32 %v425_v47, 0.0  ;;  %v431_v52 = vmax.f32 %v415_v50, 0.0  ;;  %v439_v53 = vmax.f32 %v423_v42, 0.0 }
  0xf7   :  { %v424_v58 = vadd.f32 %v604_v45, %v376_v43  ;;  %v434_v61 = vmax.f32 %v418_v51, 0.0  ;;  %v442_v62 = vmax.f32 %v426_v54, 0.0 }
  0xf8   :  { %v432_v63 = vmax.f32 %v416_v55, 0.0 }
  0xf9   :  { %v440_v0 = vmax.f32 %v424_v58, 0.0  ;;  %v627_v1 = vpack.c.bf16 %v434_v61, %v433_v59  ;;  %v647_v2 = vpack.c.bf16 %v442_v62, %v441_v60 }
  0xfa   :  { %v622_v56 = vpack.c.bf16 %v432_v63, %v431_v52 }
  0xfb   :  { %v642_v57 = vpack.c.bf16 %v440_v0, %v439_v53  ;;  %658 = vst [vmem:[%s932_s5 + $0x18] sm:$0xff] %v627_v1   ;;  %662 = vst [vmem:[%s932_s5 + $0x38] sm:$0xff] %v647_v2  }
  0xfc   :  { %657 = vst [vmem:[%s932_s5 + $0x10] sm:$0xff] %v622_v56  }
  0xfd   :  { %661 = vst [vmem:[%s932_s5 + $0x30] sm:$0xff] %v642_v57  }

// kernel: modified_resnet_forward.31
= control target key start
LH: loop header
LB: loop body
LE: loop exit
PB: predicated region body
PF: predicated region fallthrough
CT: control target
= control target key end

     0   :  { %s992_s1 = inlined_call_operand.vmem [shape: bf16[256,128], index: 1, kind: input, shape index: {}]   ;;  %s993_s0 = inlined_call_operand.vmem [shape: bf16[128,256], index: 0, kind: input, shape index: {}]   ;;  %s994_s2 = inlined_call_operand.vmem [shape: f32[1,128], index: 2, kind: input, shape index: {}]   ;;  %s995_s3 = inlined_call_operand.vmem [shape: f32[1,128], index: 3, kind: input, shape index: {}]   ;;  %s996_s4 = inlined_call_operand.vmem [shape: bf16[128,128], index: 4, kind: output, shape index: {}]  }
   0x1   :  { %v765_v0 = vld [vmem:[%s992_s1 + $0x78] sm:$0xff]   ;;  %v767_v2 = vld [vmem:[%s992_s1 + $0x70] sm:$0xff]   ;;  %v769_v4 = vld [vmem:[%s992_s1 + $0x68] sm:$0xff]  }
   0x2   :  { %v766_v1 = vld [vmem:[%s992_s1 + $0x38] sm:$0xff]   ;;  %685 = vmatprep.subr.bf16.mxu0 %v765_v0  ;;  %749 = vmatprep.subr.bf16.mxu1 %v765_v0  ;;  %v768_v3 = vld [vmem:[%s992_s1 + $0x30] sm:$0xff]   ;;  %v770_v5 = vld [vmem:[%s992_s1 + $0x28] sm:$0xff]  }
   0x3   :  { %686 = vmatpush3.bf16.msra.mxu0 %v766_v1  ;;  %757 = vmatpush3.bf16.msra.mxu1 %v766_v1  ;;  %v771_v6 = vld [vmem:[%s992_s1 + $0x60] sm:$0xff]   ;;  %v773_v8 = vld [vmem:[%s992_s1 + $0x58] sm:$0xff]   ;;  %v775_v10 = vld [vmem:[%s992_s1 + $0x50] sm:$0xff]  }
   0x4   :  { %687 = vmatprep.subr.bf16.mxu0 %v767_v2  ;;  %750 = vmatprep.subr.bf16.mxu1 %v767_v2  ;;  %v772_v7 = vld [vmem:[%s992_s1 + $0x20] sm:$0xff]   ;;  %v774_v9 = vld [vmem:[%s992_s1 + $0x18] sm:$0xff]   ;;  %v776_v13 = vld [vmem:[%s992_s1 + $0x10] sm:$0xff]  }
   0x5   :  { %v783_v11 = vld [vmem:[%s993_s0 + $0x4] ss:$8 sps:$4 sm:$0xff]   ;;  %v781_v18 = vld [vmem:[%s993_s0] ss:$8 sps:$4 sm:$0xff]   ;;  %v787_v20 = vld [vmem:[%s993_s0 + $0x14] ss:$8 sps:$4 sm:$0xff]  }
   0x6   :  { %v786_v12 = vld [vmem:[%s993_s0 + $0x44] ss:$8 sps:$4 sm:$0xff]   ;;  %310 = vmatprep.mubr.bf16.mxu0 %v783_v11  ;;  %v784_v19 = vld [vmem:[%s993_s0 + $0x40] ss:$8 sps:$4 sm:$0xff]   ;;  %v789_v21 = vld [vmem:[%s993_s0 + $0x54] ss:$8 sps:$4 sm:$0xff]  }
   0x7   :  { %688 = vmatpush3.bf16.msra.mxu0 %v768_v3  ;;  %758 = vmatpush3.bf16.msra.mxu1 %v768_v3  ;;  %v777_v14 = vld [vmem:[%s992_s1 + $0x48] sm:$0xff]   ;;  %v779_v16 = vld [vmem:[%s992_s1 + $0x40] sm:$0xff]   ;;  %v791_v22 = vld [vmem:[%s993_s0 + $0x10] ss:$8 sps:$4 sm:$0xff]  }
   0x8   :  { %689 = vmatprep.subr.bf16.mxu0 %v769_v4  ;;  %751 = vmatprep.subr.bf16.mxu1 %v769_v4  ;;  %v778_v15 = vld [vmem:[%s992_s1 + $0x8] sm:$0xff]   ;;  %v780_v17 = vld [vmem:[%s992_s1] sm:$0xff]   ;;  %v792_v23 = vld [vmem:[%s993_s0 + $0x50] ss:$8 sps:$4 sm:$0xff]  }
   0x9   :  { %342 = vmatprep.mubr.bf16.mxu1 %v786_v12  ;;  %v793_v24 = vld [vmem:[%s993_s0 + $0x24] ss:$8 sps:$4 sm:$0xff]   ;;  %v797_v26 = vld [vmem:[%s993_s0 + $0x20] ss:$8 sps:$4 sm:$0xff]   ;;  %v799_v28 = vld [vmem:[%s993_s0 + $0x34] ss:$8 sps:$4 sm:$0xff]  }
   0xa   :  { %v795_v25 = vld [vmem:[%s993_s0 + $0x64] ss:$8 sps:$4 sm:$0xff]   ;;  %v798_v27 = vld [vmem:[%s993_s0 + $0x60] ss:$8 sps:$4 sm:$0xff]   ;;  %v801_v29 = vld [vmem:[%s993_s0 + $0x74] ss:$8 sps:$4 sm:$0xff]  }
   0xb   :  { %690 = vmatpush3.bf16.msra.mxu0 %v770_v5  ;;  %759 = vmatpush3.bf16.msra.mxu1 %v770_v5  ;;  %v803_v30 = vld [vmem:[%s993_s0 + $0x30] ss:$8 sps:$4 sm:$0xff]   ;;  %v929_v35 = vld [vmem:[%s994_s2] ss:$0 sm:$0xff] }
   0xc   :  { %691 = vmatprep.subr.bf16.mxu0 %v771_v6  ;;  %752 = vmatprep.subr.bf16.mxu1 %v771_v6  ;;  %v804_v31 = vld [vmem:[%s993_s0 + $0x70] ss:$8 sps:$4 sm:$0xff]   ;;  %v936_v43 = vld [vmem:[%s995_s3] ss:$0 sm:$0xff] }
   0xf   :  { %692 = vmatpush3.bf16.msra.mxu0 %v772_v7  ;;  %760 = vmatpush3.bf16.msra.mxu1 %v772_v7 }
  0x10   :  { %693 = vmatprep.subr.bf16.mxu0 %v773_v8  ;;  %753 = vmatprep.subr.bf16.mxu1 %v773_v8 }
  0x13   :  { %694 = vmatpush3.bf16.msra.mxu0 %v774_v9  ;;  %761 = vmatpush3.bf16.msra.mxu1 %v774_v9 }
  0x14   :  { %695 = vmatprep.subr.bf16.mxu0 %v775_v10  ;;  %754 = vmatprep.subr.bf16.mxu1 %v775_v10 }
  0x17   :  { %696 = vmatpush3.bf16.msra.mxu0 %v776_v13  ;;  %762 = vmatpush3.bf16.msra.mxu1 %v776_v13 }
  0x18   :  { %697 = vmatprep.subr.bf16.mxu0 %v777_v14  ;;  %755 = vmatprep.subr.bf16.mxu1 %v777_v14 }
  0x1b   :  { %698 = vmatpush3.bf16.msra.mxu0 %v778_v15  ;;  %763 = vmatpush3.bf16.msra.mxu1 %v778_v15 }
  0x1c   :  { %699 = vmatprep.subr.bf16.mxu0 %v779_v16  ;;  %756 = vmatprep.subr.bf16.mxu1 %v779_v16 }
  0x1f   :  { %700 = vmatpush3.bf16.msra.mxu0 %v780_v17  ;;  %764 = vmatpush3.bf16.msra.mxu1 %v780_v17 }
  0x22   :  { %311 = vmatmul.mubr.bf16.vlgmr.msra.gmra.mxu0 %v781_v18  ;;  %343 = vmatmul.mubr.bf16.vlgmr.msra.gmra.mxu1 %v784_v19 }
  0x23   :  { %318 = vmatprep.mubr.bf16.mxu0 %v787_v20  ;;  %350 = vmatprep.mubr.bf16.mxu1 %v789_v21 }
  0x2a   :  { %319 = vmatmul.mubr.bf16.gmra.mxu0 %v791_v22  ;;  %351 = vmatmul.mubr.bf16.gmra.mxu1 %v792_v23 }
  0x2b   :  { %326 = vmatprep.mubr.bf16.mxu0 %v793_v24  ;;  %358 = vmatprep.mubr.bf16.mxu1 %v795_v25 }
  0x32   :  { %327 = vmatmul.mubr.bf16.gmra.mxu0 %v797_v26  ;;  %359 = vmatmul.mubr.bf16.gmra.mxu1 %v798_v27 }
  0x33   :  { %334 = vmatprep.mubr.bf16.mxu0 %v799_v28  ;;  %366 = vmatprep.mubr.bf16.mxu1 %v801_v29 }
  0x3a   :  { %335 = vmatmul.mubr.bf16.gmra.mxu0 %v803_v30  ;;  %367 = vmatmul.mubr.bf16.gmra.mxu1 %v804_v31 }
  0xe2   :  { %v701_v32 = vpop.f32.mrf.mxu0  ;;  %v725_v33 = vpop.f32.mrf.mxu1 }
  0xe4   :  { %v702_v34 = vpop.f32.mrf.mxu0  ;;  %v726_v36 = vpop.f32.mrf.mxu1 }
  0xe5   :  { %v703_v37 = vadd.f32 %v702_v34, %v701_v32  ;;  %v727_v38 = vadd.f32 %v726_v36, %v725_v33 }
  0xe6   :  { %v704_v39 = vpop.f32.mrf.mxu0  ;;  %v728_v40 = vpop.f32.mrf.mxu1 }
  0xe7   :  { %v433_v41 = vmul.f32 %v703_v37, %v929_v35  ;;  %v441_v42 = vmul.f32 %v727_v38, %v929_v35 }
  0xe8   :  { %v705_v44 = vpop.f32.mrf.mxu0  ;;  %v729_v45 = vpop.f32.mrf.mxu1 }
  0xe9   :  { %v706_v46 = vadd.f32 %v705_v44, %v704_v39  ;;  %v730_v47 = vadd.f32 %v729_v45, %v728_v40  ;;  %v456_v50 = vadd.f32 %v936_v43, %v433_v41  ;;  %v464_v51 = vadd.f32 %v936_v43, %v441_v42 }
  0xea   :  { %v707_v48 = vpop.f32.mrf.mxu0  ;;  %v731_v49 = vpop.f32.mrf.mxu1 }
  0xeb   :  { %v434_v52 = vmul.f32 %v706_v46, %v929_v35  ;;  %v442_v53 = vmul.f32 %v730_v47, %v929_v35  ;;  %v472_v62 = vmax.f32 %v456_v50, 0.0  ;;  %v480_v63 = vmax.f32 %v464_v51, 0.0 }
  0xec   :  { %v708_v54 = vpop.f32.mrf.mxu0  ;;  %v732_v55 = vpop.f32.mrf.mxu1 }
  0xed   :  { %v457_v56 = vadd.f32 %v936_v43, %v434_v52  ;;  %v465_v57 = vadd.f32 %v936_v43, %v442_v53  ;;  %v709_v58 = vadd.f32 %v708_v54, %v707_v48  ;;  %v733_v59 = vadd.f32 %v732_v55, %v731_v49 }
  0xee   :  { %v710_v60 = vpop.f32.mrf.mxu0  ;;  %v734_v61 = vpop.f32.mrf.mxu1 }
  0xef   :  { %v473_v0 = vmax.f32 %v457_v56, 0.0  ;;  %v481_v1 = vmax.f32 %v465_v57, 0.0  ;;  %v435_v2 = vmul.f32 %v709_v58, %v929_v35  ;;  %v443_v3 = vmul.f32 %v733_v59, %v929_v35 }
  0xf0   :  { %v711_v4 = vpop.f32.mrf.mxu0  ;;  %v735_v5 = vpop.f32.mrf.mxu1 }
  0xf1   :  { %v641_v6 = vpack.c.bf16 %v473_v0, %v472_v62  ;;  %v661_v7 = vpack.c.bf16 %v481_v1, %v480_v63  ;;  %v712_v8 = vadd.f32 %v711_v4, %v710_v60  ;;  %v736_v9 = vadd.f32 %v735_v5, %v734_v61 }
  0xf2   :  { %v713_v10 = vpop.f32.mrf.mxu0  ;;  %v737_v11 = vpop.f32.mrf.mxu1  ;;  %v458_v12 = vadd.f32 %v936_v43, %v435_v2  ;;  %v466_v13 = vadd.f32 %v936_v43, %v443_v3 }
  0xf3   :  { %642 = vst [vmem:[%s996_s4] sm:$0xff] %v641_v6   ;;  %681 = vst [vmem:[%s996_s4 + $0x20] sm:$0xff] %v661_v7   ;;  %v436_v14 = vmul.f32 %v712_v8, %v929_v35  ;;  %v444_v15 = vmul.f32 %v736_v9, %v929_v35 }
  0xf4   :  { %v714_v16 = vpop.f32.mrf.mxu0  ;;  %v738_v17 = vpop.f32.mrf.mxu1  ;;  %v474_v26 = vmax.f32 %v458_v12, 0.0  ;;  %v482_v27 = vmax.f32 %v466_v13, 0.0 }
  0xf5   :  { %v715_v18 = vadd.f32 %v714_v16, %v713_v10  ;;  %v739_v19 = vadd.f32 %v738_v17, %v737_v11  ;;  %v459_v20 = vadd.f32 %v936_v43, %v436_v14  ;;  %v467_v21 = vadd.f32 %v936_v43, %v444_v15 }
  0xf6   :  { %v716_v22 = vpop.f32.mrf.mxu0  ;;  %v740_v23 = vpop.f32.mrf.mxu1 }
  0xf7   :  { %v437_v24 = vmul.f32 %v715_v18, %v929_v35  ;;  %v445_v25 = vmul.f32 %v739_v19, %v929_v35  ;;  %v475_v28 = vmax.f32 %v459_v20, 0.0  ;;  %v483_v29 = vmax.f32 %v467_v21, 0.0 }
  0xf8   :  { %v717_v30 = vpop.f32.mrf.mxu0  ;;  %v741_v31 = vpop.f32.mrf.mxu1 }
  0xf9   :  { %v718_v32 = vadd.f32 %v717_v30, %v716_v22  ;;  %v742_v33 = vadd.f32 %v741_v31, %v740_v23  ;;  %v646_v34 = vpack.c.bf16 %v475_v28, %v474_v26  ;;  %v666_v36 = vpack.c.bf16 %v483_v29, %v482_v27 }
  0xfa   :  { %v719_v37 = vpop.f32.mrf.mxu0  ;;  %v743_v38 = vpop.f32.mrf.mxu1  ;;  %v460_v39 = vadd.f32 %v936_v43, %v437_v24  ;;  %v468_v40 = vadd.f32 %v936_v43, %v445_v25 }
  0xfb   :  { %v438_v41 = vmul.f32 %v718_v32, %v929_v35  ;;  %v446_v42 = vmul.f32 %v742_v33, %v929_v35  ;;  %678 = vst [vmem:[%s996_s4 + $0x8] sm:$0xff] %v646_v34   ;;  %682 = vst [vmem:[%s996_s4 + $0x28] sm:$0xff] %v666_v36  }
  0xfc   :  { %v720_v44 = vpop.f32.mrf.mxu0  ;;  %v744_v45 = vpop.f32.mrf.mxu1  ;;  %v476_v52 = vmax.f32 %v460_v39, 0.0  ;;  %v484_v53 = vmax.f32 %v468_v40, 0.0 }
  0xfd   :  { %v461_v46 = vadd.f32 %v936_v43, %v438_v41  ;;  %v469_v47 = vadd.f32 %v936_v43, %v446_v42  ;;  %v721_v48 = vadd.f32 %v720_v44, %v719_v37  ;;  %v745_v49 = vadd.f32 %v744_v45, %v743_v38 }
  0xfe   :  { %v722_v50 = vpop.f32.mrf.mxu0  ;;  %v746_v51 = vpop.f32.mrf.mxu1 }
  0xff   :  { %v477_v54 = vmax.f32 %v461_v46, 0.0  ;;  %v485_v55 = vmax.f32 %v469_v47, 0.0  ;;  %v439_v56 = vmul.f32 %v721_v48, %v929_v35  ;;  %v447_v57 = vmul.f32 %v745_v49, %v929_v35 }
 0x100   :  { %v723_v58 = vpop.f32.mrf.mxu0  ;;  %v747_v59 = vpop.f32.mrf.mxu1 }
 0x101   :  { %v651_v60 = vpack.c.bf16 %v477_v54, %v476_v52  ;;  %v671_v61 = vpack.c.bf16 %v485_v55, %v484_v53  ;;  %v724_v62 = vadd.f32 %v723_v58, %v722_v50  ;;  %v748_v63 = vadd.f32 %v747_v59, %v746_v51 }
 0x102   :  { %v462_v0 = vadd.f32 %v936_v43, %v439_v56  ;;  %v470_v1 = vadd.f32 %v936_v43, %v447_v57 }
 0x103   :  { %679 = vst [vmem:[%s996_s4 + $0x10] sm:$0xff] %v651_v60   ;;  %683 = vst [vmem:[%s996_s4 + $0x30] sm:$0xff] %v671_v61   ;;  %v440_v2 = vmul.f32 %v724_v62, %v929_v35  ;;  %v448_v3 = vmul.f32 %v748_v63, %v929_v35 }
 0x104   :  { %v478_v6 = vmax.f32 %v462_v0, 0.0  ;;  %v486_v7 = vmax.f32 %v470_v1, 0.0 }
 0x105   :  { %v463_v4 = vadd.f32 %v936_v43, %v440_v2  ;;  %v471_v5 = vadd.f32 %v936_v43, %v448_v3 }
 0x107   :  { %v479_v8 = vmax.f32 %v463_v4, 0.0  ;;  %v487_v9 = vmax.f32 %v471_v5, 0.0 }
 0x109   :  { %v656_v10 = vpack.c.bf16 %v479_v8, %v478_v6  ;;  %v676_v11 = vpack.c.bf16 %v487_v9, %v486_v7 }
 0x10b   :  { %680 = vst [vmem:[%s996_s4 + $0x18] sm:$0xff] %v656_v10   ;;  %684 = vst [vmem:[%s996_s4 + $0x38] sm:$0xff] %v676_v11  }

// kernel: modified_resnet_forward.32
= control target key start
LH: loop header
LB: loop body
LE: loop exit
PB: predicated region body
PF: predicated region fallthrough
CT: control target
= control target key end

     0   :  { %s358_s1 = inlined_call_operand.vmem [shape: bf16[128,128], index: 1, kind: input, shape index: {}]   ;;  %s359_s0 = inlined_call_operand.vmem [shape: bf16[32,128], index: 0, kind: input, shape index: {}]   ;;  %s360_s2 = inlined_call_operand.vmem [shape: f32[1,128], index: 2, kind: input, shape index: {}]   ;;  %s361_s3 = inlined_call_operand.vmem [shape: f32[1,128], index: 3, kind: input, shape index: {}]   ;;  %s362_s4 = inlined_call_operand.vmem [shape: bf16[32,128], index: 4, kind: output, shape index: {}]  }
   0x1   :  { %v281_v0 = vld [vmem:[%s358_s1 + $0x38] sm:$0xff]   ;;  %v282_v1 = vld [vmem:[%s358_s1 + $0x30] sm:$0xff]   ;;  %v283_v2 = vld [vmem:[%s358_s1 + $0x28] sm:$0xff]  }
   0x2   :  { %261 = vmatprep.subr.bf16.mxu0 %v281_v0  ;;  %v284_v3 = vld [vmem:[%s358_s1 + $0x20] sm:$0xff]   ;;  %v285_v5 = vld [vmem:[%s358_s1 + $0x18] sm:$0xff]   ;;  %v286_v6 = vld [vmem:[%s358_s1 + $0x10] sm:$0xff]  }
   0x3   :  { %262 = vmatpush3.bf16.msra.mxu0 %v281_v0  ;;  %v289_v4 = vld [vmem:[%s359_s0] sm:$0xff]   ;;  %v287_v7 = vld [vmem:[%s358_s1 + $0x8] sm:$0xff]  }
   0x4   :  { %263 = vmatprep.subr.bf16.mxu0 %v282_v1  ;;  %277 = vmatprep.mubr.bf16.mxu0 %v289_v4  ;;  %v288_v8 = vld [vmem:[%s358_s1] sm:$0xff]   ;;  %v290_v9 = vld [vmem:[%s359_s0 + $0x8] sm:$0xff]  }
   0x5   :  { %v230_v11 = vld [vmem:[%s360_s2] ss:$0 sm:$0xff] }
   0x6   :  { %v231_v14 = vld [vmem:[%s361_s3] ss:$0 sm:$0xff] }
   0x7   :  { %264 = vmatpush3.bf16.msra.mxu0 %v282_v1 }
   0x8   :  { %265 = vmatprep.subr.bf16.mxu0 %v283_v2 }
   0xb   :  { %266 = vmatpush3.bf16.msra.mxu0 %v283_v2 }
   0xc   :  { %267 = vmatprep.subr.bf16.mxu0 %v284_v3 }
   0xf   :  { %268 = vmatpush3.bf16.msra.mxu0 %v284_v3 }
  0x10   :  { %269 = vmatprep.subr.bf16.mxu0 %v285_v5 }
  0x13   :  { %270 = vmatpush3.bf16.msra.mxu0 %v285_v5 }
  0x14   :  { %271 = vmatprep.subr.bf16.mxu0 %v286_v6 }
  0x17   :  { %272 = vmatpush3.bf16.msra.mxu0 %v286_v6 }
  0x18   :  { %273 = vmatprep.subr.bf16.mxu0 %v287_v7 }
  0x1b   :  { %274 = vmatpush3.bf16.msra.mxu0 %v287_v7 }
  0x1c   :  { %275 = vmatprep.subr.bf16.mxu0 %v288_v8 }
  0x1f   :  { %276 = vmatpush3.bf16.msra.mxu0 %v288_v8 }
  0x22   :  { %278 = vmatmul.mubr.bf16.vlgmr.msra.gmra.mxu0 %v290_v9 }
  0xe2   :  { %v279_v10 = vpop.f32.mrf.mxu0 }
  0xe3   :  { %v183_v13 = vmul.f32 %v279_v10, %v230_v11 }
  0xe4   :  { %v144_v12 = vpop.f32.mrf.mxu0 }
  0xe5   :  { %v181_v16 = vmul.f32 %v230_v11, %v144_v12  ;;  %v194_v19 = vadd.f32 %v231_v14, %v183_v13 }
  0xe6   :  { %v280_v15 = vpop.f32.mrf.mxu0 }
  0xe7   :  { %v184_v17 = vmul.f32 %v280_v15, %v230_v11  ;;  %v192_v22 = vadd.f32 %v231_v14, %v181_v16 }
  0xe8   :  { %v147_v18 = vpop.f32.mrf.mxu0 }
  0xe9   :  { %v195_v20 = vadd.f32 %v231_v14, %v184_v17  ;;  %v182_v21 = vmul.f32 %v230_v11, %v147_v18 }
  0xeb   :  { %v248_v23 = vpack.c.bf16 %v195_v20, %v194_v19  ;;  %v193_v24 = vadd.f32 %v231_v14, %v182_v21 }
  0xed   :  { %250 = vst [vmem:[%s362_s4 + $0x8] sm:$0xff] %v248_v23   ;;  %v243_v25 = vpack.c.bf16 %v193_v24, %v192_v22 }
  0xef   :  { %244 = vst [vmem:[%s362_s4] sm:$0xff] %v243_v25  }

// kernel: modified_resnet_forward.33
= control target key start
LH: loop header
LB: loop body
LE: loop exit
PB: predicated region body
PF: predicated region fallthrough
CT: control target
= control target key end

     0   :  { %s397_s1 = inlined_call_operand.vmem [shape: bf16[128,128], index: 1, kind: input, shape index: {}]   ;;  %s398_s0 = inlined_call_operand.vmem [shape: bf16[32,128], index: 0, kind: input, shape index: {}]   ;;  %s399_s2 = inlined_call_operand.vmem [shape: f32[1,128], index: 2, kind: input, shape index: {}]   ;;  %s400_s3 = inlined_call_operand.vmem [shape: f32[1,128], index: 3, kind: input, shape index: {}]   ;;  %s401_s4 = inlined_call_operand.vmem [shape: bf16[32,128], index: 4, kind: input, shape index: {}]   ;;  %s402_s5 = inlined_call_operand.vmem [shape: bf16[32,128], index: 5, kind: output, shape index: {}]  }
   0x1   :  { %v309_v0 = vld [vmem:[%s397_s1 + $0x38] sm:$0xff]   ;;  %v310_v1 = vld [vmem:[%s397_s1 + $0x30] sm:$0xff]   ;;  %v311_v2 = vld [vmem:[%s397_s1 + $0x28] sm:$0xff]  }
   0x2   :  { %289 = vmatprep.subr.bf16.mxu0 %v309_v0  ;;  %v312_v3 = vld [vmem:[%s397_s1 + $0x20] sm:$0xff]   ;;  %v313_v5 = vld [vmem:[%s397_s1 + $0x18] sm:$0xff]   ;;  %v314_v6 = vld [vmem:[%s397_s1 + $0x10] sm:$0xff]  }
   0x3   :  { %290 = vmatpush3.bf16.msra.mxu0 %v309_v0  ;;  %v317_v4 = vld [vmem:[%s398_s0] sm:$0xff]   ;;  %v315_v7 = vld [vmem:[%s397_s1 + $0x8] sm:$0xff]  }
   0x4   :  { %291 = vmatprep.subr.bf16.mxu0 %v310_v1  ;;  %305 = vmatprep.mubr.bf16.mxu0 %v317_v4  ;;  %v316_v8 = vld [vmem:[%s397_s1] sm:$0xff]   ;;  %v318_v9 = vld [vmem:[%s398_s0 + $0x8] sm:$0xff]  }
   0x5   :  { %v249_v10 = vld [vmem:[%s399_s2] ss:$0 sm:$0xff]  ;;  %v277_v13 = vld [vmem:[%s401_s4 + $0x8] sm:$0xff]  }
   0x6   :  { %v250_v12 = vld [vmem:[%s400_s3] ss:$0 sm:$0xff]  ;;  %v265_v18 = vunpack.c.l.bf16 %v277_v13  ;;  %v266_v24 = vunpack.c.h.bf16 %v277_v13 }
   0x7   :  { %292 = vmatpush3.bf16.msra.mxu0 %v310_v1  ;;  %v260_v16 = vld [vmem:[%s401_s4] sm:$0xff]  }
   0x8   :  { %293 = vmatprep.subr.bf16.mxu0 %v311_v2  ;;  %v261_v22 = vunpack.c.l.bf16 %v260_v16  ;;  %v262_v29 = vunpack.c.h.bf16 %v260_v16 }
   0xb   :  { %294 = vmatpush3.bf16.msra.mxu0 %v311_v2 }
   0xc   :  { %295 = vmatprep.subr.bf16.mxu0 %v312_v3 }
   0xf   :  { %296 = vmatpush3.bf16.msra.mxu0 %v312_v3 }
  0x10   :  { %297 = vmatprep.subr.bf16.mxu0 %v313_v5 }
  0x13   :  { %298 = vmatpush3.bf16.msra.mxu0 %v313_v5 }
  0x14   :  { %299 = vmatprep.subr.bf16.mxu0 %v314_v6 }
  0x17   :  { %300 = vmatpush3.bf16.msra.mxu0 %v314_v6 }
  0x18   :  { %301 = vmatprep.subr.bf16.mxu0 %v315_v7 }
  0x1b   :  { %302 = vmatpush3.bf16.msra.mxu0 %v315_v7 }
  0x1c   :  { %303 = vmatprep.subr.bf16.mxu0 %v316_v8 }
  0x1f   :  { %304 = vmatpush3.bf16.msra.mxu0 %v316_v8 }
  0x22   :  { %306 = vmatmul.mubr.bf16.vlgmr.msra.gmra.mxu0 %v318_v9 }
  0xe2   :  { %v307_v11 = vpop.f32.mrf.mxu0 }
  0xe3   :  { %v186_v14 = vmul.f32 %v307_v11, %v249_v10 }
  0xe4   :  { %v147_v15 = vpop.f32.mrf.mxu0 }
  0xe5   :  { %v197_v17 = vadd.f32 %v250_v12, %v186_v14  ;;  %v184_v19 = vmul.f32 %v249_v10, %v147_v15 }
  0xe6   :  { %v308_v20 = vpop.f32.mrf.mxu0 }
  0xe7   :  { %v195_v21 = vadd.f32 %v250_v12, %v184_v19  ;;  %v187_v23 = vmul.f32 %v308_v20, %v249_v10  ;;  %v209_v26 = vadd.f32 %v265_v18, %v197_v17 }
  0xe8   :  { %v150_v25 = vpop.f32.mrf.mxu0 }
  0xe9   :  { %v198_v27 = vadd.f32 %v250_v12, %v187_v23  ;;  %v185_v28 = vmul.f32 %v249_v10, %v150_v25  ;;  %v207_v30 = vadd.f32 %v261_v22, %v195_v21  ;;  %v213_v33 = vmax.f32 %v209_v26, 0.0 }
  0xeb   :  { %v210_v31 = vadd.f32 %v266_v24, %v198_v27  ;;  %v196_v32 = vadd.f32 %v250_v12, %v185_v28  ;;  %v211_v36 = vmax.f32 %v207_v30, 0.0 }
  0xed   :  { %v214_v34 = vmax.f32 %v210_v31, 0.0  ;;  %v208_v35 = vadd.f32 %v262_v29, %v196_v32 }
  0xef   :  { %v275_v37 = vpack.c.bf16 %v214_v34, %v213_v33  ;;  %v212_v38 = vmax.f32 %v208_v35, 0.0 }
  0xf1   :  { %278 = vst [vmem:[%s402_s5 + $0x8] sm:$0xff] %v275_v37   ;;  %v270_v39 = vpack.c.bf16 %v212_v38, %v211_v36 }
  0xf3   :  { %271 = vst [vmem:[%s402_s5] sm:$0xff] %v270_v39  }

// kernel: modified_resnet_forward.34
= control target key start
LH: loop header
LB: loop body
LE: loop exit
PB: predicated region body
PF: predicated region fallthrough
CT: control target
= control target key end

     0   :  { %s362_s1 = inlined_call_operand.vmem [shape: bf16[128,128], index: 1, kind: input, shape index: {}]   ;;  %s363_s0 = inlined_call_operand.vmem [shape: bf16[32,128], index: 0, kind: input, shape index: {}]   ;;  %s364_s2 = inlined_call_operand.vmem [shape: f32[1,128], index: 2, kind: input, shape index: {}]   ;;  %s365_s3 = inlined_call_operand.vmem [shape: f32[1,128], index: 3, kind: input, shape index: {}]   ;;  %s366_s4 = inlined_call_operand.vmem [shape: bf16[32,128], index: 4, kind: output, shape index: {}]  }
   0x1   :  { %v285_v0 = vld [vmem:[%s362_s1 + $0x38] sm:$0xff]   ;;  %v286_v1 = vld [vmem:[%s362_s1 + $0x30] sm:$0xff]   ;;  %v287_v2 = vld [vmem:[%s362_s1 + $0x28] sm:$0xff]  }
   0x2   :  { %265 = vmatprep.subr.bf16.mxu0 %v285_v0  ;;  %v288_v3 = vld [vmem:[%s362_s1 + $0x20] sm:$0xff]   ;;  %v289_v5 = vld [vmem:[%s362_s1 + $0x18] sm:$0xff]   ;;  %v290_v6 = vld [vmem:[%s362_s1 + $0x10] sm:$0xff]  }
   0x3   :  { %266 = vmatpush3.bf16.msra.mxu0 %v285_v0  ;;  %v293_v4 = vld [vmem:[%s363_s0] sm:$0xff]   ;;  %v291_v7 = vld [vmem:[%s362_s1 + $0x8] sm:$0xff]  }
   0x4   :  { %267 = vmatprep.subr.bf16.mxu0 %v286_v1  ;;  %281 = vmatprep.mubr.bf16.mxu0 %v293_v4  ;;  %v292_v8 = vld [vmem:[%s362_s1] sm:$0xff]   ;;  %v294_v9 = vld [vmem:[%s363_s0 + $0x8] sm:$0xff]  }
   0x5   :  { %v234_v10 = vld [vmem:[%s364_s2] ss:$0 sm:$0xff] }
   0x6   :  { %v235_v13 = vld [vmem:[%s365_s3] ss:$0 sm:$0xff] }
   0x7   :  { %268 = vmatpush3.bf16.msra.mxu0 %v286_v1 }
   0x8   :  { %269 = vmatprep.subr.bf16.mxu0 %v287_v2 }
   0xb   :  { %270 = vmatpush3.bf16.msra.mxu0 %v287_v2 }
   0xc   :  { %271 = vmatprep.subr.bf16.mxu0 %v288_v3 }
   0xf   :  { %272 = vmatpush3.bf16.msra.mxu0 %v288_v3 }
  0x10   :  { %273 = vmatprep.subr.bf16.mxu0 %v289_v5 }
  0x13   :  { %274 = vmatpush3.bf16.msra.mxu0 %v289_v5 }
  0x14   :  { %275 = vmatprep.subr.bf16.mxu0 %v290_v6 }
  0x17   :  { %276 = vmatpush3.bf16.msra.mxu0 %v290_v6 }
  0x18   :  { %277 = vmatprep.subr.bf16.mxu0 %v291_v7 }
  0x1b   :  { %278 = vmatpush3.bf16.msra.mxu0 %v291_v7 }
  0x1c   :  { %279 = vmatprep.subr.bf16.mxu0 %v292_v8 }
  0x1f   :  { %280 = vmatpush3.bf16.msra.mxu0 %v292_v8 }
  0x22   :  { %282 = vmatmul.mubr.bf16.vlgmr.msra.gmra.mxu0 %v294_v9 }
  0xe2   :  { %v283_v11 = vpop.f32.mrf.mxu0 }
  0xe3   :  { %v183_v12 = vmul.f32 %v283_v11, %v234_v10 }
  0xe4   :  { %v144_v14 = vpop.f32.mrf.mxu0 }
  0xe5   :  { %v181_v15 = vmul.f32 %v234_v10, %v144_v14  ;;  %v194_v17 = vadd.f32 %v235_v13, %v183_v12 }
  0xe6   :  { %v284_v16 = vpop.f32.mrf.mxu0 }
  0xe7   :  { %v184_v18 = vmul.f32 %v284_v16, %v234_v10  ;;  %v192_v20 = vadd.f32 %v235_v13, %v181_v15  ;;  %v198_v23 = vmax.f32 %v194_v17, 0.0 }
  0xe8   :  { %v147_v19 = vpop.f32.mrf.mxu0 }
  0xe9   :  { %v195_v21 = vadd.f32 %v235_v13, %v184_v18  ;;  %v182_v22 = vmul.f32 %v234_v10, %v147_v19  ;;  %v196_v26 = vmax.f32 %v192_v20, 0.0 }
  0xeb   :  { %v199_v24 = vmax.f32 %v195_v21, 0.0  ;;  %v193_v25 = vadd.f32 %v235_v13, %v182_v22 }
  0xed   :  { %v252_v27 = vpack.c.bf16 %v199_v24, %v198_v23  ;;  %v197_v28 = vmax.f32 %v193_v25, 0.0 }
  0xef   :  { %254 = vst [vmem:[%s366_s4 + $0x8] sm:$0xff] %v252_v27   ;;  %v247_v29 = vpack.c.bf16 %v197_v28, %v196_v26 }
  0xf1   :  { %248 = vst [vmem:[%s366_s4] sm:$0xff] %v247_v29  }

// kernel: modified_resnet_forward.37
= control target key start
LH: loop header
LB: loop body
LE: loop exit
PB: predicated region body
PF: predicated region fallthrough
CT: control target
= control target key end

     0   :  { %v255_v0 = vmov 0.0   ;;  %vm256_vm0 = vmmov 0   ;;  %s326_s1 = inlined_call_operand.vmem [shape: bf16[128,128], index: 1, kind: input, shape index: {}]   ;;  %s327_s0 = inlined_call_operand.vmem [shape: bf16[16,128], index: 0, kind: input, shape index: {}]   ;;  %s328_s2 = inlined_call_operand.vmem [shape: f32[1,128], index: 2, kind: input, shape index: {}]   ;;  %s329_s3 = inlined_call_operand.vmem [shape: f32[1,128], index: 3, kind: input, shape index: {}]   ;;  %s330_s4 = inlined_call_operand.vmem [shape: bf16[16,128], index: 4, kind: input, shape index: {}]   ;;  %s331_s5 = inlined_call_operand.vmem [shape: bf16[16,128], index: 5, kind: output, shape index: {}]  }
   0x1   :  { %224 = vmatprep.subr.bf16.mxu0 %v255_v0  ;;  %v246_v1 = vld [vmem:[%s326_s1 + $0x38] sm:$0xff]   ;;  %240 = vmatprep.mubr.msk.bf16.mxu0 %vm256_vm0, %v255_v0  ;;  %v247_v2 = vld [vmem:[%s326_s1 + $0x30] sm:$0xff]   ;;  %v248_v3 = vld [vmem:[%s326_s1 + $0x28] sm:$0xff]  }
   0x2   :  { %225 = vmatpush3.bf16.msra.mxu0 %v246_v1  ;;  %v249_v4 = vld [vmem:[%s326_s1 + $0x20] sm:$0xff]   ;;  %v250_v5 = vld [vmem:[%s326_s1 + $0x18] sm:$0xff]   ;;  %v251_v6 = vld [vmem:[%s326_s1 + $0x10] sm:$0xff]  }
   0x3   :  { %226 = vmatprep.subr.bf16.mxu0 %v255_v0  ;;  %v252_v7 = vld [vmem:[%s326_s1 + $0x8] sm:$0xff]   ;;  %v253_v8 = vld [vmem:[%s326_s1] sm:$0xff]  }
   0x4   :  { %v254_v9 = vld [vmem:[%s327_s0] sm:$0xff]  }
   0x5   :  { %v200_v10 = vld [vmem:[%s328_s2] ss:$0 sm:$0xff] }
   0x6   :  { %227 = vmatpush3.bf16.msra.mxu0 %v247_v2  ;;  %v201_v12 = vld [vmem:[%s329_s3] ss:$0 sm:$0xff] }
   0x7   :  { %228 = vmatprep.subr.bf16.mxu0 %v255_v0  ;;  %v207_v13 = vld [vmem:[%s330_s4] sm:$0xff]  }
   0x8   :  { %v208_v17 = vunpack.c.l.bf16 %v207_v13  ;;  %v209_v20 = vunpack.c.h.bf16 %v207_v13 }
   0xa   :  { %229 = vmatpush3.bf16.msra.mxu0 %v248_v3 }
   0xb   :  { %230 = vmatprep.subr.bf16.mxu0 %v255_v0 }
   0xe   :  { %231 = vmatpush3.bf16.msra.mxu0 %v249_v4 }
   0xf   :  { %232 = vmatprep.subr.bf16.mxu0 %v255_v0 }
  0x12   :  { %233 = vmatpush3.bf16.msra.mxu0 %v250_v5 }
  0x13   :  { %234 = vmatprep.subr.bf16.mxu0 %v255_v0 }
  0x16   :  { %235 = vmatpush3.bf16.msra.mxu0 %v251_v6 }
  0x17   :  { %236 = vmatprep.subr.bf16.mxu0 %v255_v0 }
  0x1a   :  { %237 = vmatpush3.bf16.msra.mxu0 %v252_v7 }
  0x1b   :  { %238 = vmatprep.subr.bf16.mxu0 %v255_v0 }
  0x1e   :  { %239 = vmatpush3.bf16.msra.mxu0 %v253_v8 }
  0x21   :  { %241 = vmatmul.mubr.bf16.vlgmr.msra.gmra.mxu0 %v254_v9 }
  0xe1   :  { %v135_v11 = vpop.f32.mrf.mxu0 }
  0xe2   :  { %v158_v14 = vmul.f32 %v200_v10, %v135_v11 }
  0xe3   :  { %v242_v15 = vpop.f32.mrf.mxu0 }
  0xe4   :  { %v167_v16 = vadd.f32 %v201_v12, %v158_v14 }
  0xe5   :  { %v138_v18 = vpop.f32.mrf.mxu0 }
  0xe6   :  { %v159_v19 = vmul.f32 %v200_v10, %v138_v18  ;;  %v173_v22 = vadd.f32 %v208_v17, %v167_v16 }
  0xe7   :  { %v243_v21 = vpop.f32.mrf.mxu0 }
  0xe8   :  { %v168_v23 = vadd.f32 %v201_v12, %v159_v19  ;;  %v175_v25 = vmax.f32 %v173_v22, 0.0 }
  0xea   :  { %v174_v24 = vadd.f32 %v209_v20, %v168_v23 }
  0xec   :  { %v176_v26 = vmax.f32 %v174_v24, 0.0 }
  0xee   :  { %v213_v27 = vpack.c.bf16 %v176_v26, %v175_v25 }
  0xf0   :  { %214 = vst [vmem:[%s331_s5] sm:$0xff] %v213_v27  }

// kernel: modified_resnet_forward.35
= control target key start
LH: loop header
LB: loop body
LE: loop exit
PB: predicated region body
PF: predicated region fallthrough
CT: control target
= control target key end

     0   :  { %s693_s1 = inlined_call_operand.vmem [shape: bf16[384,128], index: 1, kind: input, shape index: {}]   ;;  %s694_s0 = inlined_call_operand.vmem [shape: bf16[32,384], index: 0, kind: input, shape index: {}]   ;;  %s695_s2 = inlined_call_operand.vmem [shape: f32[1,128], index: 2, kind: input, shape index: {}]   ;;  %s696_s3 = inlined_call_operand.vmem [shape: f32[1,128], index: 3, kind: input, shape index: {}]   ;;  %s697_s4 = inlined_call_operand.vmem [shape: bf16[32,128], index: 4, kind: output, shape index: {}]  }
   0x1   :  { %v534_v0 = vld [vmem:[%s693_s1 + $0x78] sm:$0xff]   ;;  %v537_v3 = vld [vmem:[%s693_s1 + $0x70] sm:$0xff]   ;;  %v540_v6 = vld [vmem:[%s693_s1 + $0x68] sm:$0xff]  }
   0x2   :  { %v535_v1 = vld [vmem:[%s693_s1 + $0x38] sm:$0xff]   ;;  %476 = vmatprep.subr.bf16.mxu0 %v534_v0  ;;  %v538_v4 = vld [vmem:[%s693_s1 + $0x30] sm:$0xff]   ;;  %v541_v7 = vld [vmem:[%s693_s1 + $0x28] sm:$0xff]  }
   0x3   :  { %v536_v2 = vld [vmem:[%s693_s1 + $0xb8] sm:$0xff]   ;;  %477 = vmatpush3.bf16.msra.mxu0 %v535_v1  ;;  %v539_v5 = vld [vmem:[%s693_s1 + $0xb0] sm:$0xff]   ;;  %v542_v8 = vld [vmem:[%s693_s1 + $0xa8] sm:$0xff]  }
   0x4   :  { %514 = vmatprep.subr.bf16.mxu1 %v536_v2  ;;  %478 = vmatprep.subr.bf16.mxu0 %v537_v3  ;;  %v543_v9 = vld [vmem:[%s693_s1 + $0x60] sm:$0xff]   ;;  %v546_v12 = vld [vmem:[%s693_s1 + $0x58] sm:$0xff]   ;;  %v549_v15 = vld [vmem:[%s693_s1 + $0x50] sm:$0xff]  }
   0x5   :  { %515 = vmatpush3.bf16.msra.mxu1 %v536_v2  ;;  %v544_v10 = vld [vmem:[%s693_s1 + $0x20] sm:$0xff]   ;;  %v548_v13 = vld [vmem:[%s693_s1 + $0x98] sm:$0xff]   ;;  %v551_v16 = vld [vmem:[%s693_s1 + $0x90] sm:$0xff]  }
   0x6   :  { %516 = vmatprep.subr.bf16.mxu1 %v539_v5  ;;  %v545_v11 = vld [vmem:[%s693_s1 + $0xa0] sm:$0xff]   ;;  %v547_v14 = vld [vmem:[%s693_s1 + $0x18] sm:$0xff]   ;;  %v550_v17 = vld [vmem:[%s693_s1 + $0x10] sm:$0xff]  }
   0x7   :  { %479 = vmatpush3.bf16.msra.mxu0 %v538_v4  ;;  %v552_v18 = vld [vmem:[%s693_s1 + $0x48] sm:$0xff]   ;;  %v555_v21 = vld [vmem:[%s693_s1 + $0x40] sm:$0xff]  }
   0x8   :  { %480 = vmatprep.subr.bf16.mxu0 %v540_v6  ;;  %v553_v19 = vld [vmem:[%s693_s1 + $0x8] sm:$0xff]   ;;  %v557_v22 = vld [vmem:[%s693_s1 + $0x80] sm:$0xff]  }
   0x9   :  { %517 = vmatpush3.bf16.msra.mxu1 %v539_v5  ;;  %v554_v20 = vld [vmem:[%s693_s1 + $0x88] sm:$0xff]   ;;  %v560_v23 = vld [vmem:[%s694_s0 + $0x4] ss:$12 sps:$4 sm:$0xff]   ;;  %v455_v36 = vld [vmem:[%s695_s2] ss:$0 sm:$0xff] }
   0xa   :  { %518 = vmatprep.subr.bf16.mxu1 %v542_v8  ;;  %v561_v24 = vld [vmem:[%s694_s0 + $0x8] ss:$12 sps:$4 sm:$0xff]   ;;  %v556_v25 = vld [vmem:[%s693_s1] sm:$0xff]   ;;  %294 = vmatprep.mubr.bf16.mxu0 %v560_v23 }
   0xb   :  { %481 = vmatpush3.bf16.msra.mxu0 %v541_v7  ;;  %530 = vmatprep.mubr.bf16.mxu1 %v561_v24  ;;  %v558_v26 = vld [vmem:[%s694_s0] ss:$12 sps:$4 sm:$0xff]   ;;  %v563_v27 = vld [vmem:[%s694_s0 + $0x1c] ss:$12 sps:$4 sm:$0xff]   ;;  %v565_v29 = vld [vmem:[%s694_s0 + $0x18] ss:$12 sps:$4 sm:$0xff]  }
   0xc   :  { %482 = vmatprep.subr.bf16.mxu0 %v543_v9  ;;  %v562_v28 = vld [vmem:[%s694_s0 + $0x20] ss:$12 sps:$4 sm:$0xff]  }
   0xd   :  { %519 = vmatpush3.bf16.msra.mxu1 %v542_v8  ;;  %v456_v42 = vld [vmem:[%s696_s3] ss:$0 sm:$0xff] }
   0xe   :  { %520 = vmatprep.subr.bf16.mxu1 %v545_v11 }
   0xf   :  { %483 = vmatpush3.bf16.msra.mxu0 %v544_v10 }
  0x10   :  { %484 = vmatprep.subr.bf16.mxu0 %v546_v12 }
  0x11   :  { %521 = vmatpush3.bf16.msra.mxu1 %v545_v11 }
  0x12   :  { %522 = vmatprep.subr.bf16.mxu1 %v548_v13 }
  0x13   :  { %485 = vmatpush3.bf16.msra.mxu0 %v547_v14 }
  0x14   :  { %486 = vmatprep.subr.bf16.mxu0 %v549_v15 }
  0x15   :  { %523 = vmatpush3.bf16.msra.mxu1 %v548_v13 }
  0x16   :  { %524 = vmatprep.subr.bf16.mxu1 %v551_v16 }
  0x17   :  { %487 = vmatpush3.bf16.msra.mxu0 %v550_v17 }
  0x18   :  { %488 = vmatprep.subr.bf16.mxu0 %v552_v18 }
  0x19   :  { %525 = vmatpush3.bf16.msra.mxu1 %v551_v16 }
  0x1a   :  { %526 = vmatprep.subr.bf16.mxu1 %v554_v20 }
  0x1b   :  { %489 = vmatpush3.bf16.msra.mxu0 %v553_v19 }
  0x1c   :  { %490 = vmatprep.subr.bf16.mxu0 %v555_v21 }
  0x1d   :  { %527 = vmatpush3.bf16.msra.mxu1 %v554_v20 }
  0x1e   :  { %528 = vmatprep.subr.bf16.mxu1 %v557_v22 }
  0x1f   :  { %491 = vmatpush3.bf16.msra.mxu0 %v556_v25 }
  0x21   :  { %529 = vmatpush3.bf16.msra.mxu1 %v557_v22 }
  0x22   :  { %295 = vmatmul.mubr.bf16.vlgmr.msra.gmra.mxu0 %v558_v26 }
  0x23   :  { %302 = vmatprep.mubr.bf16.mxu0 %v563_v27 }
  0x24   :  { %531 = vmatmul.mubr.bf16.vlgmr.msra.gmra.mxu1 %v562_v28 }
  0x2a   :  { %303 = vmatmul.mubr.bf16.gmra.mxu0 %v565_v29 }
  0xe2   :  { %v492_v30 = vpop.f32.mrf.mxu0 }
  0xe4   :  { %v493_v31 = vpop.f32.mrf.mxu0  ;;  %v532_v32 = vpop.f32.mrf.mxu1 }
  0xe5   :  { %v494_v33 = vadd.f32 %v493_v31, %v492_v30 }
  0xe6   :  { %v495_v34 = vpop.f32.mrf.mxu0  ;;  %v345_v35 = vpop.f32.mrf.mxu1 }
  0xe7   :  { %v346_v37 = vadd.f32 %v494_v33, %v345_v35 }
  0xe8   :  { %v496_v38 = vpop.f32.mrf.mxu0  ;;  %v533_v39 = vpop.f32.mrf.mxu1 }
  0xe9   :  { %v382_v40 = vmul.f32 %v455_v36, %v346_v37  ;;  %v497_v41 = vadd.f32 %v496_v38, %v495_v34 }
  0xea   :  { %v498_v43 = vpop.f32.mrf.mxu0  ;;  %v348_v44 = vpop.f32.mrf.mxu1 }
  0xeb   :  { %v349_v45 = vadd.f32 %v497_v41, %v348_v44  ;;  %v393_v47 = vadd.f32 %v456_v42, %v382_v40 }
  0xec   :  { %v499_v46 = vpop.f32.mrf.mxu0 }
  0xed   :  { %v383_v48 = vmul.f32 %v455_v36, %v349_v45  ;;  %v500_v49 = vadd.f32 %v499_v46, %v498_v43  ;;  %v397_v54 = vmax.f32 %v393_v47, 0.0 }
  0xee   :  { %v501_v50 = vpop.f32.mrf.mxu0 }
  0xef   :  { %v394_v51 = vadd.f32 %v456_v42, %v383_v48  ;;  %v354_v52 = vadd.f32 %v532_v32, %v500_v49 }
  0xf0   :  { %v502_v53 = vpop.f32.mrf.mxu0 }
  0xf1   :  { %v398_v55 = vmax.f32 %v394_v51, 0.0  ;;  %v384_v56 = vmul.f32 %v455_v36, %v354_v52  ;;  %v503_v57 = vadd.f32 %v502_v53, %v501_v50 }
  0xf3   :  { %v468_v58 = vpack.c.bf16 %v398_v55, %v397_v54  ;;  %v357_v59 = vadd.f32 %v533_v39, %v503_v57  ;;  %v395_v60 = vadd.f32 %v456_v42, %v384_v56 }
  0xf5   :  { %469 = vst [vmem:[%s697_s4] sm:$0xff] %v468_v58   ;;  %v385_v61 = vmul.f32 %v455_v36, %v357_v59  ;;  %v399_v63 = vmax.f32 %v395_v60, 0.0 }
  0xf7   :  { %v396_v62 = vadd.f32 %v456_v42, %v385_v61 }
  0xf9   :  { %v400_v0 = vmax.f32 %v396_v62, 0.0 }
  0xfb   :  { %v473_v1 = vpack.c.bf16 %v400_v0, %v399_v63 }
  0xfd   :  { %475 = vst [vmem:[%s697_s4 + $0x8] sm:$0xff] %v473_v1  }

// kernel: modified_resnet_forward.36
= control target key start
LH: loop header
LB: loop body
LE: loop exit
PB: predicated region body
PF: predicated region fallthrough
CT: control target
= control target key end

     0   :  { %v240_v0 = vmov 0.0   ;;  %vm241_vm0 = vmmov 0   ;;  %s303_s1 = inlined_call_operand.vmem [shape: bf16[128,128], index: 1, kind: input, shape index: {}]   ;;  %s304_s0 = inlined_call_operand.vmem [shape: bf16[16,128], index: 0, kind: input, shape index: {}]   ;;  %s305_s2 = inlined_call_operand.vmem [shape: f32[1,128], index: 2, kind: input, shape index: {}]   ;;  %s306_s3 = inlined_call_operand.vmem [shape: f32[1,128], index: 3, kind: input, shape index: {}]   ;;  %s307_s4 = inlined_call_operand.vmem [shape: bf16[16,128], index: 4, kind: output, shape index: {}]  }
   0x1   :  { %209 = vmatprep.subr.bf16.mxu0 %v240_v0  ;;  %v231_v1 = vld [vmem:[%s303_s1 + $0x38] sm:$0xff]   ;;  %225 = vmatprep.mubr.msk.bf16.mxu0 %vm241_vm0, %v240_v0  ;;  %v232_v2 = vld [vmem:[%s303_s1 + $0x30] sm:$0xff]   ;;  %v233_v3 = vld [vmem:[%s303_s1 + $0x28] sm:$0xff]  }
   0x2   :  { %210 = vmatpush3.bf16.msra.mxu0 %v231_v1  ;;  %v234_v4 = vld [vmem:[%s303_s1 + $0x20] sm:$0xff]   ;;  %v235_v5 = vld [vmem:[%s303_s1 + $0x18] sm:$0xff]   ;;  %v236_v6 = vld [vmem:[%s303_s1 + $0x10] sm:$0xff]  }
   0x3   :  { %211 = vmatprep.subr.bf16.mxu0 %v240_v0  ;;  %v237_v7 = vld [vmem:[%s303_s1 + $0x8] sm:$0xff]   ;;  %v238_v8 = vld [vmem:[%s303_s1] sm:$0xff]  }
   0x4   :  { %v239_v9 = vld [vmem:[%s304_s0] sm:$0xff]  }
   0x5   :  { %v189_v11 = vld [vmem:[%s305_s2] ss:$0 sm:$0xff] }
   0x6   :  { %212 = vmatpush3.bf16.msra.mxu0 %v232_v2  ;;  %v190_v14 = vld [vmem:[%s306_s3] ss:$0 sm:$0xff] }
   0x7   :  { %213 = vmatprep.subr.bf16.mxu0 %v240_v0 }
   0xa   :  { %214 = vmatpush3.bf16.msra.mxu0 %v233_v3 }
   0xb   :  { %215 = vmatprep.subr.bf16.mxu0 %v240_v0 }
   0xe   :  { %216 = vmatpush3.bf16.msra.mxu0 %v234_v4 }
   0xf   :  { %217 = vmatprep.subr.bf16.mxu0 %v240_v0 }
  0x12   :  { %218 = vmatpush3.bf16.msra.mxu0 %v235_v5 }
  0x13   :  { %219 = vmatprep.subr.bf16.mxu0 %v240_v0 }
  0x16   :  { %220 = vmatpush3.bf16.msra.mxu0 %v236_v6 }
  0x17   :  { %221 = vmatprep.subr.bf16.mxu0 %v240_v0 }
  0x1a   :  { %222 = vmatpush3.bf16.msra.mxu0 %v237_v7 }
  0x1b   :  { %223 = vmatprep.subr.bf16.mxu0 %v240_v0 }
  0x1e   :  { %224 = vmatpush3.bf16.msra.mxu0 %v238_v8 }
  0x21   :  { %226 = vmatmul.mubr.bf16.vlgmr.msra.gmra.mxu0 %v239_v9 }
  0xe1   :  { %v132_v10 = vpop.f32.mrf.mxu0 }
  0xe2   :  { %v155_v13 = vmul.f32 %v189_v11, %v132_v10 }
  0xe3   :  { %v227_v12 = vpop.f32.mrf.mxu0 }
  0xe4   :  { %v164_v18 = vadd.f32 %v190_v14, %v155_v13 }
  0xe5   :  { %v135_v15 = vpop.f32.mrf.mxu0 }
  0xe6   :  { %v156_v16 = vmul.f32 %v189_v11, %v135_v15 }
  0xe7   :  { %v228_v17 = vpop.f32.mrf.mxu0 }
  0xe8   :  { %v165_v19 = vadd.f32 %v190_v14, %v156_v16 }
  0xea   :  { %v198_v20 = vpack.c.bf16 %v165_v19, %v164_v18 }
  0xec   :  { %199 = vst [vmem:[%s307_s4] sm:$0xff] %v198_v20  }

// kernel: modified_resnet_forward.38
= control target key start
LH: loop header
LB: loop body
LE: loop exit
PB: predicated region body
PF: predicated region fallthrough
CT: control target
= control target key end

     0   :  { %v242_v0 = vmov 0.0   ;;  %vm243_vm0 = vmmov 0   ;;  %s305_s1 = inlined_call_operand.vmem [shape: bf16[128,128], index: 1, kind: input, shape index: {}]   ;;  %s306_s0 = inlined_call_operand.vmem [shape: bf16[16,128], index: 0, kind: input, shape index: {}]   ;;  %s307_s2 = inlined_call_operand.vmem [shape: f32[1,128], index: 2, kind: input, shape index: {}]   ;;  %s308_s3 = inlined_call_operand.vmem [shape: f32[1,128], index: 3, kind: input, shape index: {}]   ;;  %s309_s4 = inlined_call_operand.vmem [shape: bf16[16,128], index: 4, kind: output, shape index: {}]  }
   0x1   :  { %211 = vmatprep.subr.bf16.mxu0 %v242_v0  ;;  %v233_v1 = vld [vmem:[%s305_s1 + $0x38] sm:$0xff]   ;;  %227 = vmatprep.mubr.msk.bf16.mxu0 %vm243_vm0, %v242_v0  ;;  %v234_v2 = vld [vmem:[%s305_s1 + $0x30] sm:$0xff]   ;;  %v235_v3 = vld [vmem:[%s305_s1 + $0x28] sm:$0xff]  }
   0x2   :  { %212 = vmatpush3.bf16.msra.mxu0 %v233_v1  ;;  %v236_v4 = vld [vmem:[%s305_s1 + $0x20] sm:$0xff]   ;;  %v237_v5 = vld [vmem:[%s305_s1 + $0x18] sm:$0xff]   ;;  %v238_v6 = vld [vmem:[%s305_s1 + $0x10] sm:$0xff]  }
   0x3   :  { %213 = vmatprep.subr.bf16.mxu0 %v242_v0  ;;  %v239_v7 = vld [vmem:[%s305_s1 + $0x8] sm:$0xff]   ;;  %v240_v8 = vld [vmem:[%s305_s1] sm:$0xff]  }
   0x4   :  { %v241_v9 = vld [vmem:[%s306_s0] sm:$0xff]  }
   0x5   :  { %v191_v10 = vld [vmem:[%s307_s2] ss:$0 sm:$0xff] }
   0x6   :  { %214 = vmatpush3.bf16.msra.mxu0 %v234_v2  ;;  %v192_v13 = vld [vmem:[%s308_s3] ss:$0 sm:$0xff] }
   0x7   :  { %215 = vmatprep.subr.bf16.mxu0 %v242_v0 }
   0xa   :  { %216 = vmatpush3.bf16.msra.mxu0 %v235_v3 }
   0xb   :  { %217 = vmatprep.subr.bf16.mxu0 %v242_v0 }
   0xe   :  { %218 = vmatpush3.bf16.msra.mxu0 %v236_v4 }
   0xf   :  { %219 = vmatprep.subr.bf16.mxu0 %v242_v0 }
  0x12   :  { %220 = vmatpush3.bf16.msra.mxu0 %v237_v5 }
  0x13   :  { %221 = vmatprep.subr.bf16.mxu0 %v242_v0 }
  0x16   :  { %222 = vmatpush3.bf16.msra.mxu0 %v238_v6 }
  0x17   :  { %223 = vmatprep.subr.bf16.mxu0 %v242_v0 }
  0x1a   :  { %224 = vmatpush3.bf16.msra.mxu0 %v239_v7 }
  0x1b   :  { %225 = vmatprep.subr.bf16.mxu0 %v242_v0 }
  0x1e   :  { %226 = vmatpush3.bf16.msra.mxu0 %v240_v8 }
  0x21   :  { %228 = vmatmul.mubr.bf16.vlgmr.msra.gmra.mxu0 %v241_v9 }
  0xe1   :  { %v132_v11 = vpop.f32.mrf.mxu0 }
  0xe2   :  { %v155_v12 = vmul.f32 %v191_v10, %v132_v11 }
  0xe3   :  { %v229_v14 = vpop.f32.mrf.mxu0 }
  0xe4   :  { %v164_v16 = vadd.f32 %v192_v13, %v155_v12 }
  0xe5   :  { %v135_v15 = vpop.f32.mrf.mxu0 }
  0xe6   :  { %v156_v17 = vmul.f32 %v191_v10, %v135_v15  ;;  %v166_v20 = vmax.f32 %v164_v16, 0.0 }
  0xe7   :  { %v230_v18 = vpop.f32.mrf.mxu0 }
  0xe8   :  { %v165_v19 = vadd.f32 %v192_v13, %v156_v17 }
  0xea   :  { %v167_v21 = vmax.f32 %v165_v19, 0.0 }
  0xec   :  { %v200_v22 = vpack.c.bf16 %v167_v21, %v166_v20 }
  0xee   :  { %201 = vst [vmem:[%s309_s4] sm:$0xff] %v200_v22  }

// kernel: modified_resnet_forward.39
= control target key start
LH: loop header
LB: loop body
LE: loop exit
PB: predicated region body
PF: predicated region fallthrough
CT: control target
= control target key end

     0   :  { %s810_s15 = smov 0   ;;  %s812_s16 = smov 0   ;;  %s901_s0 = inlined_call_operand.vmem [shape: bf16[16,640], index: 0, kind: input, shape index: {}]   ;;  %s902_s1 = inlined_call_operand.vmem [shape: bf16[640,128], index: 1, kind: input, shape index: {}]   ;;  %s903_s2 = inlined_call_operand.vmem [shape: f32[1,128], index: 2, kind: input, shape index: {}]   ;;  %s904_s3 = inlined_call_operand.vmem [shape: f32[1,128], index: 3, kind: input, shape index: {}]   ;;  %s905_s4 = inlined_call_operand.vmem [shape: bf16[16,128], index: 4, kind: output, shape index: {}]  }
   0x1   :  { %s814_s17 = smov 0   ;;  %s816_s18 = smov 0  }
   0x2   :  { %s818_s19 = smov 0  }
   0x3 LB: > { %s26_s20 = sadd.s32 1, %s776_s18  ;;  %p49_p1 = scmp.ne.s32.totalorder %s768_s16, %s764_s15  ;;  %s780_s19 = sphi %s818_s19, %s14_s19   ;;  %s776_s18 = sphi %s816_s18, %s909_s18   ;;  %s772_s17 = sphi %s814_s17, %s908_s17   ;;  %s768_s16 = sphi %s812_s16, %s907_s16   ;;  %s764_s15 = sphi %s810_s15, %s906_s15  }
   0x4   : > { %p27_p0 = scmp.ge.s32.totalorder %s26_s20, 5  ;;  %p50_p2 = scmp.eq.s32.totalorder %s780_s19, 0 }
   0x5   : > { %s42_s22 = sadd.s32 1, %s768_s16  ;;  %p628_p5 = scmp.ge.s32.totalorder %s780_s19, 5 }
   0x6   : > { %s911_s20 = smov (%p27_p0, %s26_s20), 0  ;;  %p51_p3 = por %p50_p2, %p49_p1 }
   0x7   : > { %s38_s21 = ssub.s32 %s776_s18, %s911_s20  ;;  %195 = sbr.rel (%p628_p5) target bundleno = 17 (0x11), region = 24 }
   0x8   : > { %p40_p4 = scmp.eq.s32.totalorder %s38_s21, 0 }
   0xa   : > { %s845_s23 = scalar_select %p40_p4, %s768_s16, %s42_s22  }
   0xc   : > { %198 = sbr.rel (!%p51_p3) target bundleno = 17 (0x11), region = 28  ;;  %s200_s24 = sand.u32 (%p51_p3), 1, %s768_s16  }
   0xd   : > { %s630_s25 = sshll.u32 (%p51_p3), %s776_s18, 2  ;;  %s629_s26 = sshll.u32 (%p51_p3), %s200_s24, 3 }
   0xe   : > { %s207_s29 = scalar_lea.vmem (%p51_p3), %s901_s0, %s630_s25  ;;  %s202_s30 = scalar_lea.vmem (%p51_p3), [#allocation3], %s629_s26 }
   0xf   : > { %v224_v0 = vld [vmem:[%s207_s29] sm:$0xf] (%p51_p3)  ;;  %v226_v1 = vld [vmem:[%s207_s29 + $0x14] sm:$0xf] (%p51_p3) }
  0x10   : > { %225 = vst [vmem:[%s202_s30] sm:$0xf] (%p51_p3), %v224_v0  ;;  %227 = vst [vmem:[%s202_s30 + $0x4] sm:$0xf] (%p51_p3), %v226_v1 }
  0x11 PF: > { %p631_p6 = scmp.ge.s32.totalorder %s780_s19, 1  ;;  %p266_p7 = scmp.lt.s32.totalorder %s780_s19, 6 }
  0x13   : > { %p267_p8 = pnand %p631_p6, %p266_p7 }
  0x14   : > { %s273_s5 = sand.u32 (!%p267_p8), 1, %s764_s15   ;;  %s633_s6 = sshll.u32 (!%p267_p8), %s772_s17, 4 }
  0x15   : > { %270 = sbr.rel (%p267_p8) target bundleno = 282 (0x11a), region = 73  ;;  %s857_s7 = sshll.u32 (!%p267_p8), %s273_s5, 3 }
  0x16   : > { %p317_p9 = scmp.lt.s32.totalorder (!%p267_p8), %s633_s6, 79  ;;  %s275_s12 = scalar_lea.vmem (!%p267_p8), [#allocation3], %s857_s7 }
  0x17   : > { %p635_p10 = scmp.ne.s32.totalorder (!%p267_p8), %s772_s17, 0 }
  0x1a   : > { %s913_s6 = smov (!%p317_p9, %s633_s6), 79  ;;  %344 = sbr.rel (%p635_p10) target bundleno = 33 (0x21), region = 81 }
  0x1b   : > { %s634_s8 = sshll.u32 %s913_s6, 2 }
  0x1c   : > { %s862_s11 = scalar_lea.vmem %s902_s1, %s634_s8 }
  0x1f   : > { %v782_v2 = vmov 0.0  }
  0x20   : > { %345 = vst [vmem:[#allocation2] sm:$0xff] %v782_v2  ;;  %346 = vst [vmem:[#allocation2 + $0x8] sm:$0xff] %v782_v2 }
  0x21 PF: > { %v733_v3 = vld [vmem:[%s862_s11 + $0x38] sm:$0xff]   ;;  %v783_v4 = vmov 0.0   ;;  %v734_v5 = vld [vmem:[%s862_s11 + $0x30] sm:$0xff]   ;;  %vm784_vm0 = vmmov 0   ;;  %v735_v6 = vld [vmem:[%s862_s11 + $0x28] sm:$0xff]   ;;  %p645_p11 = scmp.ne.s32.totalorder %s772_s17, 4 }
  0x22   : > { %670 = vmatprep.subr.bf16.mxu0 %v783_v4  ;;  %686 = vmatprep.mubr.msk.bf16.mxu0 %vm784_vm0, %v783_v4  ;;  %v736_v7 = vld [vmem:[%s862_s11 + $0x20] sm:$0xff]   ;;  %v737_v8 = vld [vmem:[%s862_s11 + $0x18] sm:$0xff]   ;;  %v738_v9 = vld [vmem:[%s862_s11 + $0x10] sm:$0xff]  }
  0x23   : > { %671 = vmatpush3.bf16.msra.mxu0 %v733_v3  ;;  %v739_v10 = vld [vmem:[%s862_s11 + $0x8] sm:$0xff]   ;;  %v740_v11 = vld [vmem:[%s862_s11] sm:$0xff]   ;;  %v741_v12 = vld [vmem:[%s275_s12] sm:$0xff]  }
  0x24   : > { %672 = vmatprep.subr.bf16.mxu0 %v783_v4 }
  0x27   : > { %673 = vmatpush3.bf16.msra.mxu0 %v734_v5  ;;  %v347_v13 = vld [vmem:[#allocation2] sm:$0xff]  ;;  %v348_v17 = vld [vmem:[#allocation2 + $0x8] sm:$0xff] }
  0x28   : > { %674 = vmatprep.subr.bf16.mxu0 %v783_v4 }
  0x2b   : > { %675 = vmatpush3.bf16.msra.mxu0 %v735_v6 }
  0x2c   : > { %676 = vmatprep.subr.bf16.mxu0 %v783_v4 }
  0x2f   : > { %677 = vmatpush3.bf16.msra.mxu0 %v736_v7 }
  0x30   : > { %678 = vmatprep.subr.bf16.mxu0 %v783_v4 }
  0x33   : > { %679 = vmatpush3.bf16.msra.mxu0 %v737_v8 }
  0x34   : > { %680 = vmatprep.subr.bf16.mxu0 %v783_v4 }
  0x37   : > { %681 = vmatpush3.bf16.msra.mxu0 %v738_v9 }
  0x38   : > { %682 = vmatprep.subr.bf16.mxu0 %v783_v4 }
  0x3b   : > { %683 = vmatpush3.bf16.msra.mxu0 %v739_v10 }
  0x3c   : > { %684 = vmatprep.subr.bf16.mxu0 %v783_v4 }
  0x3f   : > { %685 = vmatpush3.bf16.msra.mxu0 %v740_v11 }
  0x42   : > { %687 = vmatmul.mubr.bf16.vlgmr.msra.gmra.mxu0 %v741_v12 }
 0x102   : > { %v455_v14 = vpop.f32.mrf.mxu0 }
 0x103   : > { %v462_v15 = vadd.f32 %v455_v14, %v347_v13 }
 0x104   : > { %v688_v16 = vpop.f32.mrf.mxu0 }
 0x105   : > { %464 = vst [vmem:[#allocation2] sm:$0xff] %v462_v15  ;;  %469 = sbr.rel (%p645_p11) target bundleno = 282 (0x11a), region = 85 }
 0x106   : > { %v458_v18 = vpop.f32.mrf.mxu0 }
 0x107   : > { %v463_v19 = vadd.f32 %v458_v18, %v348_v17 }
 0x108   : > { %v689_v20 = vpop.f32.mrf.mxu0 }
 0x109   : > { %465 = vst [vmem:[#allocation2 + $0x8] sm:$0xff] %v463_v19 }
 0x10a   : > { %v646_v23 = vld [vmem:[%s903_s2] ss:$0 sm:$0xff] }
 0x10b   : > { %v647_v26 = vld [vmem:[%s904_s3] ss:$0 sm:$0xff] }
 0x10c   : > { %v470_v21 = vld [vmem:[#allocation2] sm:$0xff] }
 0x10d   : > { %v479_v24 = vmul.f32 %v646_v23, %v470_v21 }
 0x10f   : > { %v488_v27 = vadd.f32 %v647_v26, %v479_v24 }
 0x110   : > { %v471_v22 = vld [vmem:[#allocation2 + $0x8] sm:$0xff] }
 0x111   : > { %v480_v25 = vmul.f32 %v646_v23, %v471_v22  ;;  %v490_v29 = vmax.f32 %v488_v27, 0.0 }
 0x113   : > { %v489_v28 = vadd.f32 %v647_v26, %v480_v25 }
 0x115   : > { %v491_v30 = vmax.f32 %v489_v28, 0.0 }
 0x117   : > { %v659_v31 = vpack.c.bf16 %v491_v30, %v490_v29 }
 0x119   : > { %660 = vst [vmem:[%s905_s4] sm:$0xff] %v659_v31  }
 0x11a PF: > { %s14_s19 = sadd.s32 1, %s780_s19   ;;  %s906_s15 = smov %s768_s16 }
 0x11b   : > { %p11_p12 = scmp.ge.s32.totalorder %s14_s19, 7   ;;  %s907_s16 = smov %s845_s23 }
 0x11c   : > { %s908_s17 = smov %s776_s18  ;;  %s909_s18 = smov %s911_s20 }
 0x11d   :  { %13 = sbr.rel (!%p11_p12) target bundleno = 3 (0x3), region = 129 }

// kernel: modified_resnet_forward.40
= control target key start
LH: loop header
LB: loop body
LE: loop exit
PB: predicated region body
PF: predicated region fallthrough
CT: control target
= control target key end

     0   :  { %v289_v1 = vmov 0   ;;  %v194_v18 = vlaneseq  ;;  %s378_s1 = inlined_call_operand.vmem [shape: bf16[128,256], index: 1, kind: input, shape index: {}]   ;;  %s379_s0 = inlined_call_operand.vmem [shape: bf16[16,128], index: 0, kind: input, shape index: {}]   ;;  %s380_s2 = inlined_call_operand.vmem [shape: f32[1,256], index: 2, kind: input, shape index: {}]   ;;  %s381_s3 = inlined_call_operand.vmem [shape: f32[1,256], index: 3, kind: input, shape index: {}]   ;;  %s382_s4 = inlined_call_operand.vmem [shape: bf16[16,256], index: 4, kind: output, shape index: {}]  }
   0x1   :  { %v264_v0 = vld [vmem:[%s378_s1 + $0x74] ss:$8 sps:$4 sm:$0xff]   ;;  %166 = vmatprep.mubr.bf16.mxu0 %v289_v1  ;;  %v266_v2 = vld [vmem:[%s378_s1 + $0x70] ss:$8 sps:$4 sm:$0xff]   ;;  %v267_v3 = vld [vmem:[%s378_s1 + $0x64] ss:$8 sps:$4 sm:$0xff]  }
   0x2   :  { %134 = vmatprep.subr.bf16.mxu0 %v264_v0  ;;  %v269_v4 = vld [vmem:[%s378_s1 + $0x60] ss:$8 sps:$4 sm:$0xff]   ;;  %v270_v5 = vld [vmem:[%s378_s1 + $0x54] ss:$8 sps:$4 sm:$0xff]   ;;  %v272_v6 = vld [vmem:[%s378_s1 + $0x50] ss:$8 sps:$4 sm:$0xff]  }
   0x3   :  { %135 = vmatpush1.bf16.msra.mxu0 %v266_v2  ;;  %v273_v7 = vld [vmem:[%s378_s1 + $0x44] ss:$8 sps:$4 sm:$0xff]   ;;  %v275_v8 = vld [vmem:[%s378_s1 + $0x40] ss:$8 sps:$4 sm:$0xff]   ;;  %v276_v9 = vld [vmem:[%s378_s1 + $0x34] ss:$8 sps:$4 sm:$0xff]  }
   0x4   :  { %136 = vmatprep.subr.bf16.mxu0 %v267_v3  ;;  %v278_v10 = vld [vmem:[%s378_s1 + $0x30] ss:$8 sps:$4 sm:$0xff]   ;;  %v279_v11 = vld [vmem:[%s378_s1 + $0x24] ss:$8 sps:$4 sm:$0xff]   ;;  %v281_v12 = vld [vmem:[%s378_s1 + $0x20] ss:$8 sps:$4 sm:$0xff]  }
   0x5   :  { %v282_v13 = vld [vmem:[%s378_s1 + $0x14] ss:$8 sps:$4 sm:$0xff]   ;;  %v284_v14 = vld [vmem:[%s378_s1 + $0x10] ss:$8 sps:$4 sm:$0xff]   ;;  %v285_v15 = vld [vmem:[%s378_s1 + $0x4] ss:$8 sps:$4 sm:$0xff]  }
   0x6   :  { %v287_v16 = vld [vmem:[%s378_s1] ss:$8 sps:$4 sm:$0xff]   ;;  %v195_v19 = vshrl.u32 %v194_v18, 7 }
   0x7   :  { %137 = vmatpush1.bf16.msra.mxu0 %v269_v4  ;;  %v288_v17 = vld [vmem:[%s379_s0] sm:$0xff]  }
   0x8   :  { %138 = vmatprep.subr.bf16.mxu0 %v270_v5  ;;  %v196_v20 = vsub.s32 0, %v195_v19  ;;  %v192_v21 = vld [vmem:[%s380_s2] sm:$0x3]  ;;  %v200_v22 = vsub.s32 1, %v195_v19 }
   0x9   :  { %v208_v24 = vld [vmem:[%s381_s3] sm:$0x3] }
   0xa   :  { %v197_v23 = vrot.slane %v192_v21, %v196_v20  ;;  %v201_v25 = vrot.slane %v192_v21, %v200_v22  ;;  %v213_v28 = vrot.slane %v208_v24, %v196_v20  ;;  %v217_v29 = vrot.slane %v208_v24, %v200_v22 }
   0xb   :  { %139 = vmatpush1.bf16.msra.mxu0 %v272_v6 }
   0xc   :  { %140 = vmatprep.subr.bf16.mxu0 %v273_v7 }
   0xf   :  { %141 = vmatpush1.bf16.msra.mxu0 %v275_v8 }
  0x10   :  { %142 = vmatprep.subr.bf16.mxu0 %v276_v9 }
  0x13   :  { %143 = vmatpush1.bf16.msra.mxu0 %v278_v10 }
  0x14   :  { %144 = vmatprep.subr.bf16.mxu0 %v279_v11 }
  0x17   :  { %145 = vmatpush1.bf16.msra.mxu0 %v281_v12 }
  0x18   :  { %146 = vmatprep.subr.bf16.mxu0 %v282_v13 }
  0x1b   :  { %147 = vmatpush1.bf16.msra.mxu0 %v284_v14 }
  0x1c   :  { %148 = vmatprep.subr.bf16.mxu0 %v285_v15 }
  0x1f   :  { %149 = vmatpush1.bf16.msra.mxu0 %v287_v16 }
  0x22   :  { %167 = vmatmul.mubr.bf16.vlgmr.msra.gmra.mxu0 %v288_v17 }
  0xe2   :  { %v168_v26 = vpop.f32.mrf.mxu0 }
  0xe3   :  { %v204_v27 = vmul.f32 %v197_v23, %v168_v26 }
  0xe4   :  { %v170_v30 = vpop.f32.mrf.mxu0 }
  0xe5   :  { %v205_v31 = vmul.f32 %v201_v25, %v170_v30  ;;  %v220_v33 = vadd.f32 %v213_v28, %v204_v27 }
  0xe6   :  { %v172_v32 = vpop.f32.mrf.mxu0 }
  0xe7   :  { %v221_v34 = vadd.f32 %v217_v29, %v205_v31  ;;  %v206_v35 = vmul.f32 %v197_v23, %v172_v32 }
  0xe8   :  { %v174_v36 = vpop.f32.mrf.mxu0 }
  0xe9   :  { %v261_v37 = vpack.c.bf16 %v221_v34, %v220_v33  ;;  %v207_v38 = vmul.f32 %v201_v25, %v174_v36  ;;  %v222_v39 = vadd.f32 %v213_v28, %v206_v35 }
  0xeb   :  { %236 = vst [vmem:[%s382_s4] sm:$0xff] %v261_v37  ;;  %v223_v40 = vadd.f32 %v217_v29, %v207_v38 }
  0xed   :  { %v262_v41 = vpack.c.bf16 %v223_v40, %v222_v39 }
  0xef   :  { %237 = vst [vmem:[%s382_s4 + $0x8] sm:$0xff] %v262_v41 }

// kernel: modified_resnet_forward.41
= control target key start
LH: loop header
LB: loop body
LE: loop exit
PB: predicated region body
PF: predicated region fallthrough
CT: control target
= control target key end

     0   :  { %v306_v1 = vmov 0   ;;  %v197_v18 = vlaneseq  ;;  %s406_s1 = inlined_call_operand.vmem [shape: bf16[128,256], index: 1, kind: input, shape index: {}]   ;;  %s407_s0 = inlined_call_operand.vmem [shape: bf16[16,128], index: 0, kind: input, shape index: {}]   ;;  %s408_s2 = inlined_call_operand.vmem [shape: f32[1,256], index: 2, kind: input, shape index: {}]   ;;  %s409_s3 = inlined_call_operand.vmem [shape: f32[1,256], index: 3, kind: input, shape index: {}]   ;;  %s410_s4 = inlined_call_operand.vmem [shape: bf16[16,256], index: 4, kind: input, shape index: {}]   ;;  %s411_s5 = inlined_call_operand.vmem [shape: bf16[16,256], index: 5, kind: output, shape index: {}]  }
   0x1   :  { %v281_v0 = vld [vmem:[%s406_s1 + $0x74] ss:$8 sps:$4 sm:$0xff]   ;;  %169 = vmatprep.mubr.bf16.mxu0 %v306_v1  ;;  %v283_v2 = vld [vmem:[%s406_s1 + $0x70] ss:$8 sps:$4 sm:$0xff]   ;;  %v284_v3 = vld [vmem:[%s406_s1 + $0x64] ss:$8 sps:$4 sm:$0xff]  }
   0x2   :  { %137 = vmatprep.subr.bf16.mxu0 %v281_v0  ;;  %v286_v4 = vld [vmem:[%s406_s1 + $0x60] ss:$8 sps:$4 sm:$0xff]   ;;  %v287_v5 = vld [vmem:[%s406_s1 + $0x54] ss:$8 sps:$4 sm:$0xff]   ;;  %v289_v6 = vld [vmem:[%s406_s1 + $0x50] ss:$8 sps:$4 sm:$0xff]  }
   0x3   :  { %138 = vmatpush1.bf16.msra.mxu0 %v283_v2  ;;  %v290_v7 = vld [vmem:[%s406_s1 + $0x44] ss:$8 sps:$4 sm:$0xff]   ;;  %v292_v8 = vld [vmem:[%s406_s1 + $0x40] ss:$8 sps:$4 sm:$0xff]   ;;  %v293_v9 = vld [vmem:[%s406_s1 + $0x34] ss:$8 sps:$4 sm:$0xff]  }
   0x4   :  { %139 = vmatprep.subr.bf16.mxu0 %v284_v3  ;;  %v295_v10 = vld [vmem:[%s406_s1 + $0x30] ss:$8 sps:$4 sm:$0xff]   ;;  %v296_v11 = vld [vmem:[%s406_s1 + $0x24] ss:$8 sps:$4 sm:$0xff]   ;;  %v298_v12 = vld [vmem:[%s406_s1 + $0x20] ss:$8 sps:$4 sm:$0xff]  }
   0x5   :  { %v299_v13 = vld [vmem:[%s406_s1 + $0x14] ss:$8 sps:$4 sm:$0xff]   ;;  %v301_v14 = vld [vmem:[%s406_s1 + $0x10] ss:$8 sps:$4 sm:$0xff]   ;;  %v302_v15 = vld [vmem:[%s406_s1 + $0x4] ss:$8 sps:$4 sm:$0xff]  }
   0x6   :  { %v304_v16 = vld [vmem:[%s406_s1] ss:$8 sps:$4 sm:$0xff]   ;;  %v198_v19 = vshrl.u32 %v197_v18, 7 }
   0x7   :  { %140 = vmatpush1.bf16.msra.mxu0 %v286_v4  ;;  %v305_v17 = vld [vmem:[%s407_s0] sm:$0xff]   ;;  %v228_v33 = vld [vmem:[%s410_s4 + $0x8] sm:$0xff] }
   0x8   :  { %141 = vmatprep.subr.bf16.mxu0 %v287_v5  ;;  %v199_v20 = vsub.s32 0, %v198_v19  ;;  %v195_v21 = vld [vmem:[%s408_s2] sm:$0x3]  ;;  %v203_v22 = vsub.s32 1, %v198_v19  ;;  %v231_v41 = vunpack.c.l.bf16 %v228_v33  ;;  %v232_v46 = vunpack.c.h.bf16 %v228_v33 }
   0x9   :  { %v211_v23 = vld [vmem:[%s409_s3] sm:$0x3] }
   0xa   :  { %v200_v24 = vrot.slane %v195_v21, %v199_v20  ;;  %v227_v25 = vld [vmem:[%s410_s4] sm:$0xff]  ;;  %v216_v26 = vrot.slane %v211_v23, %v199_v20  ;;  %v204_v27 = vrot.slane %v195_v21, %v203_v22  ;;  %v220_v31 = vrot.slane %v211_v23, %v203_v22 }
   0xb   :  { %142 = vmatpush1.bf16.msra.mxu0 %v289_v6  ;;  %v229_v30 = vunpack.c.l.bf16 %v227_v25  ;;  %v230_v36 = vunpack.c.h.bf16 %v227_v25 }
   0xc   :  { %143 = vmatprep.subr.bf16.mxu0 %v290_v7 }
   0xf   :  { %144 = vmatpush1.bf16.msra.mxu0 %v292_v8 }
  0x10   :  { %145 = vmatprep.subr.bf16.mxu0 %v293_v9 }
  0x13   :  { %146 = vmatpush1.bf16.msra.mxu0 %v295_v10 }
  0x14   :  { %147 = vmatprep.subr.bf16.mxu0 %v296_v11 }
  0x17   :  { %148 = vmatpush1.bf16.msra.mxu0 %v298_v12 }
  0x18   :  { %149 = vmatprep.subr.bf16.mxu0 %v299_v13 }
  0x1b   :  { %150 = vmatpush1.bf16.msra.mxu0 %v301_v14 }
  0x1c   :  { %151 = vmatprep.subr.bf16.mxu0 %v302_v15 }
  0x1f   :  { %152 = vmatpush1.bf16.msra.mxu0 %v304_v16 }
  0x22   :  { %170 = vmatmul.mubr.bf16.vlgmr.msra.gmra.mxu0 %v305_v17 }
  0xe2   :  { %v171_v28 = vpop.f32.mrf.mxu0 }
  0xe3   :  { %v207_v29 = vmul.f32 %v200_v24, %v171_v28 }
  0xe4   :  { %v173_v32 = vpop.f32.mrf.mxu0 }
  0xe5   :  { %v223_v34 = vadd.f32 %v216_v26, %v207_v29  ;;  %v208_v35 = vmul.f32 %v204_v27, %v173_v32 }
  0xe6   :  { %v175_v37 = vpop.f32.mrf.mxu0 }
  0xe7   :  { %v233_v38 = vadd.f32 %v229_v30, %v223_v34  ;;  %v224_v39 = vadd.f32 %v220_v31, %v208_v35  ;;  %v209_v40 = vmul.f32 %v200_v24, %v175_v37 }
  0xe8   :  { %v177_v42 = vpop.f32.mrf.mxu0 }
  0xe9   :  { %v234_v43 = vadd.f32 %v230_v36, %v224_v39  ;;  %v225_v44 = vadd.f32 %v216_v26, %v209_v40  ;;  %v210_v45 = vmul.f32 %v204_v27, %v177_v42  ;;  %v237_v47 = vmax.f32 %v233_v38, 0.0 }
  0xeb   :  { %v238_v48 = vmax.f32 %v234_v43, 0.0  ;;  %v235_v49 = vadd.f32 %v231_v41, %v225_v44  ;;  %v226_v50 = vadd.f32 %v220_v31, %v210_v45 }
  0xed   :  { %v278_v51 = vpack.c.bf16 %v238_v48, %v237_v47  ;;  %v236_v52 = vadd.f32 %v232_v46, %v226_v50  ;;  %v239_v53 = vmax.f32 %v235_v49, 0.0 }
  0xef   :  { %253 = vst [vmem:[%s411_s5] sm:$0xff] %v278_v51  ;;  %v240_v54 = vmax.f32 %v236_v52, 0.0 }
  0xf1   :  { %v279_v55 = vpack.c.bf16 %v240_v54, %v239_v53 }
  0xf3   :  { %254 = vst [vmem:[%s411_s5 + $0x8] sm:$0xff] %v279_v55 }

// kernel: modified_resnet_forward.42
= control target key start
LH: loop header
LB: loop body
LE: loop exit
PB: predicated region body
PF: predicated region fallthrough
CT: control target
= control target key end

     0   :  { %s1052_s1 = inlined_call_operand.vmem [shape: bf16[256,512], index: 1, kind: input, shape index: {}]   ;;  %s1053_s0 = inlined_call_operand.vmem [shape: bf16[16,256], index: 0, kind: input, shape index: {}]   ;;  %s1054_s2 = inlined_call_operand.vmem [shape: f32[1,512], index: 2, kind: input, shape index: {}]   ;;  %s1055_s3 = inlined_call_operand.vmem [shape: f32[1,512], index: 3, kind: input, shape index: {}]   ;;  %s1056_s4 = inlined_call_operand.vmem [shape: bf16[16,512], index: 4, kind: output, shape index: {}]  }
   0x1   :  { %v712_v0 = vld [vmem:[%s1052_s1 + $0xe4] ss:$16 sps:$4 sm:$0xff]   ;;  %v714_v1 = vld [vmem:[%s1052_s1 + $0xec] ss:$16 sps:$4 sm:$0xff]   ;;  %v716_v2 = vld [vmem:[%s1052_s1 + $0xe0] ss:$16 sps:$4 sm:$0xff]  }
   0x2   :  { %433 = vmatprep.subr.bf16.mxu0 %v712_v0  ;;  %v717_v3 = vld [vmem:[%s1052_s1 + $0xe8] ss:$16 sps:$4 sm:$0xff]   ;;  %476 = vmatprep.subr.bf16.mxu1 %v714_v1  ;;  %v718_v4 = vld [vmem:[%s1052_s1 + $0xc4] ss:$16 sps:$4 sm:$0xff]   ;;  %v720_v5 = vld [vmem:[%s1052_s1 + $0xcc] ss:$16 sps:$4 sm:$0xff]  }
   0x3   :  { %434 = vmatpush1.bf16.msra.mxu0 %v716_v2  ;;  %477 = vmatpush1.bf16.msra.mxu1 %v717_v3  ;;  %v722_v6 = vld [vmem:[%s1052_s1 + $0xc0] ss:$16 sps:$4 sm:$0xff]   ;;  %v723_v7 = vld [vmem:[%s1052_s1 + $0xc8] ss:$16 sps:$4 sm:$0xff]   ;;  %v724_v8 = vld [vmem:[%s1052_s1 + $0xa4] ss:$16 sps:$4 sm:$0xff]   ;;  %v548_v2 = vlaneseq }
   0x4   :  { %435 = vmatprep.subr.bf16.mxu0 %v718_v4  ;;  %478 = vmatprep.subr.bf16.mxu1 %v720_v5  ;;  %v726_v9 = vld [vmem:[%s1052_s1 + $0xac] ss:$16 sps:$4 sm:$0xff]   ;;  %v728_v10 = vld [vmem:[%s1052_s1 + $0xa0] ss:$16 sps:$4 sm:$0xff]   ;;  %v729_v11 = vld [vmem:[%s1052_s1 + $0xa8] ss:$16 sps:$4 sm:$0xff]  }
   0x5   :  { %v730_v12 = vld [vmem:[%s1052_s1 + $0x84] ss:$16 sps:$4 sm:$0xff]   ;;  %v732_v13 = vld [vmem:[%s1052_s1 + $0x8c] ss:$16 sps:$4 sm:$0xff]   ;;  %v734_v14 = vld [vmem:[%s1052_s1 + $0x80] ss:$16 sps:$4 sm:$0xff]  }
   0x6   :  { %v735_v15 = vld [vmem:[%s1052_s1 + $0x88] ss:$16 sps:$4 sm:$0xff]   ;;  %v736_v16 = vld [vmem:[%s1052_s1 + $0x64] ss:$16 sps:$4 sm:$0xff]   ;;  %v738_v17 = vld [vmem:[%s1052_s1 + $0x6c] ss:$16 sps:$4 sm:$0xff]  }
   0x7   :  { %436 = vmatpush1.bf16.msra.mxu0 %v722_v6  ;;  %479 = vmatpush1.bf16.msra.mxu1 %v723_v7  ;;  %v740_v18 = vld [vmem:[%s1052_s1 + $0x60] ss:$16 sps:$4 sm:$0xff]   ;;  %v741_v19 = vld [vmem:[%s1052_s1 + $0x68] ss:$16 sps:$4 sm:$0xff]   ;;  %v742_v20 = vld [vmem:[%s1052_s1 + $0x44] ss:$16 sps:$4 sm:$0xff]  }
   0x8   :  { %437 = vmatprep.subr.bf16.mxu0 %v724_v8  ;;  %480 = vmatprep.subr.bf16.mxu1 %v726_v9  ;;  %v744_v21 = vld [vmem:[%s1052_s1 + $0x4c] ss:$16 sps:$4 sm:$0xff]   ;;  %v746_v22 = vld [vmem:[%s1052_s1 + $0x40] ss:$16 sps:$4 sm:$0xff]   ;;  %v747_v23 = vld [vmem:[%s1052_s1 + $0x48] ss:$16 sps:$4 sm:$0xff]  }
   0x9   :  { %v748_v24 = vld [vmem:[%s1052_s1 + $0x24] ss:$16 sps:$4 sm:$0xff]   ;;  %v750_v25 = vld [vmem:[%s1052_s1 + $0x2c] ss:$16 sps:$4 sm:$0xff]   ;;  %v752_v26 = vld [vmem:[%s1052_s1 + $0x20] ss:$16 sps:$4 sm:$0xff]  }
   0xa   :  { %v753_v27 = vld [vmem:[%s1052_s1 + $0x28] ss:$16 sps:$4 sm:$0xff]   ;;  %v754_v28 = vld [vmem:[%s1052_s1 + $0x4] ss:$16 sps:$4 sm:$0xff]   ;;  %v756_v29 = vld [vmem:[%s1052_s1 + $0xc] ss:$16 sps:$4 sm:$0xff]  }
   0xb   :  { %438 = vmatpush1.bf16.msra.mxu0 %v728_v10  ;;  %481 = vmatpush1.bf16.msra.mxu1 %v729_v11  ;;  %v758_v30 = vld [vmem:[%s1052_s1] ss:$16 sps:$4 sm:$0xff]   ;;  %v759_v31 = vld [vmem:[%s1052_s1 + $0x8] ss:$16 sps:$4 sm:$0xff]   ;;  %v760_v32 = vld [vmem:[%s1052_s1 + $0x1e4] ss:$16 sps:$4 sm:$0xff]  }
   0xc   :  { %439 = vmatprep.subr.bf16.mxu0 %v730_v12  ;;  %482 = vmatprep.subr.bf16.mxu1 %v732_v13  ;;  %v762_v33 = vld [vmem:[%s1052_s1 + $0x1ec] ss:$16 sps:$4 sm:$0xff]   ;;  %v764_v34 = vld [vmem:[%s1052_s1 + $0x1e0] ss:$16 sps:$4 sm:$0xff]   ;;  %v765_v35 = vld [vmem:[%s1052_s1 + $0x1e8] ss:$16 sps:$4 sm:$0xff]  }
   0xd   :  { %v766_v36 = vld [vmem:[%s1052_s1 + $0x1c4] ss:$16 sps:$4 sm:$0xff]   ;;  %v768_v37 = vld [vmem:[%s1052_s1 + $0x1cc] ss:$16 sps:$4 sm:$0xff]   ;;  %v770_v38 = vld [vmem:[%s1052_s1 + $0x1c0] ss:$16 sps:$4 sm:$0xff]  }
   0xe   :  { %v771_v39 = vld [vmem:[%s1052_s1 + $0x1c8] ss:$16 sps:$4 sm:$0xff]   ;;  %v772_v40 = vld [vmem:[%s1052_s1 + $0x1a4] ss:$16 sps:$4 sm:$0xff]   ;;  %v774_v41 = vld [vmem:[%s1052_s1 + $0x1ac] ss:$16 sps:$4 sm:$0xff]  }
   0xf   :  { %440 = vmatpush1.bf16.msra.mxu0 %v734_v14  ;;  %483 = vmatpush1.bf16.msra.mxu1 %v735_v15  ;;  %v776_v42 = vld [vmem:[%s1052_s1 + $0x1a0] ss:$16 sps:$4 sm:$0xff]   ;;  %v777_v43 = vld [vmem:[%s1052_s1 + $0x1a8] ss:$16 sps:$4 sm:$0xff]   ;;  %v778_v44 = vld [vmem:[%s1052_s1 + $0x184] ss:$16 sps:$4 sm:$0xff]  }
  0x10   :  { %441 = vmatprep.subr.bf16.mxu0 %v736_v16  ;;  %484 = vmatprep.subr.bf16.mxu1 %v738_v17  ;;  %v780_v45 = vld [vmem:[%s1052_s1 + $0x18c] ss:$16 sps:$4 sm:$0xff]   ;;  %v782_v47 = vld [vmem:[%s1052_s1 + $0x180] ss:$16 sps:$4 sm:$0xff]   ;;  %v783_v48 = vld [vmem:[%s1052_s1 + $0x188] ss:$16 sps:$4 sm:$0xff]  }
  0x11   :  { %v810_v46 = vld [vmem:[%s1053_s0 + $0x4] ss:$8 sps:$4 sm:$0xff]   ;;  %v788_v51 = vld [vmem:[%s1052_s1 + $0x160] ss:$16 sps:$4 sm:$0xff]   ;;  %v789_v52 = vld [vmem:[%s1052_s1 + $0x168] ss:$16 sps:$4 sm:$0xff]  }
  0x12   :  { %v784_v49 = vld [vmem:[%s1052_s1 + $0x164] ss:$16 sps:$4 sm:$0xff]   ;;  %v786_v50 = vld [vmem:[%s1052_s1 + $0x16c] ss:$16 sps:$4 sm:$0xff]   ;;  %465 = vmatprep.mubr.bf16.mxu0 %v810_v46  ;;  %508 = vmatprep.mubr.bf16.mxu1 %v810_v46  ;;  %v794_v55 = vld [vmem:[%s1052_s1 + $0x140] ss:$16 sps:$4 sm:$0xff]  }
  0x13   :  { %442 = vmatpush1.bf16.msra.mxu0 %v740_v18  ;;  %485 = vmatpush1.bf16.msra.mxu1 %v741_v19  ;;  %v790_v53 = vld [vmem:[%s1052_s1 + $0x144] ss:$16 sps:$4 sm:$0xff]   ;;  %v792_v54 = vld [vmem:[%s1052_s1 + $0x14c] ss:$16 sps:$4 sm:$0xff]   ;;  %v795_v56 = vld [vmem:[%s1052_s1 + $0x148] ss:$16 sps:$4 sm:$0xff]  }
  0x14   :  { %443 = vmatprep.subr.bf16.mxu0 %v742_v20  ;;  %486 = vmatprep.subr.bf16.mxu1 %v744_v21  ;;  %v796_v57 = vld [vmem:[%s1052_s1 + $0x124] ss:$16 sps:$4 sm:$0xff]   ;;  %v798_v58 = vld [vmem:[%s1052_s1 + $0x12c] ss:$16 sps:$4 sm:$0xff]   ;;  %v800_v59 = vld [vmem:[%s1052_s1 + $0x120] ss:$16 sps:$4 sm:$0xff]  }
  0x15   :  { %v801_v60 = vld [vmem:[%s1052_s1 + $0x128] ss:$16 sps:$4 sm:$0xff]   ;;  %v802_v61 = vld [vmem:[%s1052_s1 + $0x104] ss:$16 sps:$4 sm:$0xff]   ;;  %v804_v62 = vld [vmem:[%s1052_s1 + $0x10c] ss:$16 sps:$4 sm:$0xff]  }
  0x16   :  { %v806_v63 = vld [vmem:[%s1052_s1 + $0x100] ss:$16 sps:$4 sm:$0xff]   ;;  %v807_v0 = vld [vmem:[%s1052_s1 + $0x108] ss:$16 sps:$4 sm:$0xff]   ;;  %v549_v3 = vshrl.u32 %v548_v2, 7 }
  0x17   :  { %444 = vmatpush1.bf16.msra.mxu0 %v746_v22  ;;  %487 = vmatpush1.bf16.msra.mxu1 %v747_v23  ;;  %v808_v1 = vld [vmem:[%s1053_s0] ss:$8 sps:$4 sm:$0xff]  }
  0x18   :  { %445 = vmatprep.subr.bf16.mxu0 %v748_v24  ;;  %488 = vmatprep.subr.bf16.mxu1 %v750_v25  ;;  %v550_v4 = vsub.s32 0, %v549_v3  ;;  %v558_v5 = vsub.s32 2, %v549_v3  ;;  %v546_v6 = vld [vmem:[%s1054_s2] sm:$0xf]  ;;  %v554_v7 = vsub.s32 1, %v549_v3  ;;  %v562_v8 = vsub.s32 3, %v549_v3 }
  0x19   :  { %v576_v10 = vld [vmem:[%s1055_s3] sm:$0xf] }
  0x1a   :  { %v551_v9 = vrot.slane %v546_v6, %v550_v4  ;;  %v559_v11 = vrot.slane %v546_v6, %v558_v5  ;;  %v555_v12 = vrot.slane %v546_v6, %v554_v7  ;;  %v563_v13 = vrot.slane %v546_v6, %v562_v8 }
  0x1b   :  { %446 = vmatpush1.bf16.msra.mxu0 %v752_v26  ;;  %489 = vmatpush1.bf16.msra.mxu1 %v753_v27  ;;  %v581_v15 = vrot.slane %v576_v10, %v550_v4  ;;  %v589_v17 = vrot.slane %v576_v10, %v558_v5  ;;  %v585_v20 = vrot.slane %v576_v10, %v554_v7 }
  0x1c   :  { %447 = vmatprep.subr.bf16.mxu0 %v754_v28  ;;  %490 = vmatprep.subr.bf16.mxu1 %v756_v29  ;;  %v593_v21 = vrot.slane %v576_v10, %v562_v8 }
  0x1f   :  { %448 = vmatpush1.bf16.msra.mxu0 %v758_v30  ;;  %491 = vmatpush1.bf16.msra.mxu1 %v759_v31 }
  0x20   :  { %449 = vmatprep.subr.bf16.mxu0 %v760_v32  ;;  %492 = vmatprep.subr.bf16.mxu1 %v762_v33 }
  0x23   :  { %450 = vmatpush2.bf16.msra.mxu0 %v764_v34  ;;  %493 = vmatpush2.bf16.msra.mxu1 %v765_v35 }
  0x24   :  { %451 = vmatprep.subr.bf16.mxu0 %v766_v36  ;;  %494 = vmatprep.subr.bf16.mxu1 %v768_v37 }
  0x27   :  { %452 = vmatpush2.bf16.msra.mxu0 %v770_v38  ;;  %495 = vmatpush2.bf16.msra.mxu1 %v771_v39 }
  0x28   :  { %453 = vmatprep.subr.bf16.mxu0 %v772_v40  ;;  %496 = vmatprep.subr.bf16.mxu1 %v774_v41 }
  0x2b   :  { %454 = vmatpush2.bf16.msra.mxu0 %v776_v42  ;;  %497 = vmatpush2.bf16.msra.mxu1 %v777_v43 }
  0x2c   :  { %455 = vmatprep.subr.bf16.mxu0 %v778_v44  ;;  %498 = vmatprep.subr.bf16.mxu1 %v780_v45 }
  0x2f   :  { %456 = vmatpush2.bf16.msra.mxu0 %v782_v47  ;;  %499 = vmatpush2.bf16.msra.mxu1 %v783_v48 }
  0x30   :  { %457 = vmatprep.subr.bf16.mxu0 %v784_v49  ;;  %500 = vmatprep.subr.bf16.mxu1 %v786_v50 }
  0x33   :  { %458 = vmatpush2.bf16.msra.mxu0 %v788_v51  ;;  %501 = vmatpush2.bf16.msra.mxu1 %v789_v52 }
  0x34   :  { %459 = vmatprep.subr.bf16.mxu0 %v790_v53  ;;  %502 = vmatprep.subr.bf16.mxu1 %v792_v54 }
  0x37   :  { %460 = vmatpush2.bf16.msra.mxu0 %v794_v55  ;;  %503 = vmatpush2.bf16.msra.mxu1 %v795_v56 }
  0x38   :  { %461 = vmatprep.subr.bf16.mxu0 %v796_v57  ;;  %504 = vmatprep.subr.bf16.mxu1 %v798_v58 }
  0x3b   :  { %462 = vmatpush2.bf16.msra.mxu0 %v800_v59  ;;  %505 = vmatpush2.bf16.msra.mxu1 %v801_v60 }
  0x3c   :  { %463 = vmatprep.subr.bf16.mxu0 %v802_v61  ;;  %506 = vmatprep.subr.bf16.mxu1 %v804_v62 }
  0x3f   :  { %464 = vmatpush2.bf16.msra.mxu0 %v806_v63  ;;  %507 = vmatpush2.bf16.msra.mxu1 %v807_v0 }
  0x42   :  { %466 = vmatmul.mubr.bf16.vlgmr.msra.gmra.mxu0 %v808_v1  ;;  %509 = vmatmul.mubr.bf16.vlgmr.msra.gmra.mxu1 %v808_v1 }
 0x102   :  { %v467_v14 = vpop.f32.mrf.mxu0  ;;  %v510_v16 = vpop.f32.mrf.mxu1 }
 0x103   :  { %v568_v18 = vmul.f32 %v551_v9, %v467_v14  ;;  %v570_v19 = vmul.f32 %v559_v11, %v510_v16 }
 0x104   :  { %v469_v22 = vpop.f32.mrf.mxu0  ;;  %v512_v23 = vpop.f32.mrf.mxu1 }
 0x105   :  { %v569_v24 = vmul.f32 %v555_v12, %v469_v22  ;;  %v571_v25 = vmul.f32 %v563_v13, %v512_v23  ;;  %v598_v28 = vadd.f32 %v581_v15, %v568_v18  ;;  %v600_v29 = vadd.f32 %v589_v17, %v570_v19 }
 0x106   :  { %v471_v26 = vpop.f32.mrf.mxu0  ;;  %v514_v27 = vpop.f32.mrf.mxu1 }
 0x107   :  { %v599_v30 = vadd.f32 %v585_v20, %v569_v24  ;;  %v601_v31 = vadd.f32 %v593_v21, %v571_v25  ;;  %v572_v32 = vmul.f32 %v551_v9, %v471_v26  ;;  %v574_v33 = vmul.f32 %v559_v11, %v514_v27 }
 0x108   :  { %v473_v34 = vpop.f32.mrf.mxu0  ;;  %v516_v35 = vpop.f32.mrf.mxu1 }
 0x109   :  { %v708_v36 = vpack.c.bf16 %v599_v30, %v598_v28  ;;  %v709_v37 = vpack.c.bf16 %v601_v31, %v600_v29  ;;  %v573_v38 = vmul.f32 %v555_v12, %v473_v34  ;;  %v575_v39 = vmul.f32 %v563_v13, %v516_v35 }
 0x10a   :  { %v602_v40 = vadd.f32 %v581_v15, %v572_v32  ;;  %v604_v41 = vadd.f32 %v589_v17, %v574_v33 }
 0x10b   :  { %630 = vst [vmem:[%s1056_s4] sm:$0xff] %v708_v36  ;;  %631 = vst [vmem:[%s1056_s4 + $0x8] sm:$0xff] %v709_v37  ;;  %v603_v42 = vadd.f32 %v585_v20, %v573_v38  ;;  %v605_v43 = vadd.f32 %v593_v21, %v575_v39 }
 0x10d   :  { %v710_v44 = vpack.c.bf16 %v603_v42, %v602_v40  ;;  %v711_v45 = vpack.c.bf16 %v605_v43, %v604_v41 }
 0x10f   :  { %632 = vst [vmem:[%s1056_s4 + $0x10] sm:$0xff] %v710_v44  ;;  %633 = vst [vmem:[%s1056_s4 + $0x18] sm:$0xff] %v711_v45 }

// kernel: modified_resnet_forward.43
= control target key start
LH: loop header
LB: loop body
LE: loop exit
PB: predicated region body
PF: predicated region fallthrough
CT: control target
= control target key end

     0   :  { %v293_v34 = vlaneseq  ;;  %s569_s1 = inlined_call_operand.vmem [shape: bf16[256,256], index: 1, kind: input, shape index: {}]   ;;  %s570_s0 = inlined_call_operand.vmem [shape: bf16[16,256], index: 0, kind: input, shape index: {}]   ;;  %s571_s2 = inlined_call_operand.vmem [shape: f32[1,256], index: 2, kind: input, shape index: {}]   ;;  %s572_s3 = inlined_call_operand.vmem [shape: f32[1,256], index: 3, kind: input, shape index: {}]   ;;  %s573_s4 = inlined_call_operand.vmem [shape: bf16[16,256], index: 4, kind: output, shape index: {}]  }
   0x1   :  { %v379_v0 = vld [vmem:[%s569_s1 + $0x74] ss:$8 sps:$4 sm:$0xff]   ;;  %v381_v1 = vld [vmem:[%s569_s1 + $0x70] ss:$8 sps:$4 sm:$0xff]   ;;  %v382_v2 = vld [vmem:[%s569_s1 + $0x64] ss:$8 sps:$4 sm:$0xff]  }
   0x2   :  { %233 = vmatprep.subr.bf16.mxu0 %v379_v0  ;;  %v384_v3 = vld [vmem:[%s569_s1 + $0x60] ss:$8 sps:$4 sm:$0xff]   ;;  %v385_v4 = vld [vmem:[%s569_s1 + $0x54] ss:$8 sps:$4 sm:$0xff]   ;;  %v387_v5 = vld [vmem:[%s569_s1 + $0x50] ss:$8 sps:$4 sm:$0xff]  }
   0x3   :  { %234 = vmatpush1.bf16.msra.mxu0 %v381_v1  ;;  %v388_v6 = vld [vmem:[%s569_s1 + $0x44] ss:$8 sps:$4 sm:$0xff]   ;;  %v390_v7 = vld [vmem:[%s569_s1 + $0x40] ss:$8 sps:$4 sm:$0xff]   ;;  %v391_v8 = vld [vmem:[%s569_s1 + $0x34] ss:$8 sps:$4 sm:$0xff]  }
   0x4   :  { %235 = vmatprep.subr.bf16.mxu0 %v382_v2  ;;  %v393_v9 = vld [vmem:[%s569_s1 + $0x30] ss:$8 sps:$4 sm:$0xff]   ;;  %v394_v10 = vld [vmem:[%s569_s1 + $0x24] ss:$8 sps:$4 sm:$0xff]   ;;  %v396_v11 = vld [vmem:[%s569_s1 + $0x20] ss:$8 sps:$4 sm:$0xff]  }
   0x5   :  { %v397_v12 = vld [vmem:[%s569_s1 + $0x14] ss:$8 sps:$4 sm:$0xff]   ;;  %v429_v13 = vld [vmem:[%s570_s0 + $0x4] ss:$8 sps:$4 sm:$0xff]   ;;  %v399_v14 = vld [vmem:[%s569_s1 + $0x10] ss:$8 sps:$4 sm:$0xff]  }
   0x6   :  { %v400_v15 = vld [vmem:[%s569_s1 + $0x4] ss:$8 sps:$4 sm:$0xff]   ;;  %265 = vmatprep.mubr.bf16.mxu0 %v429_v13  ;;  %v402_v16 = vld [vmem:[%s569_s1] ss:$8 sps:$4 sm:$0xff]   ;;  %v403_v17 = vld [vmem:[%s569_s1 + $0xf4] ss:$8 sps:$4 sm:$0xff]  }
   0x7   :  { %236 = vmatpush1.bf16.msra.mxu0 %v384_v3  ;;  %v405_v18 = vld [vmem:[%s569_s1 + $0xf0] ss:$8 sps:$4 sm:$0xff]   ;;  %v406_v19 = vld [vmem:[%s569_s1 + $0xe4] ss:$8 sps:$4 sm:$0xff]   ;;  %v408_v20 = vld [vmem:[%s569_s1 + $0xe0] ss:$8 sps:$4 sm:$0xff]  }
   0x8   :  { %237 = vmatprep.subr.bf16.mxu0 %v385_v4  ;;  %v409_v21 = vld [vmem:[%s569_s1 + $0xd4] ss:$8 sps:$4 sm:$0xff]   ;;  %v411_v22 = vld [vmem:[%s569_s1 + $0xd0] ss:$8 sps:$4 sm:$0xff]   ;;  %v412_v23 = vld [vmem:[%s569_s1 + $0xc4] ss:$8 sps:$4 sm:$0xff]  }
   0x9   :  { %v414_v24 = vld [vmem:[%s569_s1 + $0xc0] ss:$8 sps:$4 sm:$0xff]   ;;  %v415_v25 = vld [vmem:[%s569_s1 + $0xb4] ss:$8 sps:$4 sm:$0xff]   ;;  %v417_v26 = vld [vmem:[%s569_s1 + $0xb0] ss:$8 sps:$4 sm:$0xff]  }
   0xa   :  { %v418_v27 = vld [vmem:[%s569_s1 + $0xa4] ss:$8 sps:$4 sm:$0xff]   ;;  %v420_v28 = vld [vmem:[%s569_s1 + $0xa0] ss:$8 sps:$4 sm:$0xff]   ;;  %v421_v29 = vld [vmem:[%s569_s1 + $0x94] ss:$8 sps:$4 sm:$0xff]  }
   0xb   :  { %238 = vmatpush1.bf16.msra.mxu0 %v387_v5  ;;  %v423_v30 = vld [vmem:[%s569_s1 + $0x90] ss:$8 sps:$4 sm:$0xff]   ;;  %v424_v31 = vld [vmem:[%s569_s1 + $0x84] ss:$8 sps:$4 sm:$0xff]   ;;  %v426_v32 = vld [vmem:[%s569_s1 + $0x80] ss:$8 sps:$4 sm:$0xff]  }
   0xc   :  { %239 = vmatprep.subr.bf16.mxu0 %v388_v6  ;;  %v427_v33 = vld [vmem:[%s570_s0] ss:$8 sps:$4 sm:$0xff]   ;;  %v294_v35 = vshrl.u32 %v293_v34, 7 }
   0xd   :  { %v291_v37 = vld [vmem:[%s571_s2] sm:$0x3] }
   0xe   :  { %v295_v36 = vsub.s32 0, %v294_v35  ;;  %v299_v38 = vsub.s32 1, %v294_v35  ;;  %v307_v40 = vld [vmem:[%s572_s3] sm:$0x3] }
   0xf   :  { %240 = vmatpush1.bf16.msra.mxu0 %v390_v7 }
  0x10   :  { %241 = vmatprep.subr.bf16.mxu0 %v391_v8  ;;  %v296_v39 = vrot.slane %v291_v37, %v295_v36  ;;  %v300_v41 = vrot.slane %v291_v37, %v299_v38  ;;  %v312_v44 = vrot.slane %v307_v40, %v295_v36  ;;  %v316_v45 = vrot.slane %v307_v40, %v299_v38 }
  0x13   :  { %242 = vmatpush1.bf16.msra.mxu0 %v393_v9 }
  0x14   :  { %243 = vmatprep.subr.bf16.mxu0 %v394_v10 }
  0x17   :  { %244 = vmatpush1.bf16.msra.mxu0 %v396_v11 }
  0x18   :  { %245 = vmatprep.subr.bf16.mxu0 %v397_v12 }
  0x1b   :  { %246 = vmatpush1.bf16.msra.mxu0 %v399_v14 }
  0x1c   :  { %247 = vmatprep.subr.bf16.mxu0 %v400_v15 }
  0x1f   :  { %248 = vmatpush1.bf16.msra.mxu0 %v402_v16 }
  0x20   :  { %249 = vmatprep.subr.bf16.mxu0 %v403_v17 }
  0x23   :  { %250 = vmatpush2.bf16.msra.mxu0 %v405_v18 }
  0x24   :  { %251 = vmatprep.subr.bf16.mxu0 %v406_v19 }
  0x27   :  { %252 = vmatpush2.bf16.msra.mxu0 %v408_v20 }
  0x28   :  { %253 = vmatprep.subr.bf16.mxu0 %v409_v21 }
  0x2b   :  { %254 = vmatpush2.bf16.msra.mxu0 %v411_v22 }
  0x2c   :  { %255 = vmatprep.subr.bf16.mxu0 %v412_v23 }
  0x2f   :  { %256 = vmatpush2.bf16.msra.mxu0 %v414_v24 }
  0x30   :  { %257 = vmatprep.subr.bf16.mxu0 %v415_v25 }
  0x33   :  { %258 = vmatpush2.bf16.msra.mxu0 %v417_v26 }
  0x34   :  { %259 = vmatprep.subr.bf16.mxu0 %v418_v27 }
  0x37   :  { %260 = vmatpush2.bf16.msra.mxu0 %v420_v28 }
  0x38   :  { %261 = vmatprep.subr.bf16.mxu0 %v421_v29 }
  0x3b   :  { %262 = vmatpush2.bf16.msra.mxu0 %v423_v30 }
  0x3c   :  { %263 = vmatprep.subr.bf16.mxu0 %v424_v31 }
  0x3f   :  { %264 = vmatpush2.bf16.msra.mxu0 %v426_v32 }
  0x42   :  { %266 = vmatmul.mubr.bf16.vlgmr.msra.gmra.mxu0 %v427_v33 }
 0x102   :  { %v267_v42 = vpop.f32.mrf.mxu0 }
 0x103   :  { %v303_v43 = vmul.f32 %v296_v39, %v267_v42 }
 0x104   :  { %v269_v46 = vpop.f32.mrf.mxu0 }
 0x105   :  { %v304_v47 = vmul.f32 %v300_v41, %v269_v46  ;;  %v319_v49 = vadd.f32 %v312_v44, %v303_v43 }
 0x106   :  { %v271_v48 = vpop.f32.mrf.mxu0 }
 0x107   :  { %v320_v50 = vadd.f32 %v316_v45, %v304_v47  ;;  %v305_v51 = vmul.f32 %v296_v39, %v271_v48 }
 0x108   :  { %v273_v52 = vpop.f32.mrf.mxu0 }
 0x109   :  { %v377_v53 = vpack.c.bf16 %v320_v50, %v319_v49  ;;  %v306_v54 = vmul.f32 %v300_v41, %v273_v52  ;;  %v321_v55 = vadd.f32 %v312_v44, %v305_v51 }
 0x10b   :  { %335 = vst [vmem:[%s573_s4] sm:$0xff] %v377_v53  ;;  %v322_v56 = vadd.f32 %v316_v45, %v306_v54 }
 0x10d   :  { %v378_v57 = vpack.c.bf16 %v322_v56, %v321_v55 }
 0x10f   :  { %336 = vst [vmem:[%s573_s4 + $0x8] sm:$0xff] %v378_v57 }

// kernel: modified_resnet_forward.45
= control target key start
LH: loop header
LB: loop body
LE: loop exit
PB: predicated region body
PF: predicated region fallthrough
CT: control target
= control target key end

     0   :  { %s392_s1 = inlined_call_operand.vmem [shape: bf16[256,128], index: 1, kind: input, shape index: {}]   ;;  %s393_s0 = inlined_call_operand.vmem [shape: bf16[16,256], index: 0, kind: input, shape index: {}]   ;;  %s394_s2 = inlined_call_operand.vmem [shape: f32[1,128], index: 2, kind: input, shape index: {}]   ;;  %s395_s3 = inlined_call_operand.vmem [shape: f32[1,128], index: 3, kind: input, shape index: {}]   ;;  %s396_s4 = inlined_call_operand.vmem [shape: f32[16,128], index: 4, kind: output, shape index: {}]  }
   0x1   :  { %v282_v0 = vld [vmem:[%s392_s1 + $0x78] sm:$0xff]   ;;  %v284_v2 = vld [vmem:[%s392_s1 + $0x70] sm:$0xff]   ;;  %v286_v4 = vld [vmem:[%s392_s1 + $0x68] sm:$0xff]  }
   0x2   :  { %v283_v1 = vld [vmem:[%s392_s1 + $0x38] sm:$0xff]   ;;  %260 = vmatprep.subr.bf16.mxu0 %v282_v0  ;;  %v285_v3 = vld [vmem:[%s392_s1 + $0x30] sm:$0xff]   ;;  %v287_v5 = vld [vmem:[%s392_s1 + $0x28] sm:$0xff]  }
   0x3   :  { %261 = vmatpush3.bf16.msra.mxu0 %v283_v1  ;;  %v288_v6 = vld [vmem:[%s392_s1 + $0x60] sm:$0xff]   ;;  %v290_v8 = vld [vmem:[%s392_s1 + $0x58] sm:$0xff]   ;;  %v292_v10 = vld [vmem:[%s392_s1 + $0x50] sm:$0xff]  }
   0x4   :  { %262 = vmatprep.subr.bf16.mxu0 %v284_v2  ;;  %v289_v7 = vld [vmem:[%s392_s1 + $0x20] sm:$0xff]   ;;  %v291_v9 = vld [vmem:[%s392_s1 + $0x18] sm:$0xff]   ;;  %v293_v12 = vld [vmem:[%s392_s1 + $0x10] sm:$0xff]  }
   0x5   :  { %v300_v11 = vld [vmem:[%s393_s0 + $0x4] ss:$8 sps:$4 sm:$0xff]   ;;  %v298_v17 = vld [vmem:[%s393_s0] ss:$8 sps:$4 sm:$0xff]  }
   0x6   :  { %198 = vmatprep.mubr.bf16.mxu0 %v300_v11  ;;  %v294_v13 = vld [vmem:[%s392_s1 + $0x48] sm:$0xff]   ;;  %v296_v15 = vld [vmem:[%s392_s1 + $0x40] sm:$0xff]  }
   0x7   :  { %263 = vmatpush3.bf16.msra.mxu0 %v285_v3  ;;  %v295_v14 = vld [vmem:[%s392_s1 + $0x8] sm:$0xff]   ;;  %v297_v16 = vld [vmem:[%s392_s1] sm:$0xff]  }
   0x8   :  { %264 = vmatprep.subr.bf16.mxu0 %v286_v4  ;;  %v258_v20 = vld [vmem:[%s394_s2] ss:$0 sm:$0xff] }
   0x9   :  { %v259_v22 = vld [vmem:[%s395_s3] ss:$0 sm:$0xff] }
   0xb   :  { %265 = vmatpush3.bf16.msra.mxu0 %v287_v5 }
   0xc   :  { %266 = vmatprep.subr.bf16.mxu0 %v288_v6 }
   0xf   :  { %267 = vmatpush3.bf16.msra.mxu0 %v289_v7 }
  0x10   :  { %268 = vmatprep.subr.bf16.mxu0 %v290_v8 }
  0x13   :  { %269 = vmatpush3.bf16.msra.mxu0 %v291_v9 }
  0x14   :  { %270 = vmatprep.subr.bf16.mxu0 %v292_v10 }
  0x17   :  { %271 = vmatpush3.bf16.msra.mxu0 %v293_v12 }
  0x18   :  { %272 = vmatprep.subr.bf16.mxu0 %v294_v13 }
  0x1b   :  { %273 = vmatpush3.bf16.msra.mxu0 %v295_v14 }
  0x1c   :  { %274 = vmatprep.subr.bf16.mxu0 %v296_v15 }
  0x1f   :  { %275 = vmatpush3.bf16.msra.mxu0 %v297_v16 }
  0x22   :  { %199 = vmatmul.mubr.bf16.vlgmr.msra.gmra.mxu0 %v298_v17 }
  0xe2   :  { %v276_v18 = vpop.f32.mrf.mxu0 }
  0xe4   :  { %v277_v19 = vpop.f32.mrf.mxu0 }
  0xe5   :  { %v278_v21 = vadd.f32 %v277_v19, %v276_v18 }
  0xe6   :  { %v279_v23 = vpop.f32.mrf.mxu0 }
  0xe7   :  { %v223_v24 = vmul.f32 %v278_v21, %v258_v20 }
  0xe8   :  { %v280_v25 = vpop.f32.mrf.mxu0 }
  0xe9   :  { %v232_v26 = vadd.f32 %v259_v22, %v223_v24  ;;  %v281_v27 = vadd.f32 %v280_v25, %v279_v23 }
  0xeb   :  { %234 = vst [vmem:[%s396_s4] sm:$0xff] %v232_v26  ;;  %v224_v28 = vmul.f32 %v281_v27, %v258_v20 }
  0xed   :  { %v233_v29 = vadd.f32 %v259_v22, %v224_v28 }
  0xef   :  { %235 = vst [vmem:[%s396_s4 + $0x8] sm:$0xff] %v233_v29 }

// kernel: modified_resnet_forward.44
= control target key start
LH: loop header
LB: loop body
LE: loop exit
PB: predicated region body
PF: predicated region fallthrough
CT: control target
= control target key end

     0   :  { %vm38_vm0 = vcmask 523264   ;;  %v1537_v0 = vmov 0.0   ;;  %vm1538_vm1 = vmmov 0   ;;  %vm647_vm2 = vcmask 8192   ;;  %s1771_s1 = inlined_call_operand.vmem [shape: f32[8,2,64], index: 1, kind: input, shape index: {}]   ;;  %s1772_s0 = inlined_call_operand.vmem [shape: f32[8,1,64], index: 0, kind: input, shape index: {}]   ;;  %s1773_s2 = inlined_call_operand.vmem [shape: f32[8,2,64], index: 2, kind: input, shape index: {}]   ;;  %s1774_s3 = inlined_call_operand.vmem [shape: f32[8,1,64], index: 3, kind: output, shape index: {}]  }
   0x1   :  { %1423 = vmatprep.subr.mxu0 %v1537_v0  ;;  %v22_v1 = vld [vmem:[%s1771_s1] sm:$0x3]  ;;  %1425 = vmatprep.mubr.msk.f32.mxu0 %vm1538_vm1, %v1537_v0  ;;  %v23_v2 = vld [vmem:[%s1771_s1 + $0x2] sm:$0x3]  ;;  %v24_v4 = vld [vmem:[%s1771_s1 + $0x4] sm:$0x3] }
   0x2   :  { %1424 = vmatpush3.xpose.msk.msra.mxu0 %vm38_vm0, %v22_v1  ;;  %1428 = vmatprep.subr.mxu1 %v1537_v0  ;;  %v14_v3 = vld [vmem:[%s1772_s0] sm:$0x1]  ;;  %v15_v5 = vld [vmem:[%s1772_s0 + $0x1] sm:$0x1]  ;;  %v25_v6 = vld [vmem:[%s1771_s1 + $0x6] sm:$0x3] }
   0x3   :  { %1429 = vmatpush3.xpose.msk.msra.mxu1 %vm38_vm0, %v23_v2  ;;  %1433 = vmatprep.subr.mxu0 %v1537_v0  ;;  %v16_v7 = vld [vmem:[%s1772_s0 + $0x2] sm:$0x1]  ;;  %v26_v8 = vld [vmem:[%s1771_s1 + $0x8] sm:$0x3]  ;;  %v17_v9 = vld [vmem:[%s1772_s0 + $0x3] sm:$0x1] }
   0x4   :  { %1430 = vmatprep.mubr.msk.f32.mxu1 %vm1538_vm1, %v1537_v0  ;;  %1438 = vmatprep.subr.mxu1 %v1537_v0  ;;  %v27_v10 = vld [vmem:[%s1771_s1 + $0xa] sm:$0x3]  ;;  %v18_v11 = vld [vmem:[%s1772_s0 + $0x4] sm:$0x1]  ;;  %v28_v12 = vld [vmem:[%s1771_s1 + $0xc] sm:$0x3] }
   0x5   :  { %1426 = vmatmul.mubr.msk.f32.vlgmr.msra.gmra.mxu0 %vm38_vm0, %v14_v3  ;;  %v19_v13 = vld [vmem:[%s1772_s0 + $0x5] sm:$0x1]  ;;  %v29_v14 = vld [vmem:[%s1771_s1 + $0xe] sm:$0x3]  ;;  %v20_v15 = vld [vmem:[%s1772_s0 + $0x6] sm:$0x1] }
   0x6   :  { %1434 = vmatpush3.xpose.msk.msra.mxu0 %vm38_vm0, %v24_v4  ;;  %1431 = vmatmul.mubr.msk.f32.vlgmr.msra.gmra.mxu1 %vm38_vm0, %v15_v5  ;;  %v21_v16 = vld [vmem:[%s1772_s0 + $0x7] sm:$0x1]  ;;  %vm740_vm3 = vcmask 1041408   ;;  %vm736_vm4 = vcmask 15360   ;;  %vm1346_vm5 = vcmask 516096  }
   0x7   :  { %1435 = vmatprep.mubr.msk.f32.mxu0 %vm1538_vm1, %v1537_v0  ;;  %1439 = vmatpush3.xpose.msk.msra.mxu1 %vm38_vm0, %v25_v6 }
   0x8   :  { %1443 = vmatprep.subr.mxu0 %v1537_v0  ;;  %1440 = vmatprep.mubr.msk.f32.mxu1 %vm1538_vm1, %v1537_v0 }
   0x9   :  { %1436 = vmatmul.mubr.msk.f32.vlgmr.msra.gmra.mxu0 %vm38_vm0, %v16_v7  ;;  %1448 = vmatprep.subr.mxu1 %v1537_v0 }
   0xa   :  { %1444 = vmatpush3.xpose.msk.msra.mxu0 %vm38_vm0, %v26_v8  ;;  %1441 = vmatmul.mubr.msk.f32.vlgmr.msra.gmra.mxu1 %vm38_vm0, %v17_v9 }
   0xb   :  { %1445 = vmatprep.mubr.msk.f32.mxu0 %vm1538_vm1, %v1537_v0  ;;  %1449 = vmatpush3.xpose.msk.msra.mxu1 %vm38_vm0, %v27_v10 }
   0xc   :  { %1453 = vmatprep.subr.mxu0 %v1537_v0  ;;  %1450 = vmatprep.mubr.msk.f32.mxu1 %vm1538_vm1, %v1537_v0 }
   0xd   :  { %1446 = vmatmul.mubr.msk.f32.vlgmr.msra.gmra.mxu0 %vm38_vm0, %v18_v11  ;;  %1458 = vmatprep.subr.mxu1 %v1537_v0 }
   0xe   :  { %1454 = vmatpush3.xpose.msk.msra.mxu0 %vm38_vm0, %v28_v12  ;;  %1451 = vmatmul.mubr.msk.f32.vlgmr.msra.gmra.mxu1 %vm38_vm0, %v19_v13 }
   0xf   :  { %1455 = vmatprep.mubr.msk.f32.mxu0 %vm1538_vm1, %v1537_v0  ;;  %1459 = vmatpush3.xpose.msk.msra.mxu1 %vm38_vm0, %v29_v14 }
  0x10   :  { %1460 = vmatprep.mubr.msk.f32.mxu1 %vm1538_vm1, %v1537_v0  ;;  %1463 = vmatprep.subr.mxu0 %v1537_v0 }
  0x11   :  { %1456 = vmatmul.mubr.msk.f32.vlgmr.msra.gmra.mxu0 %vm38_vm0, %v20_v15  ;;  %1468 = vmatprep.subr.mxu1 %v1537_v0 }
  0x12   :  { %1461 = vmatmul.mubr.msk.f32.vlgmr.msra.gmra.mxu1 %vm38_vm0, %v21_v16  ;;  %1465 = vmatprep.mubr.msk.f32.mxu0 %vm1538_vm1, %v1537_v0 }
  0x13   :  { %1470 = vmatprep.mubr.msk.f32.mxu1 %vm1538_vm1, %v1537_v0 }
  0xc5   :  { %v111_v17 = vpop.f32.mrf.mxu0 }
  0xc6   :  { %v648_v18 = vsel %vm647_vm2, %v111_v17, -inf  ;;  %v187_v19 = vpop.f32.mrf.mxu1 }
  0xc7   :  { %649 = vmax.xlane.f32.xlu0 %v648_v18  ;;  %v1427_v20 = vpop.f32.mrf.mxu0  ;;  %v651_v22 = vsel %vm647_vm2, %v187_v19, -inf  ;;  %v30_v18 = vld [vmem:[%s1773_s2] sm:$0x3] }
  0xc8   :  { %v1432_v21 = vpop.f32.mrf.mxu1  ;;  %1464 = vmatpush3.msk.msra.mxu0 %vm740_vm3, %v30_v18 }
  0xc9   :  { %v263_v23 = vpop.f32.mrf.mxu0  ;;  %1473 = vmatprep.subr.mxu0 %v1537_v0 }
  0xca   :  { %v654_v24 = vsel %vm647_vm2, %v263_v23, -inf  ;;  %v339_v25 = vpop.f32.mrf.mxu1 }
  0xcb   :  { %652 = vmax.xlane.f32.xlu0 %v651_v22  ;;  %655 = vmax.xlane.f32.xlu1 %v654_v24  ;;  %v1437_v26 = vpop.f32.mrf.mxu0  ;;  %v657_v28 = vsel %vm647_vm2, %v339_v25, -inf }
  0xcc   :  { %v1442_v27 = vpop.f32.mrf.mxu1 }
  0xcd   :  { %v415_v29 = vpop.f32.mrf.mxu0 }
  0xce   :  { %v660_v30 = vsel %vm647_vm2, %v415_v29, -inf  ;;  %v491_v31 = vpop.f32.mrf.mxu1 }
  0xcf   :  { %658 = vmax.xlane.f32.xlu1 %v657_v28  ;;  %661 = vmax.xlane.f32.xlu0 %v660_v30  ;;  %v1447_v32 = vpop.f32.mrf.mxu0  ;;  %v663_v34 = vsel %vm647_vm2, %v491_v31, -inf }
  0xd0   :  { %v1452_v33 = vpop.f32.mrf.mxu1 }
  0xd1   :  { %v567_v35 = vpop.f32.mrf.mxu0 }
  0xd2   :  { %v666_v36 = vsel %vm647_vm2, %v567_v35, -inf  ;;  %v643_v37 = vpop.f32.mrf.mxu1 }
  0xd3   :  { %664 = vmax.xlane.f32.xlu1 %v663_v34  ;;  %667 = vmax.xlane.f32.xlu0 %v666_v36  ;;  %v1457_v38 = vpop.f32.mrf.mxu0  ;;  %v669_v40 = vsel %vm647_vm2, %v643_v37, -inf  ;;  %v33_v34 = vld [vmem:[%s1773_s2 + $0x6] sm:$0x3]  ;;  %v34_v36 = vld [vmem:[%s1773_s2 + $0x8] sm:$0x3] }
  0xd4   :  { %v1462_v39 = vpop.f32.mrf.mxu1 }
  0xd7   :  { %670 = vmax.xlane.f32.xlu1 %v669_v40  ;;  %v35_v40 = vld [vmem:[%s1773_s2 + $0xa] sm:$0x3] }
 0x150   :  { %v650_v41 = vpop.xlane.xlu0 %649 }
 0x151   :  { %v672_v42 = vsub.f32 %v111_v17, %v650_v41 }
 0x153   :  { %v680_v43 = vmul.f32 1.442695, %v672_v42  ;;  %v36_v42 = vld [vmem:[%s1773_s2 + $0xc] sm:$0x3] }
 0x154   :  { %v653_v44 = vpop.xlane.xlu0 %652  ;;  %v656_v45 = vpop.xlane.xlu1 %655 }
 0x155   :  { %1505 = vpow2.f32 %v680_v43  ;;  %v673_v46 = vsub.f32 %v187_v19, %v653_v44  ;;  %v674_v47 = vsub.f32 %v263_v23, %v656_v45  ;;  %v31_v19 = vld [vmem:[%s1773_s2 + $0x2] sm:$0x3] }
 0x156   :  { %1469 = vmatpush3.msk.msra.mxu1 %vm740_vm3, %v31_v19 }
 0x157   :  { %v682_v48 = vmul.f32 1.442695, %v673_v46  ;;  %v684_v49 = vmul.f32 1.442695, %v674_v47  ;;  %1478 = vmatprep.subr.mxu1 %v1537_v0  ;;  %v37_v46 = vld [vmem:[%s1773_s2 + $0xe] sm:$0x3] }
 0x158   :  { %v659_v50 = vpop.xlane.xlu1 %658  ;;  %v662_v51 = vpop.xlane.xlu0 %661 }
 0x159   :  { %1507 = vpow2.f32 %v682_v48  ;;  %v675_v52 = vsub.f32 %v339_v25, %v659_v50  ;;  %v676_v53 = vsub.f32 %v415_v29, %v662_v51  ;;  %v32_v29 = vld [vmem:[%s1773_s2 + $0x4] sm:$0x3] }
 0x15a   :  { %1509 = vpow2.f32 %v684_v49 }
 0x15b   :  { %v686_v54 = vmul.f32 1.442695, %v675_v52  ;;  %v688_v55 = vmul.f32 1.442695, %v676_v53 }
 0x15c   :  { %v665_v56 = vpop.xlane.xlu1 %664  ;;  %v668_v57 = vpop.xlane.xlu0 %667 }
 0x15d   :  { %1511 = vpow2.f32 %v686_v54  ;;  %v677_v58 = vsub.f32 %v491_v31, %v665_v56  ;;  %v678_v59 = vsub.f32 %v567_v35, %v668_v57 }
 0x15e   :  { %1513 = vpow2.f32 %v688_v55 }
 0x15f   :  { %v690_v60 = vmul.f32 1.442695, %v677_v58  ;;  %v692_v61 = vmul.f32 1.442695, %v678_v59 }
 0x160   :  { %v671_v62 = vpop.xlane.xlu1 %670 }
 0x161   :  { %1515 = vpow2.f32 %v690_v60  ;;  %v679_v63 = vsub.f32 %v643_v37, %v671_v62 }
 0x162   :  { %v1506_v1 = vpop.eup %1505  ;;  %1517 = vpow2.f32 %v692_v61 }
 0x163   :  { %v694_v2 = vmul.f32 1.442695, %v679_v63  ;;  %v696_v3 = vsel %vm647_vm2, %v1506_v1, 0.0 }
 0x164   :  { %697 = vadd.xlane.f32.xlu0 %v696_v3 }
 0x165   :  { %1519 = vpow2.f32 %v694_v2 }
 0x166   :  { %v1508_v4 = vpop.eup %1507 }
 0x167   :  { %v1510_v5 = vpop.eup %1509  ;;  %v699_v6 = vsel %vm647_vm2, %v1508_v4, 0.0 }
 0x168   :  { %700 = vadd.xlane.f32.xlu1 %v699_v6  ;;  %v702_v7 = vsel %vm647_vm2, %v1510_v5, 0.0 }
 0x169   :  { %703 = vadd.xlane.f32.xlu0 %v702_v7 }
 0x16a   :  { %v1512_v8 = vpop.eup %1511 }
 0x16b   :  { %v1514_v9 = vpop.eup %1513  ;;  %v705_v10 = vsel %vm647_vm2, %v1512_v8, 0.0 }
 0x16c   :  { %706 = vadd.xlane.f32.xlu1 %v705_v10  ;;  %v708_v11 = vsel %vm647_vm2, %v1514_v9, 0.0 }
 0x16d   :  { %709 = vadd.xlane.f32.xlu0 %v708_v11 }
 0x16e   :  { %v1666_v12 = vpop.eup %1515 }
 0x16f   :  { %v1668_v13 = vpop.eup %1517  ;;  %v711_v14 = vsel %vm647_vm2, %v1666_v12, 0.0 }
 0x170   :  { %712 = vadd.xlane.f32.xlu1 %v711_v14  ;;  %v714_v15 = vsel %vm647_vm2, %v1668_v13, 0.0 }
 0x171   :  { %715 = vadd.xlane.f32.xlu0 %v714_v15 }
 0x172   :  { %v1674_v16 = vpop.eup %1519 }
 0x173   :  { %v717_v17 = vsel %vm647_vm2, %v1674_v16, 0.0 }
 0x174   :  { %718 = vadd.xlane.f32.xlu1 %v717_v17 }
 0x1ed   :  { %v698_v20 = vpop.xlane.xlu0 %697 }
 0x1ee   :  { %1521 = vrcp.f32 %v698_v20 }
 0x1f1   :  { %v701_v21 = vpop.xlane.xlu1 %700 }
 0x1f2   :  { %1523 = vrcp.f32 %v701_v21  ;;  %v704_v22 = vpop.xlane.xlu0 %703 }
 0x1f3   :  { %1525 = vrcp.f32 %v704_v22 }
 0x1f5   :  { %v707_v23 = vpop.xlane.xlu1 %706 }
 0x1f6   :  { %1527 = vrcp.f32 %v707_v23  ;;  %v710_v24 = vpop.xlane.xlu0 %709 }
 0x1f7   :  { %1529 = vrcp.f32 %v710_v24 }
 0x1f9   :  { %v713_v25 = vpop.xlane.xlu1 %712 }
 0x1fa   :  { %1531 = vrcp.f32 %v713_v25  ;;  %v716_v26 = vpop.xlane.xlu0 %715 }
 0x1fb   :  { %v1522_v27 = vpop.eup %1521  ;;  %1533 = vrcp.f32 %v716_v26 }
 0x1fc   :  { %v728_v28 = vmul.f32 %v1522_v27, %v1506_v1 }
 0x1fd   :  { %v719_v30 = vpop.xlane.xlu1 %718 }
 0x1fe   :  { %1535 = vrcp.f32 %v719_v30  ;;  %1466 = vmatmul.mubr.msk.f32.vlgmr.msra.gmra.mxu0 %vm736_vm4, %v728_v28 }
 0x1ff   :  { %v1524_v31 = vpop.eup %1523  ;;  %1474 = vmatpush3.msk.msra.mxu0 %vm740_vm3, %v32_v29  ;;  %1475 = vmatprep.mubr.msk.f32.mxu0 %vm1538_vm1, %v1537_v0 }
 0x200   :  { %v1526_v32 = vpop.eup %1525  ;;  %v729_v33 = vmul.f32 %v1524_v31, %v1508_v4  ;;  %1483 = vmatprep.subr.mxu0 %v1537_v0 }
 0x201   :  { %v730_v35 = vmul.f32 %v1526_v32, %v1510_v5 }
 0x202   :  { %1471 = vmatmul.mubr.msk.f32.vlgmr.msra.gmra.mxu1 %vm736_vm4, %v729_v33 }
 0x203   :  { %v1528_v37 = vpop.eup %1527  ;;  %1476 = vmatmul.mubr.msk.f32.vlgmr.msra.gmra.mxu0 %vm736_vm4, %v730_v35  ;;  %1479 = vmatpush3.msk.msra.mxu1 %vm740_vm3, %v33_v34 }
 0x204   :  { %v1530_v38 = vpop.eup %1529  ;;  %1480 = vmatprep.mubr.msk.f32.mxu1 %vm1538_vm1, %v1537_v0  ;;  %1484 = vmatpush3.msk.msra.mxu0 %vm740_vm3, %v34_v36  ;;  %v731_v39 = vmul.f32 %v1528_v37, %v1512_v8 }
 0x205   :  { %1485 = vmatprep.mubr.msk.f32.mxu0 %vm1538_vm1, %v1537_v0  ;;  %v732_v41 = vmul.f32 %v1530_v38, %v1514_v9  ;;  %1488 = vmatprep.subr.mxu1 %v1537_v0 }
 0x206   :  { %1481 = vmatmul.mubr.msk.f32.vlgmr.msra.gmra.mxu1 %vm736_vm4, %v731_v39  ;;  %1493 = vmatprep.subr.mxu0 %v1537_v0 }
 0x207   :  { %v1532_v43 = vpop.eup %1531  ;;  %1486 = vmatmul.mubr.msk.f32.vlgmr.msra.gmra.mxu0 %vm736_vm4, %v732_v41  ;;  %1489 = vmatpush3.msk.msra.mxu1 %vm740_vm3, %v35_v40 }
 0x208   :  { %v1534_v44 = vpop.eup %1533  ;;  %1490 = vmatprep.mubr.msk.f32.mxu1 %vm1538_vm1, %v1537_v0  ;;  %1494 = vmatpush3.msk.msra.mxu0 %vm740_vm3, %v36_v42  ;;  %v733_v45 = vmul.f32 %v1532_v43, %v1666_v12 }
 0x209   :  { %1495 = vmatprep.mubr.msk.f32.mxu0 %vm1538_vm1, %v1537_v0  ;;  %v734_v47 = vmul.f32 %v1534_v44, %v1668_v13  ;;  %1498 = vmatprep.subr.mxu1 %v1537_v0 }
 0x20a   :  { %1491 = vmatmul.mubr.msk.f32.vlgmr.msra.gmra.mxu1 %vm736_vm4, %v733_v45 }
 0x20b   :  { %v1536_v48 = vpop.eup %1535  ;;  %1496 = vmatmul.mubr.msk.f32.vlgmr.msra.gmra.mxu0 %vm736_vm4, %v734_v47  ;;  %1499 = vmatpush3.msk.msra.mxu1 %vm740_vm3, %v37_v46 }
 0x20c   :  { %1500 = vmatprep.mubr.msk.f32.mxu1 %vm1538_vm1, %v1537_v0  ;;  %v735_v49 = vmul.f32 %v1536_v48, %v1674_v16 }
 0x20e   :  { %1501 = vmatmul.mubr.msk.f32.vlgmr.msra.gmra.mxu1 %vm736_vm4, %v735_v49 }
 0x2be   :  { %v810_v50 = vpop.f32.mrf.mxu0 }
 0x2bf   :  { %1347 = vst.msk [vmem:[%s1774_s3] sm:$0x1] %vm1346_vm5, %v810_v50 }
 0x2c0   :  { %v1467_v51 = vpop.f32.mrf.mxu0 }
 0x2c2   :  { %v886_v52 = vpop.f32.mrf.mxu1 }
 0x2c3   :  { %1348 = vst.msk [vmem:[%s1774_s3 + $0x1] sm:$0x1] %vm1346_vm5, %v886_v52  ;;  %v962_v53 = vpop.f32.mrf.mxu0 }
 0x2c4   :  { %1349 = vst.msk [vmem:[%s1774_s3 + $0x2] sm:$0x1] %vm1346_vm5, %v962_v53  ;;  %v1472_v0 = vpop.f32.mrf.mxu1 }
 0x2c5   :  { %v1477_v54 = vpop.f32.mrf.mxu0 }
 0x2c6   :  { %v1038_v55 = vpop.f32.mrf.mxu1 }
 0x2c7   :  { %1350 = vst.msk [vmem:[%s1774_s3 + $0x3] sm:$0x1] %vm1346_vm5, %v1038_v55  ;;  %v1114_v56 = vpop.f32.mrf.mxu0 }
 0x2c8   :  { %1351 = vst.msk [vmem:[%s1774_s3 + $0x4] sm:$0x1] %vm1346_vm5, %v1114_v56  ;;  %v1482_v57 = vpop.f32.mrf.mxu1 }
 0x2c9   :  { %v1487_v58 = vpop.f32.mrf.mxu0 }
 0x2ca   :  { %v1190_v59 = vpop.f32.mrf.mxu1 }
 0x2cb   :  { %1352 = vst.msk [vmem:[%s1774_s3 + $0x5] sm:$0x1] %vm1346_vm5, %v1190_v59  ;;  %v1266_v60 = vpop.f32.mrf.mxu0 }
 0x2cc   :  { %1353 = vst.msk [vmem:[%s1774_s3 + $0x6] sm:$0x1] %vm1346_vm5, %v1266_v60  ;;  %v1492_v61 = vpop.f32.mrf.mxu1 }
 0x2cd   :  { %v1497_v62 = vpop.f32.mrf.mxu0 }
 0x2ce   :  { %v1342_v63 = vpop.f32.mrf.mxu1 }
 0x2cf   :  { %1354 = vst.msk [vmem:[%s1774_s3 + $0x7] sm:$0x1] %vm1346_vm5, %v1342_v63 }
 0x2d0   :  { %v1502_v1 = vpop.f32.mrf.mxu1 }

</bundles_post_ra>
